<compile_context>
chip_gen: v6e
topology: v6e:2x2x1
jax: 0.10.0
libtpu: 0.0.40
codegen_flags: <defaults>
</compile_context>

<pallas_src>
import jax
import jax.numpy as jnp
from jax import lax
from jax.experimental import pallas as pl
from jax.experimental.pallas import tpu as pltpu

IN_CHANNELS = 23
N_FILTERS = 128
KERNEL_SIZE = 3
PAD = 1
POOL = 4
BN_EPS = 1e-5


def _conv_bn_relu_pool_kernel(p_ref, w_ref, shift_ref, o_ref, acc_ref):
    """One (batch, length-tile) grid step.

    p_ref     : (1, TILE_L, K*C_in)      im2col patches, channels-last
    w_ref     : (K*C_in, F)              conv weight with BN scale folded in
    shift_ref : (1, F)                   conv_b*scale + beta - mean*scale
    o_ref     : (1, F, TILE_L // POOL)   output tile, already NCL
    acc_ref   : VMEM scratch (TILE_L, F) f32 raw conv accumulator (pre-pool)
    """
    t4 = o_ref.shape[2]  # TILE_L // POOL

    # Conv1d as a single K = 3*23 = 69 im2col MXU matmul, f32 accumulation.
    acc_ref[...] = jnp.dot(p_ref[0], w_ref[...],
                           preferred_element_type=jnp.float32)

    # MaxPool1d(kernel=4, stride=4) FIRST (commutes with the per-channel shift
    # and ReLU): max tree over the four stride-4 row sets, via strided sublane
    # loads from the VMEM scratch (no padded (T//4, 4, F) relayout).
    p0 = acc_ref[pl.ds(0, t4, stride=POOL), :]
    p1 = acc_ref[pl.ds(1, t4, stride=POOL), :]
    p2 = acc_ref[pl.ds(2, t4, stride=POOL), :]
    p3 = acc_ref[pl.ds(3, t4, stride=POOL), :]
    pooled = jnp.maximum(jnp.maximum(p0, p1), jnp.maximum(p2, p3))  # (t4, F)

    # Folded BatchNorm (eval) + conv bias, then ReLU — only on TILE_L/4 rows.
    y = jnp.maximum(pooled + shift_ref[...], 0.0)

    # Emit the tile directly in NCL layout (F, t4): in-kernel XLU transpose
    # saves a full output round trip through HBM in the wrapper.
    o_ref[0] = jnp.transpose(y).astype(o_ref.dtype)


def _pick_tile_l(L):
    """Largest length tile that divides L, is a multiple of 32, and <= 2048.

    Prefers multiples of 512 so the pooled tile width (TILE_L/4 >= 128) gives
    lane-dense, (8,128)-aligned output blocks and transposes. 2048 caps the
    per-step VMEM footprint (patches 2x565KB + 1MB scratch + 2x262KB out
    ~ 2.7 MiB) well under every chip's scoped-VMEM default.
    """
    for t in (2048, 1024, 512):
        if L % t == 0:
            return t
    for t in range(min(L, 2048), 0, -32):
        if L % t == 0:
            return t
    return L


def simple_layer_pallas(x, conv_w, conv_b, bn_gamma, bn_beta, bn_mean, bn_var,
                        *, compute_dtype=jnp.float32):
    """x: (N, C_in, L) float32 (PyTorch NCL). Returns (N, F, L // 4) float32.

    compute_dtype=jnp.bfloat16 casts the matmul operands only (K=69 contraction,
    f32 accumulation) for the v6e/v7x MXU; epilogue stays in f32.
    """
    N, C, L = x.shape
    assert C == IN_CHANNELS
    assert L % (8 * POOL) == 0, "length must be a multiple of 32"

    TILE_L = _pick_tile_l(L)
    L_out = L // POOL

    # ---- wrapper glue: im2col patches + constant folding (fuses into one XLA
    # producer pass: read x once, write patches once) --------------------------
    # TODO(synk): moving the im2col/transpose fully in-kernel would save this
    # extra HBM pass but needs halo (overlapping-window) DMA; kept out for now.
    xt = jnp.transpose(x, (0, 2, 1)).astype(compute_dtype)            # (N, L, C)
    xp = jnp.pad(xt, ((0, 0), (PAD, PAD), (0, 0)))                    # (N, L+2, C)
    patches = jnp.concatenate(
        [xp[:, k:k + L, :] for k in range(KERNEL_SIZE)], axis=-1)     # (N, L, K*C)

    scale = bn_gamma / jnp.sqrt(bn_var + BN_EPS)                      # (F,)
    w_km = jnp.transpose(conv_w, (2, 1, 0)).reshape(KERNEL_SIZE * C, N_FILTERS)
    w_folded = (w_km * scale[None, :]).astype(compute_dtype)          # (K*C, F)
    shift = (conv_b * scale + bn_beta - bn_mean * scale).astype(jnp.float32)
    shift2 = shift.reshape(1, N_FILTERS)

    return pl.pallas_call(
        _conv_bn_relu_pool_kernel,
        out_shape=jax.ShapeDtypeStruct((N, N_FILTERS, L_out), jnp.float32),
        grid=(N, L // TILE_L),
        in_specs=[
            pl.BlockSpec((1, TILE_L, KERNEL_SIZE * C), lambda n, j: (n, j, 0)),
            pl.BlockSpec((KERNEL_SIZE * C, N_FILTERS), lambda n, j: (0, 0)),
            pl.BlockSpec((1, N_FILTERS), lambda n, j: (0, 0)),
        ],
        out_specs=pl.BlockSpec((1, N_FILTERS, TILE_L // POOL),
                               lambda n, j: (n, 0, j)),
        scratch_shapes=[pltpu.VMEM((TILE_L, N_FILTERS), jnp.float32)],
        compiler_params=pltpu.CompilerParams(
            dimension_semantics=("parallel", "parallel")),
    )(patches, w_folded, shift2)


def simple_layer_ref(x, conv_w, conv_b, bn_gamma, bn_beta, bn_mean, bn_var):
    """Pure-JAX reference matching the PyTorch module semantics."""
    y = lax.conv_general_dilated(
        x, conv_w, window_strides=(1,), padding=((PAD, PAD),),
        dimension_numbers=("NCW", "OIW", "NCW"))
    y = y + conv_b[None, :, None]
    scale = bn_gamma / jnp.sqrt(bn_var + BN_EPS)
    y = (y - bn_mean[None, :, None]) * scale[None, :, None] + bn_beta[None, :, None]
    y = jnp.maximum(y, 0.0)
    N, F, L = y.shape
    return jnp.max(y.reshape(N, F, L // POOL, POOL), axis=-1)


if __name__ == "__main__":
    key = jax.random.PRNGKey(0)
    k_x, k_w, k_b, k_g, k_be, k_m, k_v = jax.random.split(key, 7)

    # Small, conv-consistent shapes. L=2048 gives one 2048-row tile per batch
    # (grid = (2, 1)); total input is still < 0.4 MB.
    N, L = 2, 2048
    x = jax.random.normal(k_x, (N, IN_CHANNELS, L), dtype=jnp.float32)

    # Deterministic synthetic parameters (shapes match nn.Conv1d / nn.BatchNorm1d).
    conv_w = 0.1 * jax.random.normal(k_w, (N_FILTERS, IN_CHANNELS, KERNEL_SIZE),
                                     dtype=jnp.float32)
    conv_b = 0.1 * jax.random.normal(k_b, (N_FILTERS,), dtype=jnp.float32)
    bn_gamma = 1.0 + 0.1 * jax.random.normal(k_g, (N_FILTERS,), dtype=jnp.float32)
    bn_beta = 0.1 * jax.random.normal(k_be, (N_FILTERS,), dtype=jnp.float32)
    bn_mean = 0.1 * jax.random.normal(k_m, (N_FILTERS,), dtype=jnp.float32)
    bn_var = jnp.abs(jax.random.normal(k_v, (N_FILTERS,), dtype=jnp.float32)) + 0.5

    out = simple_layer_pallas(x, conv_w, conv_b, bn_gamma, bn_beta, bn_mean, bn_var)
    out = jax.block_until_ready(out)

    ref = simple_layer_ref(x, conv_w, conv_b, bn_gamma, bn_beta, bn_mean, bn_var)
    assert out.shape == (N, N_FILTERS, L // POOL), out.shape
    err = float(jnp.max(jnp.abs(out - ref)))
    assert jnp.allclose(out, ref, atol=5e-4, rtol=1e-4), err

    print("KERNEL_OK")
</pallas_src>

<mosaic_0001>
module attributes {stable_mosaic.version = 11 : i64} {
  func.func @_conv_bn_relu_pool_kernel(%arg0: i32, %arg1: i32, %arg2: memref<1x2048x69xf32, #tpu.memory_space<vmem>>, %arg3: memref<69x128xf32, #tpu.memory_space<vmem>>, %arg4: memref<1x128xf32, #tpu.memory_space<vmem>>, %arg5: memref<1x128x512xf32, #tpu.memory_space<vmem>>, %arg6: memref<2048x128xf32, #tpu.memory_space<vmem>>) attributes {dimension_semantics = [#tpu.dimension_semantics<parallel>, #tpu.dimension_semantics<parallel>], iteration_bounds = array<i64: 2, 1>, scalar_prefetch = 0 : i64, scratch_operands = 1 : i64, tpu.core_type = #tpu.core_type<tc>, window_params = [{transform_indices = @transform_0, window_bounds = array<i64: 1, 2048, 69>}, {pipeline_mode = #tpu.pipeline_mode<synchronous>, transform_indices = @transform_1, window_bounds = array<i64: 69, 128>}, {pipeline_mode = #tpu.pipeline_mode<synchronous>, transform_indices = @transform_2, window_bounds = array<i64: 1, 128>}, {transform_indices = @transform_3, window_bounds = array<i64: 1, 128, 512>}]} {
    %c0 = arith.constant 0 : index
    %c0_0 = arith.constant 0 : index
    %c0_1 = arith.constant 0 : index
    %0 = vector.load %arg2[%c0, %c0_0, %c0_1] : memref<1x2048x69xf32, #tpu.memory_space<vmem>>, vector<1x2048x69xf32>
    %1 = vector.shape_cast %0 : vector<1x2048x69xf32> to vector<2048x69xf32>
    %c0_2 = arith.constant 0 : index
    %c0_3 = arith.constant 0 : index
    %2 = vector.load %arg3[%c0_2, %c0_3] : memref<69x128xf32, #tpu.memory_space<vmem>>, vector<69x128xf32>
    %cst = arith.constant dense<0.000000e+00> : vector<2048x128xf32>
    %3 = tpu.matmul %1, %2, %cst {dimension_numbers = #tpu.dot_dimension_numbers<[1], [0], [0], [1], [0, 0, 1, 1], [], []>} : vector<2048x69xf32>, vector<69x128xf32>, vector<2048x128xf32> -> vector<2048x128xf32>
    %c0_4 = arith.constant 0 : index
    %c0_5 = arith.constant 0 : index
    %4 = vector.load %arg6[%c0_4, %c0_5] : memref<2048x128xf32, #tpu.memory_space<vmem>>, vector<2048x128xf32>
    tpu.vector_store %arg6[%c0_4, %c0_5], %3 {strides = array<i32>} : memref<2048x128xf32, #tpu.memory_space<vmem>>, vector<2048x128xf32>,
    %c0_6 = arith.constant 0 : index
    %c0_7 = arith.constant 0 : index
    %5 = tpu.strided_load %arg6[%c0_6, %c0_7] {strides = array<i32: 4, 1>} : memref<2048x128xf32, #tpu.memory_space<vmem>>, vector<512x128xf32>
    %c1 = arith.constant 1 : index
    %c0_8 = arith.constant 0 : index
    %6 = tpu.strided_load %arg6[%c1, %c0_8] {strides = array<i32: 4, 1>} : memref<2048x128xf32, #tpu.memory_space<vmem>>, vector<512x128xf32>
    %c2 = arith.constant 2 : index
    %c0_9 = arith.constant 0 : index
    %7 = tpu.strided_load %arg6[%c2, %c0_9] {strides = array<i32: 4, 1>} : memref<2048x128xf32, #tpu.memory_space<vmem>>, vector<512x128xf32>
    %c3 = arith.constant 3 : index
    %c0_10 = arith.constant 0 : index
    %8 = tpu.strided_load %arg6[%c3, %c0_10] {strides = array<i32: 4, 1>} : memref<2048x128xf32, #tpu.memory_space<vmem>>, vector<512x128xf32>
    %9 = arith.maximumf %5, %6 : vector<512x128xf32>
    %10 = arith.maximumf %7, %8 : vector<512x128xf32>
    %11 = arith.maximumf %9, %10 : vector<512x128xf32>
    %c0_11 = arith.constant 0 : index
    %c0_12 = arith.constant 0 : index
    %12 = vector.load %arg4[%c0_11, %c0_12] : memref<1x128xf32, #tpu.memory_space<vmem>>, vector<1x128xf32>
    %13 = vector.broadcast %12 : vector<1x128xf32> to vector<512x128xf32>
    %14 = arith.addf %11, %13 : vector<512x128xf32>
    %cst_13 = arith.constant 0.000000e+00 : f32
    %15 = vector.broadcast %cst_13 : f32 to vector<512x128xf32>
    %16 = arith.maximumf %14, %15 : vector<512x128xf32>
    %17 = tpu.transpose %16, [1, 0] : vector<512x128xf32> -> vector<128x512xf32>
    %c0_14 = arith.constant 0 : index
    %c0_15 = arith.constant 0 : index
    %c0_16 = arith.constant 0 : index
    %18 = vector.load %arg5[%c0_14, %c0_15, %c0_16] : memref<1x128x512xf32, #tpu.memory_space<vmem>>, vector<1x128x512xf32>
    %19 = vector.shape_cast %18 : vector<1x128x512xf32> to vector<128x512xf32>
    %20 = vector.shape_cast %17 : vector<128x512xf32> to vector<1x128x512xf32>
    tpu.vector_store %arg5[%c0_14, %c0_15, %c0_16], %20 {strides = array<i32>} : memref<1x128x512xf32, #tpu.memory_space<vmem>>, vector<1x128x512xf32>,
    return
  }
  func.func @transform_0(%arg0: i32, %arg1: i32) -> (i32, i32, i32) {
    %c0_i32 = arith.constant 0 : i32
    %c0_i32_0 = arith.constant 0 : i32
    return %arg0, %arg1, %c0_i32 : i32, i32, i32
  }
  func.func @transform_1(%arg0: i32, %arg1: i32) -> (i32, i32) {
    %c0_i32 = arith.constant 0 : i32
    %c0_i32_0 = arith.constant 0 : i32
    %c0_i32_1 = arith.constant 0 : i32
    return %c0_i32, %c0_i32_0 : i32, i32
  }
  func.func @transform_2(%arg0: i32, %arg1: i32) -> (i32, i32) {
    %c0_i32 = arith.constant 0 : i32
    %c0_i32_0 = arith.constant 0 : i32
    %c0_i32_1 = arith.constant 0 : i32
    return %c0_i32, %c0_i32_0 : i32, i32
  }
  func.func @transform_3(%arg0: i32, %arg1: i32) -> (i32, i32, i32) {
    %c0_i32 = arith.constant 0 : i32
    %c0_i32_0 = arith.constant 0 : i32
    return %arg0, %c0_i32, %arg1 : i32, i32, i32
  }
}

</mosaic_0001>

<bundles_post_ra>
// kernel: tpu_custom_call.1
= control target key start
LH: loop header
LB: loop body
LE: loop exit
PB: predicated region body
PF: predicated region fallthrough
CT: control target
= control target key end

     0   :  { %8 = vsyncpa [#allocation4], 0  ;;  %s5887_s0 = inlined_call_operand.vmem [shape: f32[2,2048,69], index: 0, kind: input, shape index: {}]   ;;  %s5888_s1 = inlined_call_operand.vmem [shape: f32[69,128], index: 1, kind: input, shape index: {}]   ;;  %s5889_s2 = inlined_call_operand.vmem [shape: f32[1,128], index: 2, kind: input, shape index: {}]   ;;  %s5890_s3 = inlined_call_operand.hbm [shape: f32[2,128,512], index: 3, kind: output, shape index: {}]  }
   0x1   :  { %10 = vsyncpa [#allocation4 + $0x1], 0  ;;  %s5082_s12 = smov 0   ;;  %s5084_s13 = smov 0  }
   0x2   :  { %s5086_s14 = smov 0   ;;  %s5088_s15 = smov 0  }
   0x3   :  { %s5090_s16 = smov 0   ;;  %s5092_s17 = smov 0  }
   0x4 LB: > { %s3964_s18 = sadd.s32 4294967295, %s5057_s17   ;;  %s3965_s19 = sadd.s32 4294967294, %s5057_s17   ;;  %s5057_s17 = sphi %s5092_s17, %s16_s17   ;;  %s5053_s16 = sphi %s5090_s16, %s5897_s16   ;;  %s5049_s15 = sphi %s5088_s15, %s5896_s15   ;;  %s5045_s14 = sphi %s5086_s14, %s5895_s14   ;;  %s5041_s13 = sphi %s5084_s13, %s5894_s13   ;;  %s5037_s12 = sphi %s5082_s12, %s5893_s12  }
   0x5   : > { %s28_s20 = sadd.s32 1, %s5053_s16  ;;  %s107_s21 = sadd.s32 1, %s5045_s14 }
   0x6   : > { %p30_p0 = scmp.ge.s32.totalorder %s28_s20, 2  ;;  %p117_p1 = scmp.ne.s32.totalorder %s5045_s14, %s5041_s13 }
   0x7   : > { %p118_p2 = scmp.eq.s32.totalorder %s3964_s18, 1  ;;  %p123_p3 = scmp.ne.s32.totalorder %s5041_s13, %s5037_s12 }
   0x8   : > { %s5899_s20 = smov (%p30_p0, %s28_s20), 0  ;;  %p124_p5 = scmp.eq.s32.totalorder %s3965_s19, 1 }
   0x9   : > { %p5122_p4 = por %p118_p2, %p117_p1  ;;  %s102_s23 = ssub.s32 %s5053_s16, %s5899_s20 }
   0xa   : > { %p3968_p6 = scmp.ge.s32.totalorder %s5057_s17, 1  ;;  %p105_p7 = scmp.eq.s32.totalorder %s102_s23, 0 }
   0xb   : > { %p5129_p8 = por %p124_p5, %p123_p3  ;;  %p161_p9 = scmp.lt.s32.totalorder %s5057_s17, 3 }
   0xc   : > { %s5135_s25 = scalar_select %p105_p7, %s5045_s14, %s107_s21  }
   0xd   : > { %p162_p10 = pnand %p3968_p6, %p161_p9 }
   0xe   : > { %p190_p11 = scmp.lt.s32.totalorder (!%p162_p10), %s5049_s15, 1  ;;  %s186_s9 = sand.u32 (!%p162_p10), 1, %s5041_s13  }
   0xf   : > { %165 = sbr.rel (%p162_p10) target bundleno = 706 (0x2c2), region = 32  ;;  %s3969_s10 = sshll.u32 (!%p162_p10), %s186_s9, 9 }
  0x10   : > { %s4236_s21 = sshll.u32 (!%p162_p10), %s5049_s15, 13  ;;  %s5842_s29 = scalar_lea.sflag (!%p162_p10), [#allocation4], %s186_s9 }
  0x11   : > { %s5835_s28 = scalar_lea.hbm (!%p162_p10), %s5890_s3, %s4236_s21 }
  0x14   : > { %v464_v0 = vld [vmem:[%s5888_s1 + $0x40] sm:$0x1f]  ;;  %vm1234_vm0 = vcmask 1044480   ;;  %v463_v1 = vld [vmem:[%s5888_s1 + $0x38] sm:$0xff]  ;;  %v462_v2 = vld [vmem:[%s5888_s1 + $0x30] sm:$0xff]  ;;  %s191_s5 = scalar_select %p190_p11, %s5049_s15, 1 }
  0x15   : > { %4502 = vmatprep.subr.msk.mxu0 %vm1234_vm0, %v464_v0  ;;  %4904 = vmatprep.subr.msk.mxu1 %vm1234_vm0, %v464_v0  ;;  %v461_v3 = vld [vmem:[%s5888_s1 + $0x28] sm:$0xff]  ;;  %vm465_vm1 = vcmask 564224   ;;  %v460_v4 = vld [vmem:[%s5888_s1 + $0x20] sm:$0xff]  ;;  %v459_v6 = vld [vmem:[%s5888_s1 + $0x18] sm:$0xff]  ;;  %s5059_s15 = smov [#allocation3]  }
  0x16   : > { %4503 = vmatpush3.msk.msra.mxu0 %vm1234_vm0, %v464_v0  ;;  %4913 = vmatpush3.msk.msra.mxu1 %vm1234_vm0, %v464_v0  ;;  %s4235_s8 = sshll.u32 %s191_s5, 11  ;;  %v458_v7 = vld [vmem:[%s5888_s1 + $0x10] sm:$0xff]  ;;  %v457_v8 = vld [vmem:[%s5888_s1 + $0x8] sm:$0xff]  ;;  %v456_v9 = vld [vmem:[%s5888_s1] sm:$0xff]  ;;  %s4985_s4 = sshll.u32 %s5059_s15, 4  ;;  %s4986_s4 = int_to_ptr.vmem [resolvable:$false] %s4985_s4 }
  0x17   : > { %4504 = vmatprep.subr.mxu0 %v463_v1  ;;  %4905 = vmatprep.subr.mxu1 %v463_v1  ;;  %s5154_s11 = scalar_lea.vmem %s5887_s0, %s4235_s8  ;;  %s4987_s5 = scalar_lea.vmem %s4986_s4, 16384 }
  0x18   : > { %4505 = vmatpush3.msra.mxu0 %v463_v1  ;;  %4914 = vmatpush3.msra.mxu1 %v463_v1  ;;  %v200_v5 = vld [vmem:[%s5154_s11] sm:$0xff]  ;;  %v201_v10 = vld [vmem:[%s5154_s11 + $0x8] sm:$0xff]  ;;  %v202_v11 = vld [vmem:[%s5154_s11 + $0x10] sm:$0xff] }
  0x19   : > { %4506 = vmatprep.subr.mxu0 %v462_v2  ;;  %4906 = vmatprep.subr.mxu1 %v462_v2  ;;  %v328_v12 = vld [vmem:[%s5154_s11 + $0x400] sm:$0xff]  ;;  %v329_v13 = vld [vmem:[%s5154_s11 + $0x408] sm:$0xff]  ;;  %v330_v14 = vld [vmem:[%s5154_s11 + $0x410] sm:$0xff] }
  0x1a   : > { %4507 = vmatpush3.msra.mxu0 %v462_v2  ;;  %4915 = vmatpush3.msra.mxu1 %v462_v2  ;;  %v203_v15 = vld [vmem:[%s5154_s11 + $0x18] sm:$0xff]  ;;  %v204_v16 = vld [vmem:[%s5154_s11 + $0x20] sm:$0xff]  ;;  %v205_v19 = vld [vmem:[%s5154_s11 + $0x28] sm:$0xff] }
  0x1b   : > { %4508 = vmatprep.subr.mxu0 %v461_v3  ;;  %4520 = vmatprep.mubr.msk.f32.mxu0 %vm465_vm1, %v200_v5  ;;  %v331_v17 = vld [vmem:[%s5154_s11 + $0x418] sm:$0xff]  ;;  %v332_v18 = vld [vmem:[%s5154_s11 + $0x420] sm:$0xff]  ;;  %v206_v20 = vld [vmem:[%s5154_s11 + $0x30] sm:$0xff] }
  0x1c   : > { %4509 = vmatpush3.msra.mxu0 %v461_v3  ;;  %4907 = vmatprep.subr.mxu1 %v461_v3  ;;  %v333_v21 = vld [vmem:[%s5154_s11 + $0x428] sm:$0xff]  ;;  %v334_v22 = vld [vmem:[%s5154_s11 + $0x430] sm:$0xff]  ;;  %v207_v23 = vld [vmem:[%s5154_s11 + $0x38] sm:$0xff] }
  0x1d   : > { %4510 = vmatprep.subr.mxu0 %v460_v4  ;;  %4916 = vmatpush3.msra.mxu1 %v461_v3  ;;  %v208_v24 = vld [vmem:[%s5154_s11 + $0x40] sm:$0xff]  ;;  %v335_v25 = vld [vmem:[%s5154_s11 + $0x438] sm:$0xff]  ;;  %v209_v27 = vld [vmem:[%s5154_s11 + $0x48] sm:$0xff] }
  0x1e   : > { %4511 = vmatpush3.msra.mxu0 %v460_v4  ;;  %4908 = vmatprep.subr.mxu1 %v460_v4  ;;  %v336_v26 = vld [vmem:[%s5154_s11 + $0x440] sm:$0xff]  ;;  %v210_v28 = vld [vmem:[%s5154_s11 + $0x50] sm:$0xff]  ;;  %v337_v29 = vld [vmem:[%s5154_s11 + $0x448] sm:$0xff] }
  0x1f   : > { %4512 = vmatprep.subr.mxu0 %v459_v6  ;;  %4917 = vmatpush3.msra.mxu1 %v460_v4  ;;  %v338_v30 = vld [vmem:[%s5154_s11 + $0x450] sm:$0xff]  ;;  %v211_v31 = vld [vmem:[%s5154_s11 + $0x58] sm:$0xff]  ;;  %v212_v32 = vld [vmem:[%s5154_s11 + $0x60] sm:$0xff] }
  0x20   : > { %4513 = vmatpush3.msra.mxu0 %v459_v6  ;;  %4909 = vmatprep.subr.mxu1 %v459_v6  ;;  %v339_v33 = vld [vmem:[%s5154_s11 + $0x458] sm:$0xff]  ;;  %v340_v34 = vld [vmem:[%s5154_s11 + $0x460] sm:$0xff]  ;;  %v213_v35 = vld [vmem:[%s5154_s11 + $0x68] sm:$0xff] }
  0x21   : > { %4514 = vmatprep.subr.mxu0 %v458_v7  ;;  %4918 = vmatpush3.msra.mxu1 %v459_v6  ;;  %v214_v36 = vld [vmem:[%s5154_s11 + $0x70] sm:$0xff]  ;;  %v341_v37 = vld [vmem:[%s5154_s11 + $0x468] sm:$0xff]  ;;  %v215_v39 = vld [vmem:[%s5154_s11 + $0x78] sm:$0xff] }
  0x22   : > { %4515 = vmatpush3.msra.mxu0 %v458_v7  ;;  %4910 = vmatprep.subr.mxu1 %v458_v7  ;;  %v342_v38 = vld [vmem:[%s5154_s11 + $0x470] sm:$0xff]  ;;  %v216_v40 = vld [vmem:[%s5154_s11 + $0x80] sm:$0xff]  ;;  %v343_v41 = vld [vmem:[%s5154_s11 + $0x478] sm:$0xff] }
  0x23   : > { %4516 = vmatprep.subr.mxu0 %v457_v8  ;;  %4919 = vmatpush3.msra.mxu1 %v458_v7  ;;  %v344_v42 = vld [vmem:[%s5154_s11 + $0x480] sm:$0xff]  ;;  %v217_v43 = vld [vmem:[%s5154_s11 + $0x88] sm:$0xff]  ;;  %v218_v44 = vld [vmem:[%s5154_s11 + $0x90] sm:$0xff] }
  0x24   : > { %4517 = vmatpush3.msra.mxu0 %v457_v8  ;;  %4911 = vmatprep.subr.mxu1 %v457_v8  ;;  %v345_v45 = vld [vmem:[%s5154_s11 + $0x488] sm:$0xff]  ;;  %v346_v46 = vld [vmem:[%s5154_s11 + $0x490] sm:$0xff]  ;;  %v219_v47 = vld [vmem:[%s5154_s11 + $0x98] sm:$0xff] }
  0x25   : > { %4518 = vmatprep.subr.mxu0 %v456_v9  ;;  %4920 = vmatpush3.msra.mxu1 %v457_v8  ;;  %v220_v48 = vld [vmem:[%s5154_s11 + $0xa0] sm:$0xff]  ;;  %v347_v49 = vld [vmem:[%s5154_s11 + $0x498] sm:$0xff]  ;;  %v221_v51 = vld [vmem:[%s5154_s11 + $0xa8] sm:$0xff] }
  0x26   : > { %4519 = vmatpush3.msra.mxu0 %v456_v9  ;;  %4912 = vmatprep.subr.mxu1 %v456_v9  ;;  %v348_v50 = vld [vmem:[%s5154_s11 + $0x4a0] sm:$0xff]  ;;  %v222_v52 = vld [vmem:[%s5154_s11 + $0xb0] sm:$0xff]  ;;  %v349_v53 = vld [vmem:[%s5154_s11 + $0x4a8] sm:$0xff] }
  0x27   : > { %4521 = vmatmul.mubr.msk.f32.vlgmr.msra.gmra.mxu0 %vm465_vm1, %v201_v10  ;;  %4921 = vmatpush3.msra.mxu1 %v456_v9  ;;  %v350_v54 = vld [vmem:[%s5154_s11 + $0x4b0] sm:$0xff]  ;;  %v223_v55 = vld [vmem:[%s5154_s11 + $0xb8] sm:$0xff]  ;;  %v224_v56 = vld [vmem:[%s5154_s11 + $0xc0] sm:$0xff] }
  0x28   : > { %4523 = vmatprep.mubr.msk.f32.mxu0 %vm465_vm1, %v202_v11  ;;  %4712 = vmatprep.mubr.msk.f32.mxu1 %vm465_vm1, %v328_v12  ;;  %v351_v57 = vld [vmem:[%s5154_s11 + $0x4b8] sm:$0xff]  ;;  %v352_v58 = vld [vmem:[%s5154_s11 + $0x4c0] sm:$0xff]  ;;  %v225_v59 = vld [vmem:[%s5154_s11 + $0xc8] sm:$0xff] }
  0x29   : > { %4713 = vmatmul.mubr.msk.f32.vlgmr.msra.gmra.mxu1 %vm465_vm1, %v329_v13  ;;  %v226_v60 = vld [vmem:[%s5154_s11 + $0xd0] sm:$0xff]  ;;  %v353_v61 = vld [vmem:[%s5154_s11 + $0x4c8] sm:$0xff]  ;;  %v227_v63 = vld [vmem:[%s5154_s11 + $0xd8] sm:$0xff] }
  0x2a   : > { %4715 = vmatprep.mubr.msk.f32.mxu1 %vm465_vm1, %v330_v14  ;;  %v354_v62 = vld [vmem:[%s5154_s11 + $0x4d0] sm:$0xff]  ;;  %v228_v0 = vld [vmem:[%s5154_s11 + $0xe0] sm:$0xff]  ;;  %v355_v1 = vld [vmem:[%s5154_s11 + $0x4d8] sm:$0xff] }
  0x2b   : > { %4524 = vmatmul.mubr.msk.f32.gmra.mxu0 %vm465_vm1, %v203_v15  ;;  %v356_v2 = vld [vmem:[%s5154_s11 + $0x4e0] sm:$0xff]  ;;  %v229_v3 = vld [vmem:[%s5154_s11 + $0xe8] sm:$0xff]  ;;  %v230_v4 = vld [vmem:[%s5154_s11 + $0xf0] sm:$0xff] }
  0x2c   : > { %4526 = vmatprep.mubr.msk.f32.mxu0 %vm465_vm1, %v204_v16  ;;  %v357_v5 = vld [vmem:[%s5154_s11 + $0x4e8] sm:$0xff]  ;;  %v358_v6 = vld [vmem:[%s5154_s11 + $0x4f0] sm:$0xff]  ;;  %v231_v7 = vld [vmem:[%s5154_s11 + $0xf8] sm:$0xff] }
  0x2d   : > { %4716 = vmatmul.mubr.msk.f32.gmra.mxu1 %vm465_vm1, %v331_v17  ;;  %v232_v8 = vld [vmem:[%s5154_s11 + $0x100] sm:$0xff]  ;;  %v359_v9 = vld [vmem:[%s5154_s11 + $0x4f8] sm:$0xff]  ;;  %v233_v11 = vld [vmem:[%s5154_s11 + $0x108] sm:$0xff] }
  0x2e   : > { %4718 = vmatprep.mubr.msk.f32.mxu1 %vm465_vm1, %v332_v18  ;;  %v360_v10 = vld [vmem:[%s5154_s11 + $0x500] sm:$0xff]  ;;  %v234_v12 = vld [vmem:[%s5154_s11 + $0x110] sm:$0xff]  ;;  %v361_v13 = vld [vmem:[%s5154_s11 + $0x508] sm:$0xff] }
  0x2f   : > { %4527 = vmatmul.mubr.msk.f32.gmra.mxu0 %vm465_vm1, %v205_v19  ;;  %v362_v14 = vld [vmem:[%s5154_s11 + $0x510] sm:$0xff]  ;;  %v235_v15 = vld [vmem:[%s5154_s11 + $0x118] sm:$0xff]  ;;  %v236_v16 = vld [vmem:[%s5154_s11 + $0x120] sm:$0xff] }
  0x30   : > { %4529 = vmatprep.mubr.msk.f32.mxu0 %vm465_vm1, %v206_v20  ;;  %v363_v17 = vld [vmem:[%s5154_s11 + $0x518] sm:$0xff]  ;;  %v364_v18 = vld [vmem:[%s5154_s11 + $0x520] sm:$0xff]  ;;  %v237_v19 = vld [vmem:[%s5154_s11 + $0x128] sm:$0xff] }
  0x31   : > { %4719 = vmatmul.mubr.msk.f32.gmra.mxu1 %vm465_vm1, %v333_v21  ;;  %v238_v20 = vld [vmem:[%s5154_s11 + $0x130] sm:$0xff]  ;;  %v365_v21 = vld [vmem:[%s5154_s11 + $0x528] sm:$0xff] }
  0x32   : > { %4721 = vmatprep.mubr.msk.f32.mxu1 %vm465_vm1, %v334_v22  ;;  %v366_v22 = vld [vmem:[%s5154_s11 + $0x530] sm:$0xff] }
  0x33   : > { %4530 = vmatmul.mubr.msk.f32.gmra.mxu0 %vm465_vm1, %v207_v23  ;;  %v239_v23 = vld [vmem:[%s5154_s11 + $0x138] sm:$0xff] }
  0x34   : > { %4532 = vmatprep.mubr.msk.f32.mxu0 %vm465_vm1, %v208_v24  ;;  %v240_v24 = vld [vmem:[%s5154_s11 + $0x140] sm:$0xff] }
  0x35   : > { %4722 = vmatmul.mubr.msk.f32.gmra.mxu1 %vm465_vm1, %v335_v25  ;;  %v367_v25 = vld [vmem:[%s5154_s11 + $0x538] sm:$0xff] }
  0x36   : > { %4724 = vmatprep.mubr.msk.f32.mxu1 %vm465_vm1, %v336_v26  ;;  %v368_v26 = vld [vmem:[%s5154_s11 + $0x540] sm:$0xff] }
  0x37   : > { %4533 = vmatmul.mubr.msk.f32.gmra.mxu0 %vm465_vm1, %v209_v27  ;;  %v241_v27 = vld [vmem:[%s5154_s11 + $0x148] sm:$0xff] }
  0x38   : > { %4535 = vmatprep.mubr.msk.f32.mxu0 %vm465_vm1, %v210_v28  ;;  %v242_v28 = vld [vmem:[%s5154_s11 + $0x150] sm:$0xff] }
  0x39   : > { %4725 = vmatmul.mubr.msk.f32.gmra.mxu1 %vm465_vm1, %v337_v29  ;;  %v369_v29 = vld [vmem:[%s5154_s11 + $0x548] sm:$0xff] }
  0x3a   : > { %4727 = vmatprep.mubr.msk.f32.mxu1 %vm465_vm1, %v338_v30  ;;  %v370_v30 = vld [vmem:[%s5154_s11 + $0x550] sm:$0xff] }
  0x3b   : > { %4536 = vmatmul.mubr.msk.f32.gmra.mxu0 %vm465_vm1, %v211_v31  ;;  %v243_v31 = vld [vmem:[%s5154_s11 + $0x158] sm:$0xff] }
  0x3c   : > { %4538 = vmatprep.mubr.msk.f32.mxu0 %vm465_vm1, %v212_v32  ;;  %v244_v32 = vld [vmem:[%s5154_s11 + $0x160] sm:$0xff] }
  0x3d   : > { %4728 = vmatmul.mubr.msk.f32.gmra.mxu1 %vm465_vm1, %v339_v33  ;;  %v371_v33 = vld [vmem:[%s5154_s11 + $0x558] sm:$0xff] }
  0x3e   : > { %4730 = vmatprep.mubr.msk.f32.mxu1 %vm465_vm1, %v340_v34  ;;  %v372_v34 = vld [vmem:[%s5154_s11 + $0x560] sm:$0xff] }
  0x3f   : > { %4539 = vmatmul.mubr.msk.f32.gmra.mxu0 %vm465_vm1, %v213_v35  ;;  %v245_v35 = vld [vmem:[%s5154_s11 + $0x168] sm:$0xff] }
  0x40   : > { %4541 = vmatprep.mubr.msk.f32.mxu0 %vm465_vm1, %v214_v36  ;;  %v246_v36 = vld [vmem:[%s5154_s11 + $0x170] sm:$0xff] }
  0x41   : > { %4731 = vmatmul.mubr.msk.f32.gmra.mxu1 %vm465_vm1, %v341_v37  ;;  %v373_v37 = vld [vmem:[%s5154_s11 + $0x568] sm:$0xff] }
  0x42   : > { %4733 = vmatprep.mubr.msk.f32.mxu1 %vm465_vm1, %v342_v38  ;;  %v374_v38 = vld [vmem:[%s5154_s11 + $0x570] sm:$0xff] }
  0x43   : > { %4542 = vmatmul.mubr.msk.f32.gmra.mxu0 %vm465_vm1, %v215_v39  ;;  %v247_v39 = vld [vmem:[%s5154_s11 + $0x178] sm:$0xff] }
  0x44   : > { %4544 = vmatprep.mubr.msk.f32.mxu0 %vm465_vm1, %v216_v40  ;;  %v248_v40 = vld [vmem:[%s5154_s11 + $0x180] sm:$0xff] }
  0x45   : > { %4734 = vmatmul.mubr.msk.f32.gmra.mxu1 %vm465_vm1, %v343_v41  ;;  %v375_v41 = vld [vmem:[%s5154_s11 + $0x578] sm:$0xff] }
  0x46   : > { %4736 = vmatprep.mubr.msk.f32.mxu1 %vm465_vm1, %v344_v42  ;;  %v376_v42 = vld [vmem:[%s5154_s11 + $0x580] sm:$0xff] }
  0x47   : > { %4545 = vmatmul.mubr.msk.f32.gmra.mxu0 %vm465_vm1, %v217_v43  ;;  %v249_v43 = vld [vmem:[%s5154_s11 + $0x188] sm:$0xff] }
  0x48   : > { %4547 = vmatprep.mubr.msk.f32.mxu0 %vm465_vm1, %v218_v44  ;;  %v250_v44 = vld [vmem:[%s5154_s11 + $0x190] sm:$0xff] }
  0x49   : > { %4737 = vmatmul.mubr.msk.f32.gmra.mxu1 %vm465_vm1, %v345_v45  ;;  %v377_v45 = vld [vmem:[%s5154_s11 + $0x588] sm:$0xff] }
  0x4a   : > { %4739 = vmatprep.mubr.msk.f32.mxu1 %vm465_vm1, %v346_v46  ;;  %v378_v46 = vld [vmem:[%s5154_s11 + $0x590] sm:$0xff] }
  0x4b   : > { %4548 = vmatmul.mubr.msk.f32.gmra.mxu0 %vm465_vm1, %v219_v47  ;;  %v251_v47 = vld [vmem:[%s5154_s11 + $0x198] sm:$0xff] }
  0x4c   : > { %4550 = vmatprep.mubr.msk.f32.mxu0 %vm465_vm1, %v220_v48  ;;  %v252_v48 = vld [vmem:[%s5154_s11 + $0x1a0] sm:$0xff] }
  0x4d   : > { %4740 = vmatmul.mubr.msk.f32.gmra.mxu1 %vm465_vm1, %v347_v49  ;;  %v379_v49 = vld [vmem:[%s5154_s11 + $0x598] sm:$0xff] }
  0x4e   : > { %4742 = vmatprep.mubr.msk.f32.mxu1 %vm465_vm1, %v348_v50  ;;  %v380_v50 = vld [vmem:[%s5154_s11 + $0x5a0] sm:$0xff] }
  0x4f   : > { %4551 = vmatmul.mubr.msk.f32.gmra.mxu0 %vm465_vm1, %v221_v51  ;;  %v253_v51 = vld [vmem:[%s5154_s11 + $0x1a8] sm:$0xff] }
  0x50   : > { %4553 = vmatprep.mubr.msk.f32.mxu0 %vm465_vm1, %v222_v52  ;;  %v254_v52 = vld [vmem:[%s5154_s11 + $0x1b0] sm:$0xff] }
  0x51   : > { %4743 = vmatmul.mubr.msk.f32.gmra.mxu1 %vm465_vm1, %v349_v53  ;;  %v381_v53 = vld [vmem:[%s5154_s11 + $0x5a8] sm:$0xff] }
  0x52   : > { %4745 = vmatprep.mubr.msk.f32.mxu1 %vm465_vm1, %v350_v54  ;;  %v382_v54 = vld [vmem:[%s5154_s11 + $0x5b0] sm:$0xff] }
  0x53   : > { %4554 = vmatmul.mubr.msk.f32.gmra.mxu0 %vm465_vm1, %v223_v55  ;;  %v255_v55 = vld [vmem:[%s5154_s11 + $0x1b8] sm:$0xff] }
  0x54   : > { %4556 = vmatprep.mubr.msk.f32.mxu0 %vm465_vm1, %v224_v56  ;;  %v256_v56 = vld [vmem:[%s5154_s11 + $0x1c0] sm:$0xff] }
  0x55   : > { %4746 = vmatmul.mubr.msk.f32.gmra.mxu1 %vm465_vm1, %v351_v57  ;;  %v383_v57 = vld [vmem:[%s5154_s11 + $0x5b8] sm:$0xff] }
  0x56   : > { %4748 = vmatprep.mubr.msk.f32.mxu1 %vm465_vm1, %v352_v58  ;;  %v384_v58 = vld [vmem:[%s5154_s11 + $0x5c0] sm:$0xff] }
  0x57   : > { %4557 = vmatmul.mubr.msk.f32.gmra.mxu0 %vm465_vm1, %v225_v59  ;;  %v257_v59 = vld [vmem:[%s5154_s11 + $0x1c8] sm:$0xff] }
  0x58   : > { %4559 = vmatprep.mubr.msk.f32.mxu0 %vm465_vm1, %v226_v60  ;;  %v258_v60 = vld [vmem:[%s5154_s11 + $0x1d0] sm:$0xff] }
  0x59   : > { %4749 = vmatmul.mubr.msk.f32.gmra.mxu1 %vm465_vm1, %v353_v61  ;;  %v385_v61 = vld [vmem:[%s5154_s11 + $0x5c8] sm:$0xff] }
  0x5a   : > { %4751 = vmatprep.mubr.msk.f32.mxu1 %vm465_vm1, %v354_v62  ;;  %v386_v62 = vld [vmem:[%s5154_s11 + $0x5d0] sm:$0xff] }
  0x5b   : > { %4560 = vmatmul.mubr.msk.f32.gmra.mxu0 %vm465_vm1, %v227_v63  ;;  %v259_v63 = vld [vmem:[%s5154_s11 + $0x1d8] sm:$0xff] }
  0x5c   : > { %4562 = vmatprep.mubr.msk.f32.mxu0 %vm465_vm1, %v228_v0  ;;  %v260_v0 = vld [vmem:[%s5154_s11 + $0x1e0] sm:$0xff] }
  0x5d   : > { %4752 = vmatmul.mubr.msk.f32.gmra.mxu1 %vm465_vm1, %v355_v1  ;;  %v387_v1 = vld [vmem:[%s5154_s11 + $0x5d8] sm:$0xff] }
  0x5e   : > { %4754 = vmatprep.mubr.msk.f32.mxu1 %vm465_vm1, %v356_v2  ;;  %v388_v2 = vld [vmem:[%s5154_s11 + $0x5e0] sm:$0xff] }
  0x5f   : > { %4563 = vmatmul.mubr.msk.f32.gmra.mxu0 %vm465_vm1, %v229_v3  ;;  %v261_v3 = vld [vmem:[%s5154_s11 + $0x1e8] sm:$0xff] }
  0x60   : > { %4565 = vmatprep.mubr.msk.f32.mxu0 %vm465_vm1, %v230_v4  ;;  %v262_v4 = vld [vmem:[%s5154_s11 + $0x1f0] sm:$0xff] }
  0x61   : > { %4755 = vmatmul.mubr.msk.f32.gmra.mxu1 %vm465_vm1, %v357_v5  ;;  %v389_v5 = vld [vmem:[%s5154_s11 + $0x5e8] sm:$0xff] }
  0x62   : > { %4757 = vmatprep.mubr.msk.f32.mxu1 %vm465_vm1, %v358_v6  ;;  %v390_v6 = vld [vmem:[%s5154_s11 + $0x5f0] sm:$0xff] }
  0x63   : > { %4566 = vmatmul.mubr.msk.f32.gmra.mxu0 %vm465_vm1, %v231_v7  ;;  %v263_v7 = vld [vmem:[%s5154_s11 + $0x1f8] sm:$0xff] }
  0x64   : > { %4568 = vmatprep.mubr.msk.f32.mxu0 %vm465_vm1, %v232_v8  ;;  %v264_v8 = vld [vmem:[%s5154_s11 + $0x200] sm:$0xff] }
  0x65   : > { %4758 = vmatmul.mubr.msk.f32.gmra.mxu1 %vm465_vm1, %v359_v9  ;;  %v391_v9 = vld [vmem:[%s5154_s11 + $0x5f8] sm:$0xff] }
  0x66   : > { %4760 = vmatprep.mubr.msk.f32.mxu1 %vm465_vm1, %v360_v10  ;;  %v392_v10 = vld [vmem:[%s5154_s11 + $0x600] sm:$0xff] }
  0x67   : > { %4569 = vmatmul.mubr.msk.f32.gmra.mxu0 %vm465_vm1, %v233_v11  ;;  %v265_v11 = vld [vmem:[%s5154_s11 + $0x208] sm:$0xff] }
  0x68   : > { %4571 = vmatprep.mubr.msk.f32.mxu0 %vm465_vm1, %v234_v12  ;;  %v266_v12 = vld [vmem:[%s5154_s11 + $0x210] sm:$0xff] }
  0x69   : > { %4761 = vmatmul.mubr.msk.f32.gmra.mxu1 %vm465_vm1, %v361_v13  ;;  %v393_v13 = vld [vmem:[%s5154_s11 + $0x608] sm:$0xff] }
  0x6a   : > { %4763 = vmatprep.mubr.msk.f32.mxu1 %vm465_vm1, %v362_v14  ;;  %v394_v14 = vld [vmem:[%s5154_s11 + $0x610] sm:$0xff] }
  0x6b   : > { %4572 = vmatmul.mubr.msk.f32.gmra.mxu0 %vm465_vm1, %v235_v15  ;;  %v267_v15 = vld [vmem:[%s5154_s11 + $0x218] sm:$0xff] }
  0x6c   : > { %4574 = vmatprep.mubr.msk.f32.mxu0 %vm465_vm1, %v236_v16  ;;  %v268_v16 = vld [vmem:[%s5154_s11 + $0x220] sm:$0xff] }
  0x6d   : > { %4764 = vmatmul.mubr.msk.f32.gmra.mxu1 %vm465_vm1, %v363_v17  ;;  %v395_v17 = vld [vmem:[%s5154_s11 + $0x618] sm:$0xff] }
  0x6e   : > { %4766 = vmatprep.mubr.msk.f32.mxu1 %vm465_vm1, %v364_v18  ;;  %v396_v18 = vld [vmem:[%s5154_s11 + $0x620] sm:$0xff] }
  0x6f   : > { %4575 = vmatmul.mubr.msk.f32.gmra.mxu0 %vm465_vm1, %v237_v19  ;;  %v269_v19 = vld [vmem:[%s5154_s11 + $0x228] sm:$0xff] }
  0x70   : > { %4577 = vmatprep.mubr.msk.f32.mxu0 %vm465_vm1, %v238_v20  ;;  %v270_v20 = vld [vmem:[%s5154_s11 + $0x230] sm:$0xff] }
  0x71   : > { %4767 = vmatmul.mubr.msk.f32.gmra.mxu1 %vm465_vm1, %v365_v21  ;;  %v397_v21 = vld [vmem:[%s5154_s11 + $0x628] sm:$0xff] }
  0x72   : > { %4769 = vmatprep.mubr.msk.f32.mxu1 %vm465_vm1, %v366_v22  ;;  %v398_v22 = vld [vmem:[%s5154_s11 + $0x630] sm:$0xff] }
  0x73   : > { %4578 = vmatmul.mubr.msk.f32.gmra.mxu0 %vm465_vm1, %v239_v23  ;;  %v271_v23 = vld [vmem:[%s5154_s11 + $0x238] sm:$0xff] }
  0x74   : > { %4580 = vmatprep.mubr.msk.f32.mxu0 %vm465_vm1, %v240_v24  ;;  %v272_v24 = vld [vmem:[%s5154_s11 + $0x240] sm:$0xff] }
  0x75   : > { %4770 = vmatmul.mubr.msk.f32.gmra.mxu1 %vm465_vm1, %v367_v25  ;;  %v399_v25 = vld [vmem:[%s5154_s11 + $0x638] sm:$0xff] }
  0x76   : > { %4772 = vmatprep.mubr.msk.f32.mxu1 %vm465_vm1, %v368_v26  ;;  %v400_v26 = vld [vmem:[%s5154_s11 + $0x640] sm:$0xff] }
  0x77   : > { %4581 = vmatmul.mubr.msk.f32.gmra.mxu0 %vm465_vm1, %v241_v27  ;;  %v273_v27 = vld [vmem:[%s5154_s11 + $0x248] sm:$0xff] }
  0x78   : > { %4583 = vmatprep.mubr.msk.f32.mxu0 %vm465_vm1, %v242_v28  ;;  %v274_v28 = vld [vmem:[%s5154_s11 + $0x250] sm:$0xff] }
  0x79   : > { %4773 = vmatmul.mubr.msk.f32.gmra.mxu1 %vm465_vm1, %v369_v29  ;;  %v401_v29 = vld [vmem:[%s5154_s11 + $0x648] sm:$0xff] }
  0x7a   : > { %4775 = vmatprep.mubr.msk.f32.mxu1 %vm465_vm1, %v370_v30  ;;  %v402_v30 = vld [vmem:[%s5154_s11 + $0x650] sm:$0xff] }
  0x7b   : > { %4584 = vmatmul.mubr.msk.f32.gmra.mxu0 %vm465_vm1, %v243_v31  ;;  %v275_v31 = vld [vmem:[%s5154_s11 + $0x258] sm:$0xff] }
  0x7c   : > { %4586 = vmatprep.mubr.msk.f32.mxu0 %vm465_vm1, %v244_v32  ;;  %v276_v32 = vld [vmem:[%s5154_s11 + $0x260] sm:$0xff] }
  0x7d   : > { %4776 = vmatmul.mubr.msk.f32.gmra.mxu1 %vm465_vm1, %v371_v33  ;;  %v403_v33 = vld [vmem:[%s5154_s11 + $0x658] sm:$0xff] }
  0x7e   : > { %4778 = vmatprep.mubr.msk.f32.mxu1 %vm465_vm1, %v372_v34  ;;  %v404_v34 = vld [vmem:[%s5154_s11 + $0x660] sm:$0xff] }
  0x7f   : > { %4587 = vmatmul.mubr.msk.f32.gmra.mxu0 %vm465_vm1, %v245_v35  ;;  %v277_v35 = vld [vmem:[%s5154_s11 + $0x268] sm:$0xff] }
  0x80   : > { %4589 = vmatprep.mubr.msk.f32.mxu0 %vm465_vm1, %v246_v36  ;;  %v278_v36 = vld [vmem:[%s5154_s11 + $0x270] sm:$0xff] }
  0x81   : > { %4779 = vmatmul.mubr.msk.f32.gmra.mxu1 %vm465_vm1, %v373_v37  ;;  %v405_v37 = vld [vmem:[%s5154_s11 + $0x668] sm:$0xff] }
  0x82   : > { %4781 = vmatprep.mubr.msk.f32.mxu1 %vm465_vm1, %v374_v38  ;;  %v406_v38 = vld [vmem:[%s5154_s11 + $0x670] sm:$0xff] }
  0x83   : > { %4590 = vmatmul.mubr.msk.f32.gmra.mxu0 %vm465_vm1, %v247_v39  ;;  %v279_v39 = vld [vmem:[%s5154_s11 + $0x278] sm:$0xff] }
  0x84   : > { %4592 = vmatprep.mubr.msk.f32.mxu0 %vm465_vm1, %v248_v40  ;;  %v280_v40 = vld [vmem:[%s5154_s11 + $0x280] sm:$0xff] }
  0x85   : > { %4782 = vmatmul.mubr.msk.f32.gmra.mxu1 %vm465_vm1, %v375_v41  ;;  %v407_v41 = vld [vmem:[%s5154_s11 + $0x678] sm:$0xff] }
  0x86   : > { %4784 = vmatprep.mubr.msk.f32.mxu1 %vm465_vm1, %v376_v42  ;;  %v408_v42 = vld [vmem:[%s5154_s11 + $0x680] sm:$0xff] }
  0x87   : > { %4593 = vmatmul.mubr.msk.f32.gmra.mxu0 %vm465_vm1, %v249_v43  ;;  %v281_v43 = vld [vmem:[%s5154_s11 + $0x288] sm:$0xff] }
  0x88   : > { %4595 = vmatprep.mubr.msk.f32.mxu0 %vm465_vm1, %v250_v44  ;;  %v282_v44 = vld [vmem:[%s5154_s11 + $0x290] sm:$0xff] }
  0x89   : > { %4785 = vmatmul.mubr.msk.f32.gmra.mxu1 %vm465_vm1, %v377_v45  ;;  %v409_v45 = vld [vmem:[%s5154_s11 + $0x688] sm:$0xff] }
  0x8a   : > { %4787 = vmatprep.mubr.msk.f32.mxu1 %vm465_vm1, %v378_v46  ;;  %v410_v46 = vld [vmem:[%s5154_s11 + $0x690] sm:$0xff] }
  0x8b   : > { %4596 = vmatmul.mubr.msk.f32.gmra.mxu0 %vm465_vm1, %v251_v47  ;;  %v283_v47 = vld [vmem:[%s5154_s11 + $0x298] sm:$0xff] }
  0x8c   : > { %4598 = vmatprep.mubr.msk.f32.mxu0 %vm465_vm1, %v252_v48  ;;  %v284_v48 = vld [vmem:[%s5154_s11 + $0x2a0] sm:$0xff] }
  0x8d   : > { %4788 = vmatmul.mubr.msk.f32.gmra.mxu1 %vm465_vm1, %v379_v49  ;;  %v411_v49 = vld [vmem:[%s5154_s11 + $0x698] sm:$0xff] }
  0x8e   : > { %4790 = vmatprep.mubr.msk.f32.mxu1 %vm465_vm1, %v380_v50  ;;  %v412_v50 = vld [vmem:[%s5154_s11 + $0x6a0] sm:$0xff] }
  0x8f   : > { %4599 = vmatmul.mubr.msk.f32.gmra.mxu0 %vm465_vm1, %v253_v51  ;;  %v285_v51 = vld [vmem:[%s5154_s11 + $0x2a8] sm:$0xff] }
  0x90   : > { %4601 = vmatprep.mubr.msk.f32.mxu0 %vm465_vm1, %v254_v52  ;;  %v286_v52 = vld [vmem:[%s5154_s11 + $0x2b0] sm:$0xff] }
  0x91   : > { %4791 = vmatmul.mubr.msk.f32.gmra.mxu1 %vm465_vm1, %v381_v53  ;;  %v413_v53 = vld [vmem:[%s5154_s11 + $0x6a8] sm:$0xff] }
  0x92   : > { %4793 = vmatprep.mubr.msk.f32.mxu1 %vm465_vm1, %v382_v54  ;;  %v414_v54 = vld [vmem:[%s5154_s11 + $0x6b0] sm:$0xff] }
  0x93   : > { %4602 = vmatmul.mubr.msk.f32.gmra.mxu0 %vm465_vm1, %v255_v55  ;;  %v287_v55 = vld [vmem:[%s5154_s11 + $0x2b8] sm:$0xff] }
  0x94   : > { %4604 = vmatprep.mubr.msk.f32.mxu0 %vm465_vm1, %v256_v56  ;;  %v288_v56 = vld [vmem:[%s5154_s11 + $0x2c0] sm:$0xff] }
  0x95   : > { %4794 = vmatmul.mubr.msk.f32.gmra.mxu1 %vm465_vm1, %v383_v57  ;;  %v415_v57 = vld [vmem:[%s5154_s11 + $0x6b8] sm:$0xff] }
  0x96   : > { %4796 = vmatprep.mubr.msk.f32.mxu1 %vm465_vm1, %v384_v58  ;;  %v416_v58 = vld [vmem:[%s5154_s11 + $0x6c0] sm:$0xff] }
  0x97   : > { %4605 = vmatmul.mubr.msk.f32.gmra.mxu0 %vm465_vm1, %v257_v59  ;;  %v289_v59 = vld [vmem:[%s5154_s11 + $0x2c8] sm:$0xff] }
  0x98   : > { %4607 = vmatprep.mubr.msk.f32.mxu0 %vm465_vm1, %v258_v60  ;;  %v290_v60 = vld [vmem:[%s5154_s11 + $0x2d0] sm:$0xff] }
  0x99   : > { %4797 = vmatmul.mubr.msk.f32.gmra.mxu1 %vm465_vm1, %v385_v61  ;;  %v417_v61 = vld [vmem:[%s5154_s11 + $0x6c8] sm:$0xff] }
  0x9a   : > { %4799 = vmatprep.mubr.msk.f32.mxu1 %vm465_vm1, %v386_v62  ;;  %v418_v62 = vld [vmem:[%s5154_s11 + $0x6d0] sm:$0xff] }
  0x9b   : > { %4608 = vmatmul.mubr.msk.f32.gmra.mxu0 %vm465_vm1, %v259_v63  ;;  %v291_v63 = vld [vmem:[%s5154_s11 + $0x2d8] sm:$0xff] }
  0x9c   : > { %4610 = vmatprep.mubr.msk.f32.mxu0 %vm465_vm1, %v260_v0  ;;  %v292_v0 = vld [vmem:[%s5154_s11 + $0x2e0] sm:$0xff] }
  0x9d   : > { %4800 = vmatmul.mubr.msk.f32.gmra.mxu1 %vm465_vm1, %v387_v1  ;;  %v419_v1 = vld [vmem:[%s5154_s11 + $0x6d8] sm:$0xff] }
  0x9e   : > { %4802 = vmatprep.mubr.msk.f32.mxu1 %vm465_vm1, %v388_v2  ;;  %v420_v2 = vld [vmem:[%s5154_s11 + $0x6e0] sm:$0xff] }
  0x9f   : > { %4611 = vmatmul.mubr.msk.f32.gmra.mxu0 %vm465_vm1, %v261_v3  ;;  %v293_v3 = vld [vmem:[%s5154_s11 + $0x2e8] sm:$0xff] }
  0xa0   : > { %4613 = vmatprep.mubr.msk.f32.mxu0 %vm465_vm1, %v262_v4  ;;  %v294_v4 = vld [vmem:[%s5154_s11 + $0x2f0] sm:$0xff] }
  0xa1   : > { %4803 = vmatmul.mubr.msk.f32.gmra.mxu1 %vm465_vm1, %v389_v5  ;;  %v421_v5 = vld [vmem:[%s5154_s11 + $0x6e8] sm:$0xff] }
  0xa2   : > { %4805 = vmatprep.mubr.msk.f32.mxu1 %vm465_vm1, %v390_v6  ;;  %v422_v6 = vld [vmem:[%s5154_s11 + $0x6f0] sm:$0xff] }
  0xa3   : > { %4614 = vmatmul.mubr.msk.f32.gmra.mxu0 %vm465_vm1, %v263_v7  ;;  %v295_v7 = vld [vmem:[%s5154_s11 + $0x2f8] sm:$0xff] }
  0xa4   : > { %4616 = vmatprep.mubr.msk.f32.mxu0 %vm465_vm1, %v264_v8  ;;  %v296_v8 = vld [vmem:[%s5154_s11 + $0x300] sm:$0xff] }
  0xa5   : > { %4806 = vmatmul.mubr.msk.f32.gmra.mxu1 %vm465_vm1, %v391_v9  ;;  %v423_v9 = vld [vmem:[%s5154_s11 + $0x6f8] sm:$0xff] }
  0xa6   : > { %4808 = vmatprep.mubr.msk.f32.mxu1 %vm465_vm1, %v392_v10  ;;  %v424_v10 = vld [vmem:[%s5154_s11 + $0x700] sm:$0xff] }
  0xa7   : > { %4617 = vmatmul.mubr.msk.f32.gmra.mxu0 %vm465_vm1, %v265_v11  ;;  %v297_v11 = vld [vmem:[%s5154_s11 + $0x308] sm:$0xff] }
  0xa8   : > { %4619 = vmatprep.mubr.msk.f32.mxu0 %vm465_vm1, %v266_v12  ;;  %v298_v12 = vld [vmem:[%s5154_s11 + $0x310] sm:$0xff] }
  0xa9   : > { %4809 = vmatmul.mubr.msk.f32.gmra.mxu1 %vm465_vm1, %v393_v13  ;;  %v425_v13 = vld [vmem:[%s5154_s11 + $0x708] sm:$0xff] }
  0xaa   : > { %4811 = vmatprep.mubr.msk.f32.mxu1 %vm465_vm1, %v394_v14 }
  0xab   : > { %4620 = vmatmul.mubr.msk.f32.gmra.mxu0 %vm465_vm1, %v267_v15  ;;  %v426_v15 = vld [vmem:[%s5154_s11 + $0x710] sm:$0xff] }
  0xac   : > { %4622 = vmatprep.mubr.msk.f32.mxu0 %vm465_vm1, %v268_v16  ;;  %v299_v16 = vld [vmem:[%s5154_s11 + $0x318] sm:$0xff] }
  0xad   : > { %4812 = vmatmul.mubr.msk.f32.gmra.mxu1 %vm465_vm1, %v395_v17 }
  0xae   : > { %4814 = vmatprep.mubr.msk.f32.mxu1 %vm465_vm1, %v396_v18  ;;  %v300_v18 = vld [vmem:[%s5154_s11 + $0x320] sm:$0xff] }
  0xaf   : > { %4623 = vmatmul.mubr.msk.f32.gmra.mxu0 %vm465_vm1, %v269_v19 }
  0xb0   : > { %4625 = vmatprep.mubr.msk.f32.mxu0 %vm465_vm1, %v270_v20  ;;  %v427_v20 = vld [vmem:[%s5154_s11 + $0x718] sm:$0xff] }
  0xb1   : > { %4815 = vmatmul.mubr.msk.f32.gmra.mxu1 %vm465_vm1, %v397_v21 }
  0xb2   : > { %4817 = vmatprep.mubr.msk.f32.mxu1 %vm465_vm1, %v398_v22 }
  0xb3   : > { %4626 = vmatmul.mubr.msk.f32.gmra.mxu0 %vm465_vm1, %v271_v23  ;;  %v428_v23 = vld [vmem:[%s5154_s11 + $0x720] sm:$0xff] }
  0xb4   : > { %4628 = vmatprep.mubr.msk.f32.mxu0 %vm465_vm1, %v272_v24  ;;  %v301_v24 = vld [vmem:[%s5154_s11 + $0x328] sm:$0xff] }
  0xb5   : > { %4818 = vmatmul.mubr.msk.f32.gmra.mxu1 %vm465_vm1, %v399_v25 }
  0xb6   : > { %4820 = vmatprep.mubr.msk.f32.mxu1 %vm465_vm1, %v400_v26  ;;  %v302_v26 = vld [vmem:[%s5154_s11 + $0x330] sm:$0xff] }
  0xb7   : > { %4629 = vmatmul.mubr.msk.f32.gmra.mxu0 %vm465_vm1, %v273_v27 }
  0xb8   : > { %4631 = vmatprep.mubr.msk.f32.mxu0 %vm465_vm1, %v274_v28  ;;  %v429_v28 = vld [vmem:[%s5154_s11 + $0x728] sm:$0xff] }
  0xb9   : > { %4821 = vmatmul.mubr.msk.f32.gmra.mxu1 %vm465_vm1, %v401_v29 }
  0xba   : > { %4823 = vmatprep.mubr.msk.f32.mxu1 %vm465_vm1, %v402_v30 }
  0xbb   : > { %4632 = vmatmul.mubr.msk.f32.gmra.mxu0 %vm465_vm1, %v275_v31  ;;  %v430_v31 = vld [vmem:[%s5154_s11 + $0x730] sm:$0xff] }
  0xbc   : > { %4634 = vmatprep.mubr.msk.f32.mxu0 %vm465_vm1, %v276_v32  ;;  %v303_v32 = vld [vmem:[%s5154_s11 + $0x338] sm:$0xff] }
  0xbd   : > { %4824 = vmatmul.mubr.msk.f32.gmra.mxu1 %vm465_vm1, %v403_v33 }
  0xbe   : > { %4826 = vmatprep.mubr.msk.f32.mxu1 %vm465_vm1, %v404_v34  ;;  %v304_v34 = vld [vmem:[%s5154_s11 + $0x340] sm:$0xff] }
  0xbf   : > { %4635 = vmatmul.mubr.msk.f32.gmra.mxu0 %vm465_vm1, %v277_v35 }
  0xc0   : > { %4637 = vmatprep.mubr.msk.f32.mxu0 %vm465_vm1, %v278_v36  ;;  %v431_v36 = vld [vmem:[%s5154_s11 + $0x738] sm:$0xff] }
  0xc1   : > { %4827 = vmatmul.mubr.msk.f32.gmra.mxu1 %vm465_vm1, %v405_v37 }
  0xc2   : > { %4829 = vmatprep.mubr.msk.f32.mxu1 %vm465_vm1, %v406_v38 }
  0xc3   : > { %4638 = vmatmul.mubr.msk.f32.gmra.mxu0 %vm465_vm1, %v279_v39  ;;  %v432_v39 = vld [vmem:[%s5154_s11 + $0x740] sm:$0xff] }
  0xc4   : > { %4640 = vmatprep.mubr.msk.f32.mxu0 %vm465_vm1, %v280_v40  ;;  %v305_v40 = vld [vmem:[%s5154_s11 + $0x348] sm:$0xff] }
  0xc5   : > { %4830 = vmatmul.mubr.msk.f32.gmra.mxu1 %vm465_vm1, %v407_v41  ;;  %v306_v41 = vld [vmem:[%s5154_s11 + $0x350] sm:$0xff] }
  0xc6   : > { %4832 = vmatprep.mubr.msk.f32.mxu1 %vm465_vm1, %v408_v42 }
  0xc7   : > { %4641 = vmatmul.mubr.msk.f32.gmra.mxu0 %vm465_vm1, %v281_v43 }
  0xc8   : > { %4643 = vmatprep.mubr.msk.f32.mxu0 %vm465_vm1, %v282_v44 }
  0xc9   : > { %4833 = vmatmul.mubr.msk.f32.gmra.mxu1 %vm465_vm1, %v409_v45 }
  0xca   : > { %4835 = vmatprep.mubr.msk.f32.mxu1 %vm465_vm1, %v410_v46 }
  0xcb   : > { %4644 = vmatmul.mubr.msk.f32.gmra.mxu0 %vm465_vm1, %v283_v47 }
  0xcc   : > { %4646 = vmatprep.mubr.msk.f32.mxu0 %vm465_vm1, %v284_v48 }
  0xcd   : > { %4836 = vmatmul.mubr.msk.f32.gmra.mxu1 %vm465_vm1, %v411_v49  ;;  %v433_v49 = vld [vmem:[%s5154_s11 + $0x748] sm:$0xff] }
  0xce   : > { %4838 = vmatprep.mubr.msk.f32.mxu1 %vm465_vm1, %v412_v50 }
  0xcf   : > { %4647 = vmatmul.mubr.msk.f32.gmra.mxu0 %vm465_vm1, %v285_v51 }
  0xd0   : > { %4649 = vmatprep.mubr.msk.f32.mxu0 %vm465_vm1, %v286_v52 }
  0xd1   : > { %4839 = vmatmul.mubr.msk.f32.gmra.mxu1 %vm465_vm1, %v413_v53  ;;  %v434_v53 = vld [vmem:[%s5154_s11 + $0x750] sm:$0xff] }
  0xd2   : > { %4841 = vmatprep.mubr.msk.f32.mxu1 %vm465_vm1, %v414_v54  ;;  %v307_v54 = vld [vmem:[%s5154_s11 + $0x358] sm:$0xff] }
  0xd3   : > { %4650 = vmatmul.mubr.msk.f32.gmra.mxu0 %vm465_vm1, %v287_v55  ;;  %v5601_v55 = vld [vmem:[%s5889_s2] ss:$0 sm:$0xff] }
  0xd4   : > { %4652 = vmatprep.mubr.msk.f32.mxu0 %vm465_vm1, %v288_v56 }
  0xd5   : > { %4842 = vmatmul.mubr.msk.f32.gmra.mxu1 %vm465_vm1, %v415_v57  ;;  %v308_v57 = vld [vmem:[%s5154_s11 + $0x360] sm:$0xff] }
  0xd6   : > { %4844 = vmatprep.mubr.msk.f32.mxu1 %vm465_vm1, %v416_v58 }
  0xd7   : > { %4653 = vmatmul.mubr.msk.f32.gmra.mxu0 %vm465_vm1, %v289_v59 }
  0xd8   : > { %4655 = vmatprep.mubr.msk.f32.mxu0 %vm465_vm1, %v290_v60  ;;  %v435_v60 = vld [vmem:[%s5154_s11 + $0x758] sm:$0xff] }
  0xd9   : > { %4845 = vmatmul.mubr.msk.f32.gmra.mxu1 %vm465_vm1, %v417_v61 }
  0xda   : > { %4847 = vmatprep.mubr.msk.f32.mxu1 %vm465_vm1, %v418_v62 }
  0xdb   : > { %4656 = vmatmul.mubr.msk.f32.gmra.mxu0 %vm465_vm1, %v291_v63 }
  0xdc   : > { %4658 = vmatprep.mubr.msk.f32.mxu0 %vm465_vm1, %v292_v0  ;;  %v436_v0 = vld [vmem:[%s5154_s11 + $0x760] sm:$0xff] }
  0xdd   : > { %4848 = vmatmul.mubr.msk.f32.gmra.mxu1 %vm465_vm1, %v419_v1  ;;  %v309_v1 = vld [vmem:[%s5154_s11 + $0x368] sm:$0xff] }
  0xde   : > { %4850 = vmatprep.mubr.msk.f32.mxu1 %vm465_vm1, %v420_v2 }
  0xdf   : > { %4659 = vmatmul.mubr.msk.f32.gmra.mxu0 %vm465_vm1, %v293_v3 }
  0xe0   : > { %4661 = vmatprep.mubr.msk.f32.mxu0 %vm465_vm1, %v294_v4  ;;  %v310_v4 = vld [vmem:[%s5154_s11 + $0x370] sm:$0xff] }
  0xe1   : > { %4851 = vmatmul.mubr.msk.f32.gmra.mxu1 %vm465_vm1, %v421_v5 }
  0xe2   : > { %4853 = vmatprep.mubr.msk.f32.mxu1 %vm465_vm1, %v422_v6 }
  0xe3   : > { %4662 = vmatmul.mubr.msk.f32.gmra.mxu0 %vm465_vm1, %v295_v7 }
  0xe4   : > { %4664 = vmatprep.mubr.msk.f32.mxu0 %vm465_vm1, %v296_v8 }
  0xe5   : > { %4854 = vmatmul.mubr.msk.f32.gmra.mxu1 %vm465_vm1, %v423_v9 }
  0xe6   : > { %4856 = vmatprep.mubr.msk.f32.mxu1 %vm465_vm1, %v424_v10 }
  0xe7   : > { %v4522_v14 = vpop.f32.mrf.mxu0  ;;  %4665 = vmatmul.mubr.msk.f32.gmra.mxu0 %vm465_vm1, %v297_v11  ;;  %v437_v11 = vld [vmem:[%s5154_s11 + $0x768] sm:$0xff] }
  0xe8   : > { %2584 = vst [vmem:[#allocation2 + $0x8] sm:$0xff] %v4522_v14  ;;  %4667 = vmatprep.mubr.msk.f32.mxu0 %vm465_vm1, %v298_v12 }
  0xe9   : > { %v1304_v17 = vpop.f32.mrf.mxu0  ;;  %v4714_v19 = vpop.f32.mrf.mxu1  ;;  %4857 = vmatmul.mubr.msk.f32.gmra.mxu1 %vm465_vm1, %v425_v13 }
  0xea   : > { %2583 = vst [vmem:[#allocation2] sm:$0xff] %v1304_v17  ;;  %2712 = vst [vmem:[#allocation2 + $0x408] sm:$0xff] %v4714_v19  ;;  %4859 = vmatprep.mubr.msk.f32.mxu1 %vm465_vm1, %v426_v15  ;;  %v438_v15 = vld [vmem:[%s5154_s11 + $0x770] sm:$0xff] }
  0xeb   : > { %v4525_v21 = vpop.f32.mrf.mxu0  ;;  %4668 = vmatmul.mubr.msk.f32.gmra.mxu0 %vm465_vm1, %v299_v16  ;;  %v1944_v22 = vpop.f32.mrf.mxu1  ;;  %v311_v16 = vld [vmem:[%s5154_s11 + $0x378] sm:$0xff] }
  0xec   : > { %2586 = vst [vmem:[#allocation2 + $0x18] sm:$0xff] %v4525_v21  ;;  %4670 = vmatprep.mubr.msk.f32.mxu0 %vm465_vm1, %v300_v18  ;;  %2711 = vst [vmem:[#allocation2 + $0x400] sm:$0xff] %v1944_v22  ;;  %v312_v18 = vld [vmem:[%s5154_s11 + $0x380] sm:$0xff]  ;;  %v439_v21 = vld [vmem:[%s5154_s11 + $0x778] sm:$0xff] }
  0xed   : > { %v1314_v25 = vpop.f32.mrf.mxu0  ;;  %v4717_v27 = vpop.f32.mrf.mxu1  ;;  %4860 = vmatmul.mubr.msk.f32.gmra.mxu1 %vm465_vm1, %v427_v20 }
  0xee   : > { %2585 = vst [vmem:[#allocation2 + $0x10] sm:$0xff] %v1314_v25  ;;  %2714 = vst [vmem:[#allocation2 + $0x418] sm:$0xff] %v4717_v27  ;;  %4862 = vmatprep.mubr.msk.f32.mxu1 %vm465_vm1, %v428_v23  ;;  %v440_v25 = vld [vmem:[%s5154_s11 + $0x780] sm:$0xff] }
  0xef   : > { %v4528_v29 = vpop.f32.mrf.mxu0  ;;  %4671 = vmatmul.mubr.msk.f32.gmra.mxu0 %vm465_vm1, %v301_v24  ;;  %v1954_v30 = vpop.f32.mrf.mxu1 }
  0xf0   : > { %2588 = vst [vmem:[#allocation2 + $0x28] sm:$0xff] %v4528_v29  ;;  %4673 = vmatprep.mubr.msk.f32.mxu0 %vm465_vm1, %v302_v26  ;;  %2713 = vst [vmem:[#allocation2 + $0x410] sm:$0xff] %v1954_v30  ;;  %v313_v26 = vld [vmem:[%s5154_s11 + $0x388] sm:$0xff]  ;;  %v314_v29 = vld [vmem:[%s5154_s11 + $0x390] sm:$0xff] }
  0xf1   : > { %v1324_v33 = vpop.f32.mrf.mxu0  ;;  %v4720_v35 = vpop.f32.mrf.mxu1  ;;  %4863 = vmatmul.mubr.msk.f32.gmra.mxu1 %vm465_vm1, %v429_v28 }
  0xf2   : > { %2587 = vst [vmem:[#allocation2 + $0x20] sm:$0xff] %v1324_v33  ;;  %2716 = vst [vmem:[#allocation2 + $0x428] sm:$0xff] %v4720_v35  ;;  %4865 = vmatprep.mubr.msk.f32.mxu1 %vm465_vm1, %v430_v31 }
  0xf3   : > { %v4531_v37 = vpop.f32.mrf.mxu0  ;;  %4674 = vmatmul.mubr.msk.f32.gmra.mxu0 %vm465_vm1, %v303_v32  ;;  %v1964_v38 = vpop.f32.mrf.mxu1 }
  0xf4   : > { %2590 = vst [vmem:[#allocation2 + $0x38] sm:$0xff] %v4531_v37  ;;  %4676 = vmatprep.mubr.msk.f32.mxu0 %vm465_vm1, %v304_v34  ;;  %2715 = vst [vmem:[#allocation2 + $0x420] sm:$0xff] %v1964_v38 }
  0xf5   : > { %v1334_v42 = vpop.f32.mrf.mxu0  ;;  %v2839_v43 = vld [vmem:[#allocation2] ss:$4 sm:$0xff]  ;;  %v2967_v44 = vld [vmem:[#allocation2 + $0x1] ss:$4 sm:$0xff]  ;;  %v3095_v45 = vld [vmem:[#allocation2 + $0x2] ss:$4 sm:$0xff]  ;;  %v4723_v46 = vpop.f32.mrf.mxu1  ;;  %4866 = vmatmul.mubr.msk.f32.gmra.mxu1 %vm465_vm1, %v431_v36 }
  0xf6   : > { %2589 = vst [vmem:[#allocation2 + $0x30] sm:$0xff] %v1334_v42  ;;  %v3223_v47 = vld [vmem:[#allocation2 + $0x3] ss:$4 sm:$0xff]  ;;  %v3350_v48 = vmax.f32 %v2839_v43, %v2967_v44  ;;  %2718 = vst [vmem:[#allocation2 + $0x438] sm:$0xff] %v4723_v46  ;;  %4868 = vmatprep.mubr.msk.f32.mxu1 %vm465_vm1, %v432_v39 }
  0xf7   : > { %v4534_v50 = vpop.f32.mrf.mxu0  ;;  %4677 = vmatmul.mubr.msk.f32.gmra.mxu0 %vm465_vm1, %v305_v40  ;;  %v3414_v51 = vmax.f32 %v3095_v45, %v3223_v47  ;;  %v1974_v52 = vpop.f32.mrf.mxu1  ;;  %v441_v36 = vld [vmem:[%s5154_s11 + $0x788] sm:$0xff]  ;;  %v442_v40 = vld [vmem:[%s5154_s11 + $0x790] sm:$0xff]  ;;  %v316_v43 = vld [vmem:[%s5154_s11 + $0x3a0] sm:$0xff] }
  0xf8   : > { %2592 = vst [vmem:[#allocation2 + $0x48] sm:$0xff] %v4534_v50  ;;  %4679 = vmatprep.mubr.msk.f32.mxu0 %vm465_vm1, %v306_v41  ;;  %2717 = vst [vmem:[#allocation2 + $0x430] sm:$0xff] %v1974_v52  ;;  %v315_v41 = vld [vmem:[%s5154_s11 + $0x398] sm:$0xff]  ;;  %v444_v50 = vld [vmem:[%s5154_s11 + $0x7a0] sm:$0xff] }
  0xf9   : > { %v1344_v56 = vpop.f32.mrf.mxu0  ;;  %v3478_v58 = vmax.f32 %v3350_v48, %v3414_v51  ;;  %v4726_v59 = vpop.f32.mrf.mxu1  ;;  %4869 = vmatmul.mubr.msk.f32.gmra.mxu1 %vm465_vm1, %v433_v49  ;;  %v443_v46 = vld [vmem:[%s5154_s11 + $0x798] sm:$0xff]  ;;  %v317_v51 = vld [vmem:[%s5154_s11 + $0x3a8] sm:$0xff] }
  0xfa   : > { %2591 = vst [vmem:[#allocation2 + $0x40] sm:$0xff] %v1344_v56  ;;  %2720 = vst [vmem:[#allocation2 + $0x448] sm:$0xff] %v4726_v59  ;;  %4871 = vmatprep.mubr.msk.f32.mxu1 %vm465_vm1, %v434_v53 }
  0xfb   : > { %v4537_v61 = vpop.f32.mrf.mxu0  ;;  %4680 = vmatmul.mubr.msk.f32.gmra.mxu0 %vm465_vm1, %v307_v54  ;;  %v3549_v62 = vadd.f32 %v5601_v55, %v3478_v58  ;;  %v1984_v63 = vpop.f32.mrf.mxu1  ;;  %v318_v54 = vld [vmem:[%s5154_s11 + $0x3b0] sm:$0xff] }
  0xfc   : > { %2594 = vst [vmem:[#allocation2 + $0x58] sm:$0xff] %v4537_v61  ;;  %4682 = vmatprep.mubr.msk.f32.mxu0 %vm465_vm1, %v308_v57  ;;  %2719 = vst [vmem:[#allocation2 + $0x440] sm:$0xff] %v1984_v63 }
  0xfd   : > { %v1354_v2 = vpop.f32.mrf.mxu0  ;;  %v3613_v3 = vmax.f32 %v3549_v62, 0.0  ;;  %v2841_v5 = vld [vmem:[#allocation2 + $0x20] ss:$4 sm:$0xff]  ;;  %v2969_v6 = vld [vmem:[#allocation2 + $0x21] ss:$4 sm:$0xff]  ;;  %v4729_v7 = vpop.f32.mrf.mxu1  ;;  %4872 = vmatmul.mubr.msk.f32.gmra.mxu1 %vm465_vm1, %v435_v60 }
  0xfe   : > { %2593 = vst [vmem:[#allocation2 + $0x50] sm:$0xff] %v1354_v2  ;;  %v3097_v8 = vld [vmem:[#allocation2 + $0x22] ss:$4 sm:$0xff]  ;;  %v3225_v9 = vld [vmem:[#allocation2 + $0x23] ss:$4 sm:$0xff]  ;;  %v3351_v10 = vmax.f32 %v2841_v5, %v2969_v6  ;;  %2722 = vst [vmem:[#allocation2 + $0x458] sm:$0xff] %v4729_v7  ;;  %4874 = vmatprep.mubr.msk.f32.mxu1 %vm465_vm1, %v436_v0 }
  0xff   : > { %3677 = vxpose.xlu0.b32.start [1/16] %v3613_v3, 128  ;;  %v4540_v12 = vpop.f32.mrf.mxu0  ;;  %4683 = vmatmul.mubr.msk.f32.gmra.mxu0 %vm465_vm1, %v309_v1  ;;  %v3415_v13 = vmax.f32 %v3097_v8, %v3225_v9  ;;  %v1994_v14 = vpop.f32.mrf.mxu1  ;;  %v445_v62 = vld [vmem:[%s5154_s11 + $0x7a8] sm:$0xff]  ;;  %v446_v2 = vld [vmem:[%s5154_s11 + $0x7b0] sm:$0xff]  ;;  %v319_v3 = vld [vmem:[%s5154_s11 + $0x3b8] sm:$0xff] }
 0x100   : > { %2596 = vst [vmem:[#allocation2 + $0x68] sm:$0xff] %v4540_v12  ;;  %4685 = vmatprep.mubr.msk.f32.mxu0 %vm465_vm1, %v310_v4  ;;  %2721 = vst [vmem:[#allocation2 + $0x450] sm:$0xff] %v1994_v14  ;;  %v320_v5 = vld [vmem:[%s5154_s11 + $0x3c0] sm:$0xff]  ;;  %v447_v8 = vld [vmem:[%s5154_s11 + $0x7b8] sm:$0xff] }
 0x101   : > { %v1364_v17 = vpop.f32.mrf.mxu0  ;;  %v3479_v19 = vmax.f32 %v3351_v10, %v3415_v13  ;;  %v4732_v20 = vpop.f32.mrf.mxu1  ;;  %4875 = vmatmul.mubr.msk.f32.gmra.mxu1 %vm465_vm1, %v437_v11  ;;  %v448_v12 = vld [vmem:[%s5154_s11 + $0x7c0] sm:$0xff]  ;;  %v321_v13 = vld [vmem:[%s5154_s11 + $0x3c8] sm:$0xff] }
 0x102   : > { %2595 = vst [vmem:[#allocation2 + $0x60] sm:$0xff] %v1364_v17  ;;  %2724 = vst [vmem:[#allocation2 + $0x468] sm:$0xff] %v4732_v20  ;;  %4877 = vmatprep.mubr.msk.f32.mxu1 %vm465_vm1, %v438_v15 }
 0x103   : > { %v4543_v22 = vpop.f32.mrf.mxu0  ;;  %4686 = vmatmul.mubr.msk.f32.gmra.mxu0 %vm465_vm1, %v311_v16  ;;  %v3550_v23 = vadd.f32 %v5601_v55, %v3479_v19  ;;  %v2004_v24 = vpop.f32.mrf.mxu1  ;;  %v322_v16 = vld [vmem:[%s5154_s11 + $0x3d0] sm:$0xff] }
 0x104   : > { %2598 = vst [vmem:[#allocation2 + $0x78] sm:$0xff] %v4543_v22  ;;  %4688 = vmatprep.mubr.msk.f32.mxu0 %vm465_vm1, %v312_v18  ;;  %2723 = vst [vmem:[#allocation2 + $0x460] sm:$0xff] %v2004_v24 }
 0x105   : > { %v1374_v27 = vpop.f32.mrf.mxu0  ;;  %v3614_v28 = vmax.f32 %v3550_v23, 0.0  ;;  %v2843_v30 = vld [vmem:[#allocation2 + $0x40] ss:$4 sm:$0xff]  ;;  %v2971_v31 = vld [vmem:[#allocation2 + $0x41] ss:$4 sm:$0xff]  ;;  %v4735_v32 = vpop.f32.mrf.mxu1  ;;  %4878 = vmatmul.mubr.msk.f32.gmra.mxu1 %vm465_vm1, %v439_v21 }
 0x106   : > { %2597 = vst [vmem:[#allocation2 + $0x70] sm:$0xff] %v1374_v27  ;;  %v3099_v33 = vld [vmem:[#allocation2 + $0x42] ss:$4 sm:$0xff]  ;;  %v3227_v34 = vld [vmem:[#allocation2 + $0x43] ss:$4 sm:$0xff]  ;;  %v3352_v35 = vmax.f32 %v2843_v30, %v2971_v31  ;;  %2726 = vst [vmem:[#allocation2 + $0x478] sm:$0xff] %v4735_v32  ;;  %4880 = vmatprep.mubr.msk.f32.mxu1 %vm465_vm1, %v440_v25 }
 0x107   : > { %3678 = vxpose.xlu0.b32.cont [2/16] %v3614_v28, 128  ;;  %v4546_v37 = vpop.f32.mrf.mxu0  ;;  %4689 = vmatmul.mubr.msk.f32.gmra.mxu0 %vm465_vm1, %v313_v26  ;;  %v3416_v38 = vmax.f32 %v3099_v33, %v3227_v34  ;;  %v2014_v39 = vpop.f32.mrf.mxu1  ;;  %v449_v23 = vld [vmem:[%s5154_s11 + $0x7c8] sm:$0xff]  ;;  %v450_v27 = vld [vmem:[%s5154_s11 + $0x7d0] sm:$0xff]  ;;  %v323_v28 = vld [vmem:[%s5154_s11 + $0x3d8] sm:$0xff] }
 0x108   : > { %2600 = vst [vmem:[#allocation2 + $0x88] sm:$0xff] %v4546_v37  ;;  %4691 = vmatprep.mubr.msk.f32.mxu0 %vm465_vm1, %v314_v29  ;;  %2725 = vst [vmem:[#allocation2 + $0x470] sm:$0xff] %v2014_v39  ;;  %v324_v30 = vld [vmem:[%s5154_s11 + $0x3e0] sm:$0xff]  ;;  %v451_v33 = vld [vmem:[%s5154_s11 + $0x7d8] sm:$0xff] }
 0x109   : > { %v1384_v42 = vpop.f32.mrf.mxu0  ;;  %v3480_v44 = vmax.f32 %v3352_v35, %v3416_v38  ;;  %v4738_v45 = vpop.f32.mrf.mxu1  ;;  %4881 = vmatmul.mubr.msk.f32.gmra.mxu1 %vm465_vm1, %v441_v36  ;;  %v452_v37 = vld [vmem:[%s5154_s11 + $0x7e0] sm:$0xff]  ;;  %v325_v38 = vld [vmem:[%s5154_s11 + $0x3e8] sm:$0xff] }
 0x10a   : > { %2599 = vst [vmem:[#allocation2 + $0x80] sm:$0xff] %v1384_v42  ;;  %2728 = vst [vmem:[#allocation2 + $0x488] sm:$0xff] %v4738_v45  ;;  %4883 = vmatprep.mubr.msk.f32.mxu1 %vm465_vm1, %v442_v40 }
 0x10b   : > { %v4549_v47 = vpop.f32.mrf.mxu0  ;;  %4692 = vmatmul.mubr.msk.f32.gmra.mxu0 %vm465_vm1, %v315_v41  ;;  %v3551_v48 = vadd.f32 %v5601_v55, %v3480_v44  ;;  %v2024_v49 = vpop.f32.mrf.mxu1  ;;  %v326_v41 = vld [vmem:[%s5154_s11 + $0x3f0] sm:$0xff] }
 0x10c   : > { %2602 = vst [vmem:[#allocation2 + $0x98] sm:$0xff] %v4549_v47  ;;  %4694 = vmatprep.mubr.msk.f32.mxu0 %vm465_vm1, %v316_v43  ;;  %2727 = vst [vmem:[#allocation2 + $0x480] sm:$0xff] %v2024_v49 }
 0x10d   : > { %v1394_v52 = vpop.f32.mrf.mxu0  ;;  %v3615_v53 = vmax.f32 %v3551_v48, 0.0  ;;  %v2845_v56 = vld [vmem:[#allocation2 + $0x60] ss:$4 sm:$0xff]  ;;  %v2973_v57 = vld [vmem:[#allocation2 + $0x61] ss:$4 sm:$0xff]  ;;  %v4741_v58 = vpop.f32.mrf.mxu1  ;;  %4884 = vmatmul.mubr.msk.f32.gmra.mxu1 %vm465_vm1, %v443_v46 }
 0x10e   : > { %2601 = vst [vmem:[#allocation2 + $0x90] sm:$0xff] %v1394_v52  ;;  %v3101_v59 = vld [vmem:[#allocation2 + $0x62] ss:$4 sm:$0xff]  ;;  %v3229_v60 = vld [vmem:[#allocation2 + $0x63] ss:$4 sm:$0xff]  ;;  %v3353_v61 = vmax.f32 %v2845_v56, %v2973_v57  ;;  %2730 = vst [vmem:[#allocation2 + $0x498] sm:$0xff] %v4741_v58  ;;  %4886 = vmatprep.mubr.msk.f32.mxu1 %vm465_vm1, %v444_v50 }
 0x10f   : > { %3679 = vxpose.xlu0.b32.cont [3/16] %v3615_v53, 128  ;;  %v4552_v63 = vpop.f32.mrf.mxu0  ;;  %4695 = vmatmul.mubr.msk.f32.gmra.mxu0 %vm465_vm1, %v317_v51  ;;  %v3417_v0 = vmax.f32 %v3101_v59, %v3229_v60  ;;  %v2034_v1 = vpop.f32.mrf.mxu1  ;;  %v453_v48 = vld [vmem:[%s5154_s11 + $0x7e8] sm:$0xff]  ;;  %v454_v52 = vld [vmem:[%s5154_s11 + $0x7f0] sm:$0xff]  ;;  %v327_v53 = vld [vmem:[%s5154_s11 + $0x3f8] sm:$0xff] }
 0x110   : > { %2604 = vst [vmem:[#allocation2 + $0xa8] sm:$0xff] %v4552_v63  ;;  %4697 = vmatprep.mubr.msk.f32.mxu0 %vm465_vm1, %v318_v54  ;;  %2729 = vst [vmem:[#allocation2 + $0x490] sm:$0xff] %v2034_v1  ;;  %v455_v58 = vld [vmem:[%s5154_s11 + $0x7f8] sm:$0xff]  ;;  %s5736_s11 = scalar_lea.vmem [#allocation3], %s3969_s10 }
 0x111   : > { %v1404_v4 = vpop.f32.mrf.mxu0  ;;  %v3481_v6 = vmax.f32 %v3353_v61, %v3417_v0  ;;  %v4744_v7 = vpop.f32.mrf.mxu1  ;;  %4887 = vmatmul.mubr.msk.f32.gmra.mxu1 %vm465_vm1, %v445_v62  ;;  %s3885_s23 = sshll.u32 %s5736_s11, 4  ;;  %s5837_s23 = int_to_ptr.vmem [resolvable:$true] %s3885_s23 }
 0x112   : > { %2603 = vst [vmem:[#allocation2 + $0xa0] sm:$0xff] %v1404_v4  ;;  %2732 = vst [vmem:[#allocation2 + $0x4a8] sm:$0xff] %v4744_v7  ;;  %4889 = vmatprep.mubr.msk.f32.mxu1 %vm465_vm1, %v446_v2  ;;  %s4981_s30 = scalar_lea.vmem %s5837_s23, 8192  ;;  %p4988_p1 = scmp.lt.s32.totalorder %s5837_s23, %s4986_s4 }
 0x113   : > { %v4555_v9 = vpop.f32.mrf.mxu0  ;;  %4698 = vmatmul.mubr.msk.f32.gmra.mxu0 %vm465_vm1, %v319_v3  ;;  %v3552_v10 = vadd.f32 %v5601_v55, %v3481_v6  ;;  %v2044_v11 = vpop.f32.mrf.mxu1  ;;  %p4982_p12 = scmp.ne.s32.totalorder %s5837_s23, %s4981_s30  ;;  %p4989_p2 = scmp.lt.s32.totalorder %s4987_s5, %s4981_s30 }
 0x114   : > { %2606 = vst [vmem:[#allocation2 + $0xb8] sm:$0xff] %v4555_v9  ;;  %4700 = vmatprep.mubr.msk.f32.mxu0 %vm465_vm1, %v320_v5  ;;  %2731 = vst [vmem:[#allocation2 + $0x4a0] sm:$0xff] %v2044_v11 }
 0x115   : > { %v1414_v14 = vpop.f32.mrf.mxu0  ;;  %v3616_v15 = vmax.f32 %v3552_v10, 0.0  ;;  %v2847_v17 = vld [vmem:[#allocation2 + $0x80] ss:$4 sm:$0xff]  ;;  %v2975_v18 = vld [vmem:[#allocation2 + $0x81] ss:$4 sm:$0xff]  ;;  %v4747_v19 = vpop.f32.mrf.mxu1  ;;  %4890 = vmatmul.mubr.msk.f32.gmra.mxu1 %vm465_vm1, %v447_v8  ;;  %p4983_p13 = pnand %p4982_p12, %p5122_p4  ;;  %p4990_p3 = por %p4989_p2, %p4988_p1 }
 0x116   : > { %2605 = vst [vmem:[#allocation2 + $0xb0] sm:$0xff] %v1414_v14  ;;  %v3103_v20 = vld [vmem:[#allocation2 + $0x82] ss:$4 sm:$0xff]  ;;  %v3231_v21 = vld [vmem:[#allocation2 + $0x83] ss:$4 sm:$0xff]  ;;  %v3354_v22 = vmax.f32 %v2847_v17, %v2975_v18  ;;  %2734 = vst [vmem:[#allocation2 + $0x4b8] sm:$0xff] %v4747_v19  ;;  %4892 = vmatprep.mubr.msk.f32.mxu1 %vm465_vm1, %v448_v12 }
 0x117   : > { %3680 = vxpose.xlu0.b32.cont [4/16] %v3616_v15, 128  ;;  %v4558_v24 = vpop.f32.mrf.mxu0  ;;  %4701 = vmatmul.mubr.msk.f32.gmra.mxu0 %vm465_vm1, %v321_v13  ;;  %v3418_v25 = vmax.f32 %v3103_v20, %v3231_v21  ;;  %v2054_v26 = vpop.f32.mrf.mxu1  ;;  %p4984_p0 = pneg %p4983_p13 }
 0x118   : > { %2608 = vst [vmem:[#allocation2 + $0xc8] sm:$0xff] %v4558_v24  ;;  %4703 = vmatprep.mubr.msk.f32.mxu0 %vm465_vm1, %v322_v16  ;;  %2733 = vst [vmem:[#allocation2 + $0x4b0] sm:$0xff] %v2054_v26 }
 0x119   : > { %v1424_v29 = vpop.f32.mrf.mxu0  ;;  %v3482_v31 = vmax.f32 %v3354_v22, %v3418_v25  ;;  %v4750_v32 = vpop.f32.mrf.mxu1  ;;  %4893 = vmatmul.mubr.msk.f32.gmra.mxu1 %vm465_vm1, %v449_v23  ;;  %p4991_p5 = pnand %p4990_p3, %p4984_p0 }
 0x11a   : > { %2607 = vst [vmem:[#allocation2 + $0xc0] sm:$0xff] %v1424_v29  ;;  %2736 = vst [vmem:[#allocation2 + $0x4c8] sm:$0xff] %v4750_v32  ;;  %4895 = vmatprep.mubr.msk.f32.mxu1 %vm465_vm1, %v450_v27 }
 0x11b   : > { %v4561_v34 = vpop.f32.mrf.mxu0  ;;  %4704 = vmatmul.mubr.msk.f32.gmra.mxu0 %vm465_vm1, %v323_v28  ;;  %v3553_v35 = vadd.f32 %v5601_v55, %v3482_v31  ;;  %v2064_v36 = vpop.f32.mrf.mxu1 }
 0x11c   : > { %2610 = vst [vmem:[#allocation2 + $0xd8] sm:$0xff] %v4561_v34  ;;  %4706 = vmatprep.mubr.msk.f32.mxu0 %vm465_vm1, %v324_v30  ;;  %2735 = vst [vmem:[#allocation2 + $0x4c0] sm:$0xff] %v2064_v36 }
 0x11d   : > { %v1434_v39 = vpop.f32.mrf.mxu0  ;;  %v3617_v40 = vmax.f32 %v3553_v35, 0.0  ;;  %v2849_v42 = vld [vmem:[#allocation2 + $0xa0] ss:$4 sm:$0xff]  ;;  %v2977_v43 = vld [vmem:[#allocation2 + $0xa1] ss:$4 sm:$0xff]  ;;  %v4753_v44 = vpop.f32.mrf.mxu1  ;;  %4896 = vmatmul.mubr.msk.f32.gmra.mxu1 %vm465_vm1, %v451_v33 }
 0x11e   : > { %2609 = vst [vmem:[#allocation2 + $0xd0] sm:$0xff] %v1434_v39  ;;  %v3105_v45 = vld [vmem:[#allocation2 + $0xa2] ss:$4 sm:$0xff]  ;;  %v3233_v46 = vld [vmem:[#allocation2 + $0xa3] ss:$4 sm:$0xff]  ;;  %v3355_v47 = vmax.f32 %v2849_v42, %v2977_v43  ;;  %2738 = vst [vmem:[#allocation2 + $0x4d8] sm:$0xff] %v4753_v44  ;;  %4898 = vmatprep.mubr.msk.f32.mxu1 %vm465_vm1, %v452_v37 }
 0x11f   : > { %3681 = vxpose.xlu0.b32.cont [5/16] %v3617_v40, 128  ;;  %v4564_v49 = vpop.f32.mrf.mxu0  ;;  %4707 = vmatmul.mubr.msk.f32.gmra.mxu0 %vm465_vm1, %v325_v38  ;;  %v3419_v50 = vmax.f32 %v3105_v45, %v3233_v46  ;;  %v2074_v51 = vpop.f32.mrf.mxu1 }
 0x120   : > { %2612 = vst [vmem:[#allocation2 + $0xe8] sm:$0xff] %v4564_v49  ;;  %4709 = vmatprep.mubr.msk.f32.mxu0 %vm465_vm1, %v326_v41  ;;  %2737 = vst [vmem:[#allocation2 + $0x4d0] sm:$0xff] %v2074_v51 }
 0x121   : > { %v1444_v54 = vpop.f32.mrf.mxu0  ;;  %v3483_v56 = vmax.f32 %v3355_v47, %v3419_v50  ;;  %v4756_v57 = vpop.f32.mrf.mxu1  ;;  %4899 = vmatmul.mubr.msk.f32.gmra.mxu1 %vm465_vm1, %v453_v48 }
 0x122   : > { %2611 = vst [vmem:[#allocation2 + $0xe0] sm:$0xff] %v1444_v54  ;;  %2740 = vst [vmem:[#allocation2 + $0x4e8] sm:$0xff] %v4756_v57  ;;  %4901 = vmatprep.mubr.msk.f32.mxu1 %vm465_vm1, %v454_v52 }
 0x123   : > { %v4567_v59 = vpop.f32.mrf.mxu0  ;;  %4710 = vmatmul.mubr.msk.f32.gmra.mxu0 %vm465_vm1, %v327_v53  ;;  %v3554_v60 = vadd.f32 %v5601_v55, %v3483_v56  ;;  %v2084_v61 = vpop.f32.mrf.mxu1 }
 0x124   : > { %2614 = vst [vmem:[#allocation2 + $0xf8] sm:$0xff] %v4567_v59  ;;  %2739 = vst [vmem:[#allocation2 + $0x4e0] sm:$0xff] %v2084_v61 }
 0x125   : > { %v1454_v62 = vpop.f32.mrf.mxu0  ;;  %v3618_v63 = vmax.f32 %v3554_v60, 0.0  ;;  %v2851_v0 = vld [vmem:[#allocation2 + $0xc0] ss:$4 sm:$0xff]  ;;  %v2979_v1 = vld [vmem:[#allocation2 + $0xc1] ss:$4 sm:$0xff]  ;;  %v4759_v2 = vpop.f32.mrf.mxu1  ;;  %4902 = vmatmul.mubr.msk.f32.gmra.mxu1 %vm465_vm1, %v455_v58 }
 0x126   : > { %2613 = vst [vmem:[#allocation2 + $0xf0] sm:$0xff] %v1454_v62  ;;  %v3107_v3 = vld [vmem:[#allocation2 + $0xc2] ss:$4 sm:$0xff]  ;;  %v3235_v4 = vld [vmem:[#allocation2 + $0xc3] ss:$4 sm:$0xff]  ;;  %v3356_v5 = vmax.f32 %v2851_v0, %v2979_v1  ;;  %2742 = vst [vmem:[#allocation2 + $0x4f8] sm:$0xff] %v4759_v2 }
 0x127   : > { %3682 = vxpose.xlu0.b32.cont [6/16] %v3618_v63, 128  ;;  %v4570_v6 = vpop.f32.mrf.mxu0  ;;  %v3420_v7 = vmax.f32 %v3107_v3, %v3235_v4  ;;  %v2094_v8 = vpop.f32.mrf.mxu1 }
 0x128   : > { %2616 = vst [vmem:[#allocation2 + $0x108] sm:$0xff] %v4570_v6  ;;  %2741 = vst [vmem:[#allocation2 + $0x4f0] sm:$0xff] %v2094_v8 }
 0x129   : > { %v1464_v9 = vpop.f32.mrf.mxu0  ;;  %v3484_v10 = vmax.f32 %v3356_v5, %v3420_v7  ;;  %v4762_v11 = vpop.f32.mrf.mxu1 }
 0x12a   : > { %2615 = vst [vmem:[#allocation2 + $0x100] sm:$0xff] %v1464_v9  ;;  %2744 = vst [vmem:[#allocation2 + $0x508] sm:$0xff] %v4762_v11 }
 0x12b   : > { %v4573_v12 = vpop.f32.mrf.mxu0  ;;  %v3555_v13 = vadd.f32 %v5601_v55, %v3484_v10  ;;  %v2104_v14 = vpop.f32.mrf.mxu1 }
 0x12c   : > { %2618 = vst [vmem:[#allocation2 + $0x118] sm:$0xff] %v4573_v12  ;;  %2743 = vst [vmem:[#allocation2 + $0x500] sm:$0xff] %v2104_v14 }
 0x12d   : > { %v1474_v15 = vpop.f32.mrf.mxu0  ;;  %v3619_v16 = vmax.f32 %v3555_v13, 0.0  ;;  %v2853_v17 = vld [vmem:[#allocation2 + $0xe0] ss:$4 sm:$0xff]  ;;  %v2981_v18 = vld [vmem:[#allocation2 + $0xe1] ss:$4 sm:$0xff]  ;;  %v4765_v19 = vpop.f32.mrf.mxu1 }
 0x12e   : > { %2617 = vst [vmem:[#allocation2 + $0x110] sm:$0xff] %v1474_v15  ;;  %v3109_v20 = vld [vmem:[#allocation2 + $0xe2] ss:$4 sm:$0xff]  ;;  %v3237_v21 = vld [vmem:[#allocation2 + $0xe3] ss:$4 sm:$0xff]  ;;  %v3357_v22 = vmax.f32 %v2853_v17, %v2981_v18  ;;  %2746 = vst [vmem:[#allocation2 + $0x518] sm:$0xff] %v4765_v19 }
 0x12f   : > { %3683 = vxpose.xlu0.b32.cont [7/16] %v3619_v16, 128  ;;  %v4576_v23 = vpop.f32.mrf.mxu0  ;;  %v3421_v24 = vmax.f32 %v3109_v20, %v3237_v21  ;;  %v2114_v25 = vpop.f32.mrf.mxu1 }
 0x130   : > { %2620 = vst [vmem:[#allocation2 + $0x128] sm:$0xff] %v4576_v23  ;;  %2745 = vst [vmem:[#allocation2 + $0x510] sm:$0xff] %v2114_v25 }
 0x131   : > { %v1484_v26 = vpop.f32.mrf.mxu0  ;;  %v3485_v27 = vmax.f32 %v3357_v22, %v3421_v24  ;;  %v4768_v28 = vpop.f32.mrf.mxu1 }
 0x132   : > { %2619 = vst [vmem:[#allocation2 + $0x120] sm:$0xff] %v1484_v26  ;;  %2748 = vst [vmem:[#allocation2 + $0x528] sm:$0xff] %v4768_v28 }
 0x133   : > { %v4579_v29 = vpop.f32.mrf.mxu0  ;;  %v3556_v30 = vadd.f32 %v5601_v55, %v3485_v27  ;;  %v2124_v31 = vpop.f32.mrf.mxu1 }
 0x134   : > { %2622 = vst [vmem:[#allocation2 + $0x138] sm:$0xff] %v4579_v29  ;;  %2747 = vst [vmem:[#allocation2 + $0x520] sm:$0xff] %v2124_v31 }
 0x135   : > { %v1494_v32 = vpop.f32.mrf.mxu0  ;;  %v3620_v33 = vmax.f32 %v3556_v30, 0.0  ;;  %v2855_v34 = vld [vmem:[#allocation2 + $0x100] ss:$4 sm:$0xff]  ;;  %v2983_v35 = vld [vmem:[#allocation2 + $0x101] ss:$4 sm:$0xff]  ;;  %v4771_v36 = vpop.f32.mrf.mxu1 }
 0x136   : > { %2621 = vst [vmem:[#allocation2 + $0x130] sm:$0xff] %v1494_v32  ;;  %v3111_v37 = vld [vmem:[#allocation2 + $0x102] ss:$4 sm:$0xff]  ;;  %v3239_v38 = vld [vmem:[#allocation2 + $0x103] ss:$4 sm:$0xff]  ;;  %v3358_v39 = vmax.f32 %v2855_v34, %v2983_v35  ;;  %2750 = vst [vmem:[#allocation2 + $0x538] sm:$0xff] %v4771_v36 }
 0x137   : > { %3684 = vxpose.xlu0.b32.cont [8/16] %v3620_v33, 128  ;;  %v4582_v40 = vpop.f32.mrf.mxu0  ;;  %v3422_v41 = vmax.f32 %v3111_v37, %v3239_v38  ;;  %v2134_v42 = vpop.f32.mrf.mxu1 }
 0x138   : > { %2624 = vst [vmem:[#allocation2 + $0x148] sm:$0xff] %v4582_v40  ;;  %2749 = vst [vmem:[#allocation2 + $0x530] sm:$0xff] %v2134_v42 }
 0x139   : > { %v1504_v43 = vpop.f32.mrf.mxu0  ;;  %v3486_v44 = vmax.f32 %v3358_v39, %v3422_v41  ;;  %v4774_v45 = vpop.f32.mrf.mxu1 }
 0x13a   : > { %2623 = vst [vmem:[#allocation2 + $0x140] sm:$0xff] %v1504_v43  ;;  %2752 = vst [vmem:[#allocation2 + $0x548] sm:$0xff] %v4774_v45 }
 0x13b   : > { %v4585_v46 = vpop.f32.mrf.mxu0  ;;  %v3557_v47 = vadd.f32 %v5601_v55, %v3486_v44  ;;  %v2144_v48 = vpop.f32.mrf.mxu1 }
 0x13c   : > { %2626 = vst [vmem:[#allocation2 + $0x158] sm:$0xff] %v4585_v46  ;;  %2751 = vst [vmem:[#allocation2 + $0x540] sm:$0xff] %v2144_v48 }
 0x13d   : > { %v1514_v49 = vpop.f32.mrf.mxu0  ;;  %v3621_v50 = vmax.f32 %v3557_v47, 0.0  ;;  %v2857_v51 = vld [vmem:[#allocation2 + $0x120] ss:$4 sm:$0xff]  ;;  %v2985_v52 = vld [vmem:[#allocation2 + $0x121] ss:$4 sm:$0xff]  ;;  %v4777_v53 = vpop.f32.mrf.mxu1 }
 0x13e   : > { %2625 = vst [vmem:[#allocation2 + $0x150] sm:$0xff] %v1514_v49  ;;  %v3113_v54 = vld [vmem:[#allocation2 + $0x122] ss:$4 sm:$0xff]  ;;  %v3241_v56 = vld [vmem:[#allocation2 + $0x123] ss:$4 sm:$0xff]  ;;  %v3359_v57 = vmax.f32 %v2857_v51, %v2985_v52  ;;  %2754 = vst [vmem:[#allocation2 + $0x558] sm:$0xff] %v4777_v53 }
 0x13f   : > { %3685 = vxpose.xlu0.b32.cont [9/16] %v3621_v50, 128  ;;  %v4588_v58 = vpop.f32.mrf.mxu0  ;;  %v3423_v59 = vmax.f32 %v3113_v54, %v3241_v56  ;;  %v2154_v60 = vpop.f32.mrf.mxu1 }
 0x140   : > { %2628 = vst [vmem:[#allocation2 + $0x168] sm:$0xff] %v4588_v58  ;;  %2753 = vst [vmem:[#allocation2 + $0x550] sm:$0xff] %v2154_v60 }
 0x141   : > { %v1524_v61 = vpop.f32.mrf.mxu0  ;;  %v3487_v62 = vmax.f32 %v3359_v57, %v3423_v59  ;;  %v4780_v63 = vpop.f32.mrf.mxu1 }
 0x142   : > { %2627 = vst [vmem:[#allocation2 + $0x160] sm:$0xff] %v1524_v61  ;;  %2756 = vst [vmem:[#allocation2 + $0x568] sm:$0xff] %v4780_v63 }
 0x143   : > { %v4591_v0 = vpop.f32.mrf.mxu0  ;;  %v3558_v1 = vadd.f32 %v5601_v55, %v3487_v62  ;;  %v2164_v2 = vpop.f32.mrf.mxu1 }
 0x144   : > { %2630 = vst [vmem:[#allocation2 + $0x178] sm:$0xff] %v4591_v0  ;;  %2755 = vst [vmem:[#allocation2 + $0x560] sm:$0xff] %v2164_v2 }
 0x145   : > { %v1534_v3 = vpop.f32.mrf.mxu0  ;;  %v3622_v4 = vmax.f32 %v3558_v1, 0.0  ;;  %v2859_v5 = vld [vmem:[#allocation2 + $0x140] ss:$4 sm:$0xff]  ;;  %v2987_v6 = vld [vmem:[#allocation2 + $0x141] ss:$4 sm:$0xff]  ;;  %v4783_v7 = vpop.f32.mrf.mxu1 }
 0x146   : > { %2629 = vst [vmem:[#allocation2 + $0x170] sm:$0xff] %v1534_v3  ;;  %v3115_v8 = vld [vmem:[#allocation2 + $0x142] ss:$4 sm:$0xff]  ;;  %v3243_v9 = vld [vmem:[#allocation2 + $0x143] ss:$4 sm:$0xff]  ;;  %v3360_v10 = vmax.f32 %v2859_v5, %v2987_v6  ;;  %2758 = vst [vmem:[#allocation2 + $0x578] sm:$0xff] %v4783_v7 }
 0x147   : > { %3686 = vxpose.xlu0.b32.cont [10/16] %v3622_v4, 128  ;;  %v4594_v11 = vpop.f32.mrf.mxu0  ;;  %v3424_v12 = vmax.f32 %v3115_v8, %v3243_v9  ;;  %v2174_v13 = vpop.f32.mrf.mxu1 }
 0x148   : > { %2632 = vst [vmem:[#allocation2 + $0x188] sm:$0xff] %v4594_v11  ;;  %2757 = vst [vmem:[#allocation2 + $0x570] sm:$0xff] %v2174_v13 }
 0x149   : > { %v1544_v14 = vpop.f32.mrf.mxu0  ;;  %v3488_v15 = vmax.f32 %v3360_v10, %v3424_v12  ;;  %v4786_v16 = vpop.f32.mrf.mxu1 }
 0x14a   : > { %2631 = vst [vmem:[#allocation2 + $0x180] sm:$0xff] %v1544_v14  ;;  %2760 = vst [vmem:[#allocation2 + $0x588] sm:$0xff] %v4786_v16 }
 0x14b   : > { %v4597_v17 = vpop.f32.mrf.mxu0  ;;  %v3559_v18 = vadd.f32 %v5601_v55, %v3488_v15  ;;  %v2184_v19 = vpop.f32.mrf.mxu1 }
 0x14c   : > { %2634 = vst [vmem:[#allocation2 + $0x198] sm:$0xff] %v4597_v17  ;;  %2759 = vst [vmem:[#allocation2 + $0x580] sm:$0xff] %v2184_v19  ;;  %v2903_v19 = vld [vmem:[#allocation2 + $0x400] ss:$4 sm:$0xff] }
 0x14d   : > { %v1554_v20 = vpop.f32.mrf.mxu0  ;;  %v3623_v21 = vmax.f32 %v3559_v18, 0.0  ;;  %v2861_v22 = vld [vmem:[#allocation2 + $0x160] ss:$4 sm:$0xff]  ;;  %v2989_v23 = vld [vmem:[#allocation2 + $0x161] ss:$4 sm:$0xff]  ;;  %v4789_v24 = vpop.f32.mrf.mxu1 }
 0x14e   : > { %2633 = vst [vmem:[#allocation2 + $0x190] sm:$0xff] %v1554_v20  ;;  %v3117_v25 = vld [vmem:[#allocation2 + $0x162] ss:$4 sm:$0xff]  ;;  %v3245_v26 = vld [vmem:[#allocation2 + $0x163] ss:$4 sm:$0xff]  ;;  %v3361_v27 = vmax.f32 %v2861_v22, %v2989_v23  ;;  %2762 = vst [vmem:[#allocation2 + $0x598] sm:$0xff] %v4789_v24 }
 0x14f   : > { %3687 = vxpose.xlu0.b32.cont [11/16] %v3623_v21, 128  ;;  %v4600_v28 = vpop.f32.mrf.mxu0  ;;  %v3425_v29 = vmax.f32 %v3117_v25, %v3245_v26  ;;  %v2194_v30 = vpop.f32.mrf.mxu1  ;;  %v3031_v22 = vld [vmem:[#allocation2 + $0x401] ss:$4 sm:$0xff]  ;;  %v3159_v23 = vld [vmem:[#allocation2 + $0x402] ss:$4 sm:$0xff]  ;;  %v3287_v24 = vld [vmem:[#allocation2 + $0x403] ss:$4 sm:$0xff] }
 0x150   : > { %2636 = vst [vmem:[#allocation2 + $0x1a8] sm:$0xff] %v4600_v28  ;;  %2761 = vst [vmem:[#allocation2 + $0x590] sm:$0xff] %v2194_v30  ;;  %v2905_v28 = vld [vmem:[#allocation2 + $0x420] ss:$4 sm:$0xff]  ;;  %v3382_v30 = vmax.f32 %v2903_v19, %v3031_v22 }
 0x151   : > { %v1564_v31 = vpop.f32.mrf.mxu0  ;;  %v3489_v32 = vmax.f32 %v3361_v27, %v3425_v29  ;;  %v4792_v33 = vpop.f32.mrf.mxu1 }
 0x152   : > { %2635 = vst [vmem:[#allocation2 + $0x1a0] sm:$0xff] %v1564_v31  ;;  %2764 = vst [vmem:[#allocation2 + $0x5a8] sm:$0xff] %v4792_v33  ;;  %v3446_v31 = vmax.f32 %v3159_v23, %v3287_v24  ;;  %v3161_v33 = vld [vmem:[#allocation2 + $0x422] ss:$4 sm:$0xff]  ;;  %v3039_v23 = vld [vmem:[#allocation2 + $0x481] ss:$4 sm:$0xff] }
 0x153   : > { %v4603_v34 = vpop.f32.mrf.mxu0  ;;  %v3560_v35 = vadd.f32 %v5601_v55, %v3489_v32  ;;  %v2204_v36 = vpop.f32.mrf.mxu1  ;;  %v3033_v32 = vld [vmem:[#allocation2 + $0x421] ss:$4 sm:$0xff]  ;;  %v3167_v24 = vld [vmem:[#allocation2 + $0x482] ss:$4 sm:$0xff] }
 0x154   : > { %2638 = vst [vmem:[#allocation2 + $0x1b8] sm:$0xff] %v4603_v34  ;;  %2763 = vst [vmem:[#allocation2 + $0x5a0] sm:$0xff] %v2204_v36  ;;  %v3289_v34 = vld [vmem:[#allocation2 + $0x423] ss:$4 sm:$0xff] }
 0x155   : > { %v1574_v37 = vpop.f32.mrf.mxu0  ;;  %v3624_v38 = vmax.f32 %v3560_v35, 0.0  ;;  %v2863_v39 = vld [vmem:[#allocation2 + $0x180] ss:$4 sm:$0xff]  ;;  %v2991_v40 = vld [vmem:[#allocation2 + $0x181] ss:$4 sm:$0xff]  ;;  %v4795_v41 = vpop.f32.mrf.mxu1 }
 0x156   : > { %2637 = vst [vmem:[#allocation2 + $0x1b0] sm:$0xff] %v1574_v37  ;;  %v3119_v42 = vld [vmem:[#allocation2 + $0x182] ss:$4 sm:$0xff]  ;;  %v3247_v43 = vld [vmem:[#allocation2 + $0x183] ss:$4 sm:$0xff]  ;;  %v3362_v44 = vmax.f32 %v2863_v39, %v2991_v40  ;;  %2766 = vst [vmem:[#allocation2 + $0x5b8] sm:$0xff] %v4795_v41 }
 0x157   : > { %3688 = vxpose.xlu0.b32.cont [12/16] %v3624_v38, 128  ;;  %v4606_v45 = vpop.f32.mrf.mxu0  ;;  %v3426_v46 = vmax.f32 %v3119_v42, %v3247_v43  ;;  %v2214_v47 = vpop.f32.mrf.mxu1 }
 0x158   : > { %2640 = vst [vmem:[#allocation2 + $0x1c8] sm:$0xff] %v4606_v45  ;;  %2765 = vst [vmem:[#allocation2 + $0x5b0] sm:$0xff] %v2214_v47  ;;  %v3383_v47 = vmax.f32 %v2905_v28, %v3033_v32 }
 0x159   : > { %v1584_v48 = vpop.f32.mrf.mxu0  ;;  %v3490_v49 = vmax.f32 %v3362_v44, %v3426_v46  ;;  %v4798_v50 = vpop.f32.mrf.mxu1  ;;  %v3510_v46 = vmax.f32 %v3382_v30, %v3446_v31 }
 0x15a   : > { %2639 = vst [vmem:[#allocation2 + $0x1c0] sm:$0xff] %v1584_v48  ;;  %2768 = vst [vmem:[#allocation2 + $0x5c8] sm:$0xff] %v4798_v50  ;;  %v3447_v48 = vmax.f32 %v3161_v33, %v3289_v34  ;;  %v3041_v33 = vld [vmem:[#allocation2 + $0x4a1] ss:$4 sm:$0xff]  ;;  %v3169_v34 = vld [vmem:[#allocation2 + $0x4a2] ss:$4 sm:$0xff] }
 0x15b   : > { %v4609_v51 = vpop.f32.mrf.mxu0  ;;  %v3561_v52 = vadd.f32 %v5601_v55, %v3490_v49  ;;  %v2224_v53 = vpop.f32.mrf.mxu1 }
 0x15c   : > { %2642 = vst [vmem:[#allocation2 + $0x1d8] sm:$0xff] %v4609_v51  ;;  %2767 = vst [vmem:[#allocation2 + $0x5c0] sm:$0xff] %v2224_v53  ;;  %v2907_v51 = vld [vmem:[#allocation2 + $0x440] ss:$4 sm:$0xff]  ;;  %v3035_v53 = vld [vmem:[#allocation2 + $0x441] ss:$4 sm:$0xff] }
 0x15d   : > { %v1594_v54 = vpop.f32.mrf.mxu0  ;;  %v3625_v56 = vmax.f32 %v3561_v52, 0.0  ;;  %v2865_v57 = vld [vmem:[#allocation2 + $0x1a0] ss:$4 sm:$0xff]  ;;  %v2993_v58 = vld [vmem:[#allocation2 + $0x1a1] ss:$4 sm:$0xff]  ;;  %v4801_v59 = vpop.f32.mrf.mxu1 }
 0x15e   : > { %2641 = vst [vmem:[#allocation2 + $0x1d0] sm:$0xff] %v1594_v54  ;;  %v3121_v60 = vld [vmem:[#allocation2 + $0x1a2] ss:$4 sm:$0xff]  ;;  %v3249_v61 = vld [vmem:[#allocation2 + $0x1a3] ss:$4 sm:$0xff]  ;;  %v3363_v62 = vmax.f32 %v2865_v57, %v2993_v58  ;;  %2770 = vst [vmem:[#allocation2 + $0x5d8] sm:$0xff] %v4801_v59 }
 0x15f   : > { %3689 = vxpose.xlu0.b32.cont [13/16] %v3625_v56, 128  ;;  %v4612_v63 = vpop.f32.mrf.mxu0  ;;  %v3427_v0 = vmax.f32 %v3121_v60, %v3249_v61  ;;  %v2234_v1 = vpop.f32.mrf.mxu1  ;;  %v3163_v54 = vld [vmem:[#allocation2 + $0x442] ss:$4 sm:$0xff]  ;;  %v3291_v56 = vld [vmem:[#allocation2 + $0x443] ss:$4 sm:$0xff]  ;;  %v3581_v60 = vadd.f32 %v5601_v55, %v3510_v46  ;;  %v3511_v61 = vmax.f32 %v3383_v47, %v3447_v48 }
 0x160   : > { %2644 = vst [vmem:[#allocation2 + $0x1e8] sm:$0xff] %v4612_v63  ;;  %2769 = vst [vmem:[#allocation2 + $0x5d0] sm:$0xff] %v2234_v1  ;;  %v3037_v63 = vld [vmem:[#allocation2 + $0x461] ss:$4 sm:$0xff] }
 0x161   : > { %v1604_v2 = vpop.f32.mrf.mxu0  ;;  %v3491_v3 = vmax.f32 %v3363_v62, %v3427_v0  ;;  %v4804_v4 = vpop.f32.mrf.mxu1  ;;  %v2909_v62 = vld [vmem:[#allocation2 + $0x460] ss:$4 sm:$0xff]  ;;  %v3165_v0 = vld [vmem:[#allocation2 + $0x462] ss:$4 sm:$0xff] }
 0x162   : > { %2643 = vst [vmem:[#allocation2 + $0x1e0] sm:$0xff] %v1604_v2  ;;  %2772 = vst [vmem:[#allocation2 + $0x5e8] sm:$0xff] %v4804_v4 }
 0x163   : > { %v4615_v5 = vpop.f32.mrf.mxu0  ;;  %v3562_v6 = vadd.f32 %v5601_v55, %v3491_v3  ;;  %v2244_v7 = vpop.f32.mrf.mxu1 }
 0x164   : > { %2646 = vst [vmem:[#allocation2 + $0x1f8] sm:$0xff] %v4615_v5  ;;  %2771 = vst [vmem:[#allocation2 + $0x5e0] sm:$0xff] %v2244_v7  ;;  %v3384_v5 = vmax.f32 %v2907_v51, %v3035_v53 }
 0x165   : > { %v1614_v8 = vpop.f32.mrf.mxu0  ;;  %v3626_v9 = vmax.f32 %v3562_v6, 0.0  ;;  %v2867_v10 = vld [vmem:[#allocation2 + $0x1c0] ss:$4 sm:$0xff]  ;;  %v2995_v11 = vld [vmem:[#allocation2 + $0x1c1] ss:$4 sm:$0xff]  ;;  %v4807_v12 = vpop.f32.mrf.mxu1  ;;  %v3448_v6 = vmax.f32 %v3163_v54, %v3291_v56 }
 0x166   : > { %2645 = vst [vmem:[#allocation2 + $0x1f0] sm:$0xff] %v1614_v8  ;;  %v3123_v13 = vld [vmem:[#allocation2 + $0x1c2] ss:$4 sm:$0xff]  ;;  %v3251_v14 = vld [vmem:[#allocation2 + $0x1c3] ss:$4 sm:$0xff]  ;;  %v3364_v15 = vmax.f32 %v2867_v10, %v2995_v11  ;;  %2774 = vst [vmem:[#allocation2 + $0x5f8] sm:$0xff] %v4807_v12 }
 0x167   : > { %3690 = vxpose.xlu0.b32.cont [14/16] %v3626_v9, 128  ;;  %v4618_v16 = vpop.f32.mrf.mxu0  ;;  %v3428_v17 = vmax.f32 %v3123_v13, %v3251_v14  ;;  %v2254_v18 = vpop.f32.mrf.mxu1  ;;  %v3293_v11 = vld [vmem:[#allocation2 + $0x463] ss:$4 sm:$0xff]  ;;  %v3645_v14 = vmax.f32 %v3581_v60, 0.0  ;;  %v3043_v60 = vld [vmem:[#allocation2 + $0x4c1] ss:$4 sm:$0xff] }
 0x168   : > { %2648 = vst [vmem:[#allocation2 + $0x208] sm:$0xff] %v4618_v16  ;;  %2773 = vst [vmem:[#allocation2 + $0x5f0] sm:$0xff] %v2254_v18  ;;  %v3449_v22 = vmax.f32 %v3165_v0, %v3293_v11 }
 0x169   : > { %v1624_v20 = vpop.f32.mrf.mxu0  ;;  %v3492_v21 = vmax.f32 %v3364_v15, %v3428_v17  ;;  %v4810_v25 = vpop.f32.mrf.mxu1  ;;  %v5708_v15 = vld [vmem:[%s5889_s2] ss:$0 sm:$0xff] }
 0x16a   : > { %2647 = vst [vmem:[#allocation2 + $0x200] sm:$0xff] %v1624_v20  ;;  %2776 = vst [vmem:[#allocation2 + $0x608] sm:$0xff] %v4810_v25  ;;  %v3582_v16 = vadd.f32 %v5708_v15, %v3511_v61  ;;  %v2911_v17 = vld [vmem:[#allocation2 + $0x480] ss:$4 sm:$0xff]  ;;  %v3512_v20 = vmax.f32 %v3384_v5, %v3448_v6  ;;  %v3295_v25 = vld [vmem:[#allocation2 + $0x483] ss:$4 sm:$0xff] }
 0x16b   : > { %v4621_v26 = vpop.f32.mrf.mxu0  ;;  %v3563_v27 = vadd.f32 %v5601_v55, %v3492_v21  ;;  %v2264_v29 = vpop.f32.mrf.mxu1  ;;  %v3385_v21 = vmax.f32 %v2909_v62, %v3037_v63  ;;  %v3386_v31 = vmax.f32 %v2911_v17, %v3039_v23  ;;  %v3450_v32 = vmax.f32 %v3167_v24, %v3295_v25  ;;  %v3171_v61 = vld [vmem:[#allocation2 + $0x4c2] ss:$4 sm:$0xff]  ;;  %v3299_v62 = vld [vmem:[#allocation2 + $0x4c3] ss:$4 sm:$0xff]  ;;  %v3045_v5 = vld [vmem:[#allocation2 + $0x4e1] ss:$4 sm:$0xff] }
 0x16c   : > { %2650 = vst [vmem:[#allocation2 + $0x218] sm:$0xff] %v4621_v26  ;;  %2775 = vst [vmem:[#allocation2 + $0x600] sm:$0xff] %v2264_v29  ;;  %v2913_v29 = vld [vmem:[#allocation2 + $0x4a0] ss:$4 sm:$0xff]  ;;  %v3173_v6 = vld [vmem:[#allocation2 + $0x4e2] ss:$4 sm:$0xff] }
 0x16d   : > { %v1634_v35 = vpop.f32.mrf.mxu0  ;;  %v3627_v36 = vmax.f32 %v3563_v27, 0.0  ;;  %v2869_v37 = vld [vmem:[#allocation2 + $0x1e0] ss:$4 sm:$0xff]  ;;  %v2997_v38 = vld [vmem:[#allocation2 + $0x1e1] ss:$4 sm:$0xff]  ;;  %v4813_v39 = vpop.f32.mrf.mxu1  ;;  %v3387_v51 = vmax.f32 %v2913_v29, %v3041_v33 }
 0x16e   : > { %2649 = vst [vmem:[#allocation2 + $0x210] sm:$0xff] %v1634_v35  ;;  %v3125_v40 = vld [vmem:[#allocation2 + $0x1e2] ss:$4 sm:$0xff]  ;;  %v3253_v41 = vld [vmem:[#allocation2 + $0x1e3] ss:$4 sm:$0xff]  ;;  %v3365_v42 = vmax.f32 %v2869_v37, %v2997_v38  ;;  %2778 = vst [vmem:[#allocation2 + $0x618] sm:$0xff] %v4813_v39  ;;  %v3583_v39 = vadd.f32 %v5708_v15, %v3512_v20 }
 0x16f   : > { %3691 = vxpose.xlu0.b32.cont [15/16] %v3627_v36, 128  ;;  %v4624_v43 = vpop.f32.mrf.mxu0  ;;  %v3429_v44 = vmax.f32 %v3125_v40, %v3253_v41  ;;  %v2274_v45 = vpop.f32.mrf.mxu1  ;;  %v3297_v35 = vld [vmem:[#allocation2 + $0x4a3] ss:$4 sm:$0xff]  ;;  %v3646_v37 = vmax.f32 %v3582_v16, 0.0  ;;  %v3513_v40 = vmax.f32 %v3385_v21, %v3449_v22  ;;  %v2919_v24 = vld [vmem:[#allocation2 + $0x500] ss:$4 sm:$0xff] }
 0x170   : > { %2652 = vst [vmem:[#allocation2 + $0x228] sm:$0xff] %v4624_v43  ;;  %2777 = vst [vmem:[#allocation2 + $0x610] sm:$0xff] %v2274_v45  ;;  %v3647_v54 = vmax.f32 %v3583_v39, 0.0 }
 0x171   : > { %v1644_v49 = vpop.f32.mrf.mxu0  ;;  %v3493_v50 = vmax.f32 %v3365_v42, %v3429_v44  ;;  %v4816_v52 = vpop.f32.mrf.mxu1  ;;  %v3584_v56 = vadd.f32 %v5708_v15, %v3513_v40  ;;  %v3049_v40 = vld [vmem:[#allocation2 + $0x521] ss:$4 sm:$0xff] }
 0x172   : > { %2651 = vst [vmem:[#allocation2 + $0x220] sm:$0xff] %v1644_v49  ;;  %2780 = vst [vmem:[#allocation2 + $0x628] sm:$0xff] %v4816_v52  ;;  %v3451_v52 = vmax.f32 %v3169_v34, %v3297_v35 }
 0x173   : > { %v4627_v57 = vpop.f32.mrf.mxu0  ;;  %v3564_v58 = vadd.f32 %v5601_v55, %v3493_v50  ;;  %v2284_v59 = vpop.f32.mrf.mxu1  ;;  %v3514_v50 = vmax.f32 %v3386_v31, %v3450_v32  ;;  %v3175_v31 = vld [vmem:[#allocation2 + $0x502] ss:$4 sm:$0xff]  ;;  %v3303_v32 = vld [vmem:[#allocation2 + $0x503] ss:$4 sm:$0xff] }
 0x174   : > { %2654 = vst [vmem:[#allocation2 + $0x238] sm:$0xff] %v4627_v57  ;;  %2779 = vst [vmem:[#allocation2 + $0x620] sm:$0xff] %v2284_v59  ;;  %v3454_v39 = vmax.f32 %v3175_v31, %v3303_v32  ;;  %v2927_v31 = vld [vmem:[#allocation2 + $0x580] ss:$4 sm:$0xff] }
 0x175   : > { %v1654_v1 = vpop.f32.mrf.mxu0  ;;  %v3628_v2 = vmax.f32 %v3564_v58, 0.0  ;;  %v2871_v3 = vld [vmem:[#allocation2 + $0x200] ss:$4 sm:$0xff]  ;;  %v2999_v4 = vld [vmem:[#allocation2 + $0x201] ss:$4 sm:$0xff]  ;;  %v4819_v7 = vpop.f32.mrf.mxu1 }
 0x176   : > { %2653 = vst [vmem:[#allocation2 + $0x230] sm:$0xff] %v1654_v1  ;;  %v3127_v8 = vld [vmem:[#allocation2 + $0x202] ss:$4 sm:$0xff]  ;;  %v3255_v9 = vld [vmem:[#allocation2 + $0x203] ss:$4 sm:$0xff]  ;;  %v3366_v10 = vmax.f32 %v2871_v3, %v2999_v4  ;;  %2782 = vst [vmem:[#allocation2 + $0x638] sm:$0xff] %v4819_v7  ;;  %v3515_v3 = vmax.f32 %v3387_v51, %v3451_v52 }
 0x177   : > { %3692 = vxpose.xlu0.b32.end [16/16] %v3628_v2, 128  ;;  %v4630_v55 = vpop.f32.mrf.mxu0  ;;  %v3430_v12 = vmax.f32 %v3127_v8, %v3255_v9  ;;  %v2294_v13 = vpop.f32.mrf.mxu1  ;;  %v2915_v58 = vld [vmem:[#allocation2 + $0x4c0] ss:$4 sm:$0xff]  ;;  %v3585_v2 = vadd.f32 %v5708_v15, %v3514_v50  ;;  %v3648_v8 = vmax.f32 %v3584_v56, 0.0 }
 0x178   : > { %2656 = vst [vmem:[#allocation2 + $0x248] sm:$0xff] %v4630_v55  ;;  %2781 = vst [vmem:[#allocation2 + $0x630] sm:$0xff] %v2294_v13  ;;  %v2917_v4 = vld [vmem:[#allocation2 + $0x4e0] ss:$4 sm:$0xff]  ;;  %v3388_v55 = vmax.f32 %v2915_v58, %v3043_v60  ;;  %v3586_v23 = vadd.f32 %v5708_v15, %v3515_v3  ;;  %v3051_v3 = vld [vmem:[#allocation2 + $0x541] ss:$4 sm:$0xff] }
 0x179   : > { %v1664_v18 = vpop.f32.mrf.mxu0  ;;  %v3494_v19 = vmax.f32 %v3366_v10, %v3430_v12  ;;  %v4822_v26 = vpop.f32.mrf.mxu1  ;;  %v3452_v12 = vmax.f32 %v3171_v61, %v3299_v62  ;;  %v3649_v22 = vmax.f32 %v3585_v2, 0.0 }
 0x17a   : > { %2655 = vst [vmem:[#allocation2 + $0x240] sm:$0xff] %v1664_v18  ;;  %2784 = vst [vmem:[#allocation2 + $0x648] sm:$0xff] %v4822_v26  ;;  %v3301_v18 = vld [vmem:[#allocation2 + $0x4e3] ss:$4 sm:$0xff] }
 0x17b   : > { %3741 = vxpose.xlu0.b32.start [1/16] %v3645_v14, 128  ;;  %v4633_v27 = vpop.f32.mrf.mxu0  ;;  %v3565_v28 = vadd.f32 %v5708_v15, %v3494_v19  ;;  %v2304_v30 = vpop.f32.mrf.mxu1  ;;  %v3453_v29 = vmax.f32 %v3173_v6, %v3301_v18 }
 0x17c   : > { %2658 = vst [vmem:[#allocation2 + $0x258] sm:$0xff] %v4633_v27  ;;  %2783 = vst [vmem:[#allocation2 + $0x640] sm:$0xff] %v2304_v30  ;;  %v3516_v27 = vmax.f32 %v3388_v55, %v3452_v12  ;;  %v3047_v30 = vld [vmem:[#allocation2 + $0x501] ss:$4 sm:$0xff]  ;;  %v3181_v12 = vld [vmem:[#allocation2 + $0x562] ss:$4 sm:$0xff] }
 0x17d   : > { %v1674_v36 = vpop.f32.mrf.mxu0  ;;  %v3629_v38 = vmax.f32 %v3565_v28, 0.0  ;;  %v2873_v41 = vld [vmem:[#allocation2 + $0x220] ss:$4 sm:$0xff]  ;;  %v3001_v42 = vld [vmem:[#allocation2 + $0x221] ss:$4 sm:$0xff]  ;;  %v4825_v43 = vpop.f32.mrf.mxu1  ;;  %v3389_v28 = vmax.f32 %v2917_v4, %v3045_v5 }
 0x17e   : > { %2657 = vst [vmem:[#allocation2 + $0x250] sm:$0xff] %v1674_v36  ;;  %v3129_v44 = vld [vmem:[#allocation2 + $0x222] ss:$4 sm:$0xff]  ;;  %v3257_v45 = vld [vmem:[#allocation2 + $0x223] ss:$4 sm:$0xff]  ;;  %v3367_v46 = vmax.f32 %v2873_v41, %v3001_v42  ;;  %2786 = vst [vmem:[#allocation2 + $0x658] sm:$0xff] %v4825_v43 }
 0x17f   : > { %3742 = vxpose.xlu0.b32.cont [2/16] %v3646_v37, 128  ;;  %3709 = vxpose.xlu1.b32.start [1/16] %v3629_v38, 128  ;;  %v4636_v47 = vpop.f32.mrf.mxu0  ;;  %v3431_v48 = vmax.f32 %v3129_v44, %v3257_v45  ;;  %v2314_v49 = vpop.f32.mrf.mxu1  ;;  %v2921_v36 = vld [vmem:[#allocation2 + $0x520] ss:$4 sm:$0xff]  ;;  %v3390_v38 = vmax.f32 %v2919_v24, %v3047_v30  ;;  %v3177_v41 = vld [vmem:[#allocation2 + $0x522] ss:$4 sm:$0xff]  ;;  %v3305_v42 = vld [vmem:[#allocation2 + $0x523] ss:$4 sm:$0xff] }
 0x180   : > { %2660 = vst [vmem:[#allocation2 + $0x268] sm:$0xff] %v4636_v47  ;;  %2785 = vst [vmem:[#allocation2 + $0x650] sm:$0xff] %v2314_v49  ;;  %v3650_v44 = vmax.f32 %v3586_v23, 0.0  ;;  %v3517_v47 = vmax.f32 %v3389_v28, %v3453_v29  ;;  %v3455_v60 = vmax.f32 %v3177_v41, %v3305_v42  ;;  %v3179_v4 = vld [vmem:[#allocation2 + $0x542] ss:$4 sm:$0xff] }
 0x181   : > { %v1684_v53 = vpop.f32.mrf.mxu0  ;;  %v3495_v57 = vmax.f32 %v3367_v46, %v3431_v48  ;;  %v4828_v59 = vpop.f32.mrf.mxu1  ;;  %v3587_v46 = vadd.f32 %v5708_v15, %v3516_v27  ;;  %v3518_v58 = vmax.f32 %v3390_v38, %v3454_v39  ;;  %v3307_v5 = vld [vmem:[#allocation2 + $0x543] ss:$4 sm:$0xff]  ;;  %v3053_v55 = vld [vmem:[#allocation2 + $0x561] ss:$4 sm:$0xff]  ;;  %v3183_v38 = vld [vmem:[#allocation2 + $0x582] ss:$4 sm:$0xff] }
 0x182   : > { %2659 = vst [vmem:[#allocation2 + $0x260] sm:$0xff] %v1684_v53  ;;  %2788 = vst [vmem:[#allocation2 + $0x668] sm:$0xff] %v4828_v59  ;;  %v3391_v59 = vmax.f32 %v2921_v36, %v3049_v40  ;;  %v3311_v39 = vld [vmem:[#allocation2 + $0x583] ss:$4 sm:$0xff] }
 0x183   : > { %3743 = vxpose.xlu0.b32.cont [3/16] %v3647_v54, 128  ;;  %v4639_v63 = vpop.f32.mrf.mxu0  ;;  %v3566_v0 = vadd.f32 %v5708_v15, %v3495_v57  ;;  %v2324_v1 = vpop.f32.mrf.mxu1  ;;  %v3651_v62 = vmax.f32 %v3587_v46, 0.0  ;;  %v3458_v46 = vmax.f32 %v3183_v38, %v3311_v39 }
 0x184   : > { %2662 = vst [vmem:[#allocation2 + $0x278] sm:$0xff] %v4639_v63  ;;  %2787 = vst [vmem:[#allocation2 + $0x660] sm:$0xff] %v2324_v1  ;;  %v3588_v63 = vadd.f32 %v5708_v15, %v3517_v47  ;;  %v2923_v1 = vld [vmem:[#allocation2 + $0x540] ss:$4 sm:$0xff]  ;;  %v3057_v47 = vld [vmem:[#allocation2 + $0x5a1] ss:$4 sm:$0xff] }
 0x185   : > { %v1694_v7 = vpop.f32.mrf.mxu0  ;;  %v3630_v9 = vmax.f32 %v3566_v0, 0.0  ;;  %v2875_v10 = vld [vmem:[#allocation2 + $0x240] ss:$4 sm:$0xff]  ;;  %v3003_v11 = vld [vmem:[#allocation2 + $0x241] ss:$4 sm:$0xff]  ;;  %v4831_v13 = vpop.f32.mrf.mxu1 }
 0x186   : > { %2661 = vst [vmem:[#allocation2 + $0x270] sm:$0xff] %v1694_v7  ;;  %v3131_v14 = vld [vmem:[#allocation2 + $0x242] ss:$4 sm:$0xff]  ;;  %v3259_v16 = vld [vmem:[#allocation2 + $0x243] ss:$4 sm:$0xff]  ;;  %v3368_v17 = vmax.f32 %v2875_v10, %v3003_v11  ;;  %2790 = vst [vmem:[#allocation2 + $0x678] sm:$0xff] %v4831_v13  ;;  %v3519_v10 = vmax.f32 %v3391_v59, %v3455_v60 }
 0x187   : > { %3744 = vxpose.xlu0.b32.cont [4/16] %v3648_v8, 128  ;;  %3710 = vxpose.xlu1.b32.cont [2/16] %v3630_v9, 128  ;;  %v4642_v19 = vpop.f32.mrf.mxu0  ;;  %v3432_v20 = vmax.f32 %v3131_v14, %v3259_v16  ;;  %v2334_v21 = vpop.f32.mrf.mxu1  ;;  %v3589_v9 = vadd.f32 %v5708_v15, %v3518_v58  ;;  %v2925_v11 = vld [vmem:[#allocation2 + $0x560] ss:$4 sm:$0xff]  ;;  %v3652_v14 = vmax.f32 %v3588_v63, 0.0 }
 0x188   : > { %2664 = vst [vmem:[#allocation2 + $0x288] sm:$0xff] %v4642_v19  ;;  %2789 = vst [vmem:[#allocation2 + $0x670] sm:$0xff] %v2334_v21  ;;  %v3392_v19 = vmax.f32 %v2923_v1, %v3051_v3  ;;  %v3590_v30 = vadd.f32 %v5708_v15, %v3519_v10  ;;  %v3059_v10 = vld [vmem:[#allocation2 + $0x5c1] ss:$4 sm:$0xff] }
 0x189   : > { %v1704_v25 = vpop.f32.mrf.mxu0  ;;  %v3496_v26 = vmax.f32 %v3368_v17, %v3432_v20  ;;  %v4834_v33 = vpop.f32.mrf.mxu1  ;;  %v3456_v20 = vmax.f32 %v3179_v4, %v3307_v5  ;;  %v3653_v29 = vmax.f32 %v3589_v9, 0.0 }
 0x18a   : > { %2663 = vst [vmem:[#allocation2 + $0x280] sm:$0xff] %v1704_v25  ;;  %2792 = vst [vmem:[#allocation2 + $0x688] sm:$0xff] %v4834_v33  ;;  %v3309_v25 = vld [vmem:[#allocation2 + $0x563] ss:$4 sm:$0xff] }
 0x18b   : > { %3745 = vxpose.xlu0.b32.cont [5/16] %v3649_v22, 128  ;;  %v4645_v34 = vpop.f32.mrf.mxu0  ;;  %v3567_v35 = vadd.f32 %v5708_v15, %v3496_v26  ;;  %v2344_v37 = vpop.f32.mrf.mxu1  ;;  %v3457_v36 = vmax.f32 %v3181_v12, %v3309_v25 }
 0x18c   : > { %2666 = vst [vmem:[#allocation2 + $0x298] sm:$0xff] %v4645_v34  ;;  %2791 = vst [vmem:[#allocation2 + $0x680] sm:$0xff] %v2344_v37  ;;  %v3520_v34 = vmax.f32 %v3392_v19, %v3456_v20  ;;  %v3055_v37 = vld [vmem:[#allocation2 + $0x581] ss:$4 sm:$0xff]  ;;  %v3189_v20 = vld [vmem:[#allocation2 + $0x5e2] ss:$4 sm:$0xff] }
 0x18d   : > { %v1714_v43 = vpop.f32.mrf.mxu0  ;;  %v3631_v45 = vmax.f32 %v3567_v35, 0.0  ;;  %v2877_v48 = vld [vmem:[#allocation2 + $0x260] ss:$4 sm:$0xff]  ;;  %v3005_v49 = vld [vmem:[#allocation2 + $0x261] ss:$4 sm:$0xff]  ;;  %v4837_v50 = vpop.f32.mrf.mxu1  ;;  %v3393_v35 = vmax.f32 %v2925_v11, %v3053_v55 }
 0x18e   : > { %2665 = vst [vmem:[#allocation2 + $0x290] sm:$0xff] %v1714_v43  ;;  %v3133_v51 = vld [vmem:[#allocation2 + $0x262] ss:$4 sm:$0xff]  ;;  %v3261_v52 = vld [vmem:[#allocation2 + $0x263] ss:$4 sm:$0xff]  ;;  %v3369_v53 = vmax.f32 %v2877_v48, %v3005_v49  ;;  %2794 = vst [vmem:[#allocation2 + $0x698] sm:$0xff] %v4837_v50 }
 0x18f   : > { %3746 = vxpose.xlu0.b32.cont [6/16] %v3650_v44, 128  ;;  %3711 = vxpose.xlu1.b32.cont [3/16] %v3631_v45, 128  ;;  %v4648_v54 = vpop.f32.mrf.mxu0  ;;  %v3433_v56 = vmax.f32 %v3133_v51, %v3261_v52  ;;  %v2354_v57 = vpop.f32.mrf.mxu1  ;;  %v2929_v43 = vld [vmem:[#allocation2 + $0x5a0] ss:$4 sm:$0xff]  ;;  %v3394_v45 = vmax.f32 %v2927_v31, %v3055_v37  ;;  %v3185_v48 = vld [vmem:[#allocation2 + $0x5a2] ss:$4 sm:$0xff]  ;;  %v3313_v49 = vld [vmem:[#allocation2 + $0x5a3] ss:$4 sm:$0xff] }
 0x190   : > { %2668 = vst [vmem:[#allocation2 + $0x2a8] sm:$0xff] %v4648_v54  ;;  %2793 = vst [vmem:[#allocation2 + $0x690] sm:$0xff] %v2354_v57  ;;  %v3654_v51 = vmax.f32 %v3590_v30, 0.0  ;;  %v3521_v54 = vmax.f32 %v3393_v35, %v3457_v36  ;;  %v3459_v3 = vmax.f32 %v3185_v48, %v3313_v49  ;;  %v3187_v11 = vld [vmem:[#allocation2 + $0x5c2] ss:$4 sm:$0xff] }
 0x191   : > { %v1724_v61 = vpop.f32.mrf.mxu0  ;;  %v3497_v0 = vmax.f32 %v3369_v53, %v3433_v56  ;;  %v4840_v2 = vpop.f32.mrf.mxu1  ;;  %v3591_v53 = vadd.f32 %v5708_v15, %v3520_v34  ;;  %v3522_v1 = vmax.f32 %v3394_v45, %v3458_v46  ;;  %v3315_v55 = vld [vmem:[#allocation2 + $0x5c3] ss:$4 sm:$0xff]  ;;  %v3061_v19 = vld [vmem:[#allocation2 + $0x5e1] ss:$4 sm:$0xff] }
 0x192   : > { %2667 = vst [vmem:[#allocation2 + $0x2a0] sm:$0xff] %v1724_v61  ;;  %2796 = vst [vmem:[#allocation2 + $0x6a8] sm:$0xff] %v4840_v2  ;;  %v3395_v2 = vmax.f32 %v2929_v43, %v3057_v47 }
 0x193   : > { %3747 = vxpose.xlu0.b32.cont [7/16] %v3651_v62, 128  ;;  %v4651_v6 = vpop.f32.mrf.mxu0  ;;  %v3568_v7 = vadd.f32 %v5708_v15, %v3497_v0  ;;  %v2364_v8 = vpop.f32.mrf.mxu1  ;;  %v3655_v5 = vmax.f32 %v3591_v53, 0.0 }
 0x194   : > { %2670 = vst [vmem:[#allocation2 + $0x2b8] sm:$0xff] %v4651_v6  ;;  %2795 = vst [vmem:[#allocation2 + $0x6a0] sm:$0xff] %v2364_v8  ;;  %v3592_v6 = vadd.f32 %v5708_v15, %v3521_v54  ;;  %v2931_v8 = vld [vmem:[#allocation2 + $0x5c0] ss:$4 sm:$0xff] }
 0x195   : > { %v1734_v13 = vpop.f32.mrf.mxu0  ;;  %v3632_v16 = vmax.f32 %v3568_v7, 0.0  ;;  %v2879_v17 = vld [vmem:[#allocation2 + $0x280] ss:$4 sm:$0xff]  ;;  %v3007_v18 = vld [vmem:[#allocation2 + $0x281] ss:$4 sm:$0xff]  ;;  %v4843_v21 = vpop.f32.mrf.mxu1 }
 0x196   : > { %2669 = vst [vmem:[#allocation2 + $0x2b0] sm:$0xff] %v1734_v13  ;;  %v3135_v22 = vld [vmem:[#allocation2 + $0x282] ss:$4 sm:$0xff]  ;;  %v3263_v23 = vld [vmem:[#allocation2 + $0x283] ss:$4 sm:$0xff]  ;;  %v3370_v24 = vmax.f32 %v2879_v17, %v3007_v18  ;;  %2798 = vst [vmem:[#allocation2 + $0x6b8] sm:$0xff] %v4843_v21  ;;  %v3523_v17 = vmax.f32 %v3395_v2, %v3459_v3 }
 0x197   : > { %3748 = vxpose.xlu0.b32.cont [8/16] %v3652_v14, 128  ;;  %3712 = vxpose.xlu1.b32.cont [4/16] %v3632_v16, 128  ;;  %v4654_v26 = vpop.f32.mrf.mxu0  ;;  %v3434_v27 = vmax.f32 %v3135_v22, %v3263_v23  ;;  %v2374_v28 = vpop.f32.mrf.mxu1  ;;  %v3593_v16 = vadd.f32 %v5708_v15, %v3522_v1  ;;  %v2933_v18 = vld [vmem:[#allocation2 + $0x5e0] ss:$4 sm:$0xff]  ;;  %v3656_v22 = vmax.f32 %v3592_v6, 0.0 }
 0x198   : > { %2672 = vst [vmem:[#allocation2 + $0x2c8] sm:$0xff] %v4654_v26  ;;  %2797 = vst [vmem:[#allocation2 + $0x6b0] sm:$0xff] %v2374_v28  ;;  %v3396_v26 = vmax.f32 %v2931_v8, %v3059_v10  ;;  %v3594_v37 = vadd.f32 %v5708_v15, %v3523_v17 }
 0x199   : > { %v1744_v32 = vpop.f32.mrf.mxu0  ;;  %v3498_v33 = vmax.f32 %v3370_v24, %v3434_v27  ;;  %v4846_v40 = vpop.f32.mrf.mxu1  ;;  %v3460_v27 = vmax.f32 %v3187_v11, %v3315_v55  ;;  %v3657_v36 = vmax.f32 %v3593_v16, 0.0 }
 0x19a   : > { %2671 = vst [vmem:[#allocation2 + $0x2c0] sm:$0xff] %v1744_v32  ;;  %2800 = vst [vmem:[#allocation2 + $0x6c8] sm:$0xff] %v4846_v40  ;;  %v3317_v32 = vld [vmem:[#allocation2 + $0x5e3] ss:$4 sm:$0xff]  ;;  %v3658_v48 = vmax.f32 %v3594_v37, 0.0 }
 0x19b   : > { %3749 = vxpose.xlu0.b32.cont [9/16] %v3653_v29, 128  ;;  %v4657_v41 = vpop.f32.mrf.mxu0  ;;  %v3569_v42 = vadd.f32 %v5708_v15, %v3498_v33  ;;  %v2384_v44 = vpop.f32.mrf.mxu1  ;;  %v3524_v40 = vmax.f32 %v3396_v26, %v3460_v27 }
 0x19c   : > { %2674 = vst [vmem:[#allocation2 + $0x2d8] sm:$0xff] %v4657_v41  ;;  %2799 = vst [vmem:[#allocation2 + $0x6c0] sm:$0xff] %v2384_v44  ;;  %v3397_v41 = vmax.f32 %v2933_v18, %v3061_v19 }
 0x19d   : > { %v1754_v50 = vpop.f32.mrf.mxu0  ;;  %v3633_v52 = vmax.f32 %v3569_v42, 0.0  ;;  %v2881_v56 = vld [vmem:[#allocation2 + $0x2a0] ss:$4 sm:$0xff]  ;;  %v3009_v57 = vld [vmem:[#allocation2 + $0x2a1] ss:$4 sm:$0xff]  ;;  %v4849_v58 = vpop.f32.mrf.mxu1  ;;  %v3461_v42 = vmax.f32 %v3189_v20, %v3317_v32 }
 0x19e   : > { %2673 = vst [vmem:[#allocation2 + $0x2d0] sm:$0xff] %v1754_v50  ;;  %v3137_v59 = vld [vmem:[#allocation2 + $0x2a2] ss:$4 sm:$0xff]  ;;  %v3265_v60 = vld [vmem:[#allocation2 + $0x2a3] ss:$4 sm:$0xff]  ;;  %v3371_v61 = vmax.f32 %v2881_v56, %v3009_v57  ;;  %2802 = vst [vmem:[#allocation2 + $0x6d8] sm:$0xff] %v4849_v58  ;;  %v3595_v50 = vadd.f32 %v5708_v15, %v3524_v40 }
 0x19f   : > { %3750 = vxpose.xlu0.b32.cont [10/16] %v3654_v51, 128  ;;  %3713 = vxpose.xlu1.b32.cont [5/16] %v3633_v52, 128  ;;  %v4660_v62 = vpop.f32.mrf.mxu0  ;;  %v3435_v63 = vmax.f32 %v3137_v59, %v3265_v60  ;;  %v2394_v0 = vpop.f32.mrf.mxu1  ;;  %v3525_v51 = vmax.f32 %v3397_v41, %v3461_v42 }
 0x1a0   : > { %2676 = vst [vmem:[#allocation2 + $0x2e8] sm:$0xff] %v4660_v62  ;;  %2801 = vst [vmem:[#allocation2 + $0x6d0] sm:$0xff] %v2394_v0 }
 0x1a1   : > { %v1764_v4 = vpop.f32.mrf.mxu0  ;;  %v3499_v7 = vmax.f32 %v3371_v61, %v3435_v63  ;;  %v4852_v9 = vpop.f32.mrf.mxu1  ;;  %v3659_v63 = vmax.f32 %v3595_v50, 0.0  ;;  %v3596_v0 = vadd.f32 %v5708_v15, %v3525_v51 }
 0x1a2   : > { %2675 = vst [vmem:[#allocation2 + $0x2e0] sm:$0xff] %v1764_v4  ;;  %2804 = vst [vmem:[#allocation2 + $0x6e8] sm:$0xff] %v4852_v9 }
 0x1a3   : > { %3751 = vxpose.xlu0.b32.cont [11/16] %v3655_v5, 128  ;;  %v4663_v12 = vpop.f32.mrf.mxu0  ;;  %v3570_v13 = vadd.f32 %v5708_v15, %v3499_v7  ;;  %v2404_v14 = vpop.f32.mrf.mxu1  ;;  %v3660_v7 = vmax.f32 %v3596_v0, 0.0 }
 0x1a4   : > { %2678 = vst [vmem:[#allocation2 + $0x2f8] sm:$0xff] %v4663_v12  ;;  %2803 = vst [vmem:[#allocation2 + $0x6e0] sm:$0xff] %v2404_v14 }
 0x1a5   : > { %v1774_v21 = vpop.f32.mrf.mxu0  ;;  %v3634_v23 = vmax.f32 %v3570_v13, 0.0  ;;  %v2883_v24 = vld [vmem:[#allocation2 + $0x2c0] ss:$4 sm:$0xff]  ;;  %v3011_v25 = vld [vmem:[#allocation2 + $0x2c1] ss:$4 sm:$0xff]  ;;  %v4855_v28 = vpop.f32.mrf.mxu1 }
 0x1a6   : > { %2677 = vst [vmem:[#allocation2 + $0x2f0] sm:$0xff] %v1774_v21  ;;  %v3139_v29 = vld [vmem:[#allocation2 + $0x2c2] ss:$4 sm:$0xff]  ;;  %v3267_v30 = vld [vmem:[#allocation2 + $0x2c3] ss:$4 sm:$0xff]  ;;  %v3372_v31 = vmax.f32 %v2883_v24, %v3011_v25  ;;  %2806 = vst [vmem:[#allocation2 + $0x6f8] sm:$0xff] %v4855_v28 }
 0x1a7   : > { %3752 = vxpose.xlu0.b32.cont [12/16] %v3656_v22, 128  ;;  %3714 = vxpose.xlu1.b32.cont [6/16] %v3634_v23, 128  ;;  %v4666_v33 = vpop.f32.mrf.mxu0  ;;  %v3436_v34 = vmax.f32 %v3139_v29, %v3267_v30  ;;  %v2414_v35 = vpop.f32.mrf.mxu1 }
 0x1a8   : > { %2680 = vst [vmem:[#allocation2 + $0x308] sm:$0xff] %v4666_v33  ;;  %2805 = vst [vmem:[#allocation2 + $0x6f0] sm:$0xff] %v2414_v35 }
 0x1a9   : > { %v1784_v38 = vpop.f32.mrf.mxu0  ;;  %v3500_v39 = vmax.f32 %v3372_v31, %v3436_v34  ;;  %v4858_v43 = vpop.f32.mrf.mxu1 }
 0x1aa   : > { %2679 = vst [vmem:[#allocation2 + $0x300] sm:$0xff] %v1784_v38  ;;  %2808 = vst [vmem:[#allocation2 + $0x708] sm:$0xff] %v4858_v43 }
 0x1ab   : > { %3753 = vxpose.xlu0.b32.cont [13/16] %v3657_v36, 128  ;;  %v4669_v44 = vpop.f32.mrf.mxu0  ;;  %v3571_v45 = vadd.f32 %v5708_v15, %v3500_v39  ;;  %v2424_v46 = vpop.f32.mrf.mxu1 }
 0x1ac   : > { %2682 = vst [vmem:[#allocation2 + $0x318] sm:$0xff] %v4669_v44  ;;  %2807 = vst [vmem:[#allocation2 + $0x700] sm:$0xff] %v2424_v46 }
 0x1ad   : > { %v1794_v47 = vpop.f32.mrf.mxu0  ;;  %v3635_v49 = vmax.f32 %v3571_v45, 0.0  ;;  %v2885_v52 = vld [vmem:[#allocation2 + $0x2e0] ss:$4 sm:$0xff]  ;;  %v3013_v53 = vld [vmem:[#allocation2 + $0x2e1] ss:$4 sm:$0xff]  ;;  %v4861_v54 = vpop.f32.mrf.mxu1 }
 0x1ae   : > { %2681 = vst [vmem:[#allocation2 + $0x310] sm:$0xff] %v1794_v47  ;;  %v3141_v56 = vld [vmem:[#allocation2 + $0x2e2] ss:$4 sm:$0xff]  ;;  %v3269_v57 = vld [vmem:[#allocation2 + $0x2e3] ss:$4 sm:$0xff]  ;;  %v3373_v58 = vmax.f32 %v2885_v52, %v3013_v53  ;;  %2810 = vst [vmem:[#allocation2 + $0x718] sm:$0xff] %v4861_v54 }
 0x1af   : > { %3754 = vxpose.xlu0.b32.cont [14/16] %v3658_v48, 128  ;;  %3715 = vxpose.xlu1.b32.cont [7/16] %v3635_v49, 128  ;;  %v4672_v59 = vpop.f32.mrf.mxu0  ;;  %v3437_v60 = vmax.f32 %v3141_v56, %v3269_v57  ;;  %v2434_v61 = vpop.f32.mrf.mxu1 }
 0x1b0   : > { %2684 = vst [vmem:[#allocation2 + $0x328] sm:$0xff] %v4672_v59  ;;  %2809 = vst [vmem:[#allocation2 + $0x710] sm:$0xff] %v2434_v61 }
 0x1b1   : > { %v1804_v62 = vpop.f32.mrf.mxu0  ;;  %v3501_v1 = vmax.f32 %v3373_v58, %v3437_v60  ;;  %v4864_v2 = vpop.f32.mrf.mxu1 }
 0x1b2   : > { %2683 = vst [vmem:[#allocation2 + $0x320] sm:$0xff] %v1804_v62  ;;  %2812 = vst [vmem:[#allocation2 + $0x728] sm:$0xff] %v4864_v2 }
 0x1b3   : > { %3755 = vxpose.xlu0.b32.cont [15/16] %v3659_v63, 128  ;;  %v4675_v3 = vpop.f32.mrf.mxu0  ;;  %v3572_v4 = vadd.f32 %v5708_v15, %v3501_v1  ;;  %v2444_v5 = vpop.f32.mrf.mxu1 }
 0x1b4   : > { %2686 = vst [vmem:[#allocation2 + $0x338] sm:$0xff] %v4675_v3  ;;  %2811 = vst [vmem:[#allocation2 + $0x720] sm:$0xff] %v2444_v5 }
 0x1b5   : > { %v1814_v6 = vpop.f32.mrf.mxu0  ;;  %v3636_v8 = vmax.f32 %v3572_v4, 0.0  ;;  %v2887_v9 = vld [vmem:[#allocation2 + $0x300] ss:$4 sm:$0xff]  ;;  %v3015_v10 = vld [vmem:[#allocation2 + $0x301] ss:$4 sm:$0xff]  ;;  %v4867_v11 = vpop.f32.mrf.mxu1 }
 0x1b6   : > { %2685 = vst [vmem:[#allocation2 + $0x330] sm:$0xff] %v1814_v6  ;;  %v3143_v55 = vld [vmem:[#allocation2 + $0x302] ss:$4 sm:$0xff]  ;;  %v3271_v12 = vld [vmem:[#allocation2 + $0x303] ss:$4 sm:$0xff]  ;;  %v3374_v13 = vmax.f32 %v2887_v9, %v3015_v10  ;;  %2814 = vst [vmem:[#allocation2 + $0x738] sm:$0xff] %v4867_v11 }
 0x1b7   : > { %3756 = vxpose.xlu0.b32.end [16/16] %v3660_v7, 128  ;;  %3716 = vxpose.xlu1.b32.cont [8/16] %v3636_v8, 128  ;;  %v4678_v14 = vpop.f32.mrf.mxu0  ;;  %v3438_v16 = vmax.f32 %v3143_v55, %v3271_v12  ;;  %v2454_v17 = vpop.f32.mrf.mxu1 }
 0x1b8   : > { %2688 = vst [vmem:[#allocation2 + $0x348] sm:$0xff] %v4678_v14  ;;  %2813 = vst [vmem:[#allocation2 + $0x730] sm:$0xff] %v2454_v17  ;;  %v3693_v18 = vpop.trf.xlu0 }
 0x1b9   : > { %v1824_v19 = vpop.f32.mrf.mxu0  ;;  %v3502_v20 = vmax.f32 %v3374_v13, %v3438_v16  ;;  %v4870_v21 = vpop.f32.mrf.mxu1  ;;  %3805 = vst [vmem:[%s5736_s11] sm:$0xff] %v3693_v18 }
 0x1ba   : > { %2687 = vst [vmem:[#allocation2 + $0x340] sm:$0xff] %v1824_v19  ;;  %2816 = vst [vmem:[#allocation2 + $0x748] sm:$0xff] %v4870_v21 }
 0x1bb   : > { %v4681_v22 = vpop.f32.mrf.mxu0  ;;  %v3573_v23 = vadd.f32 %v5708_v15, %v3502_v20  ;;  %v2464_v24 = vpop.f32.mrf.mxu1 }
 0x1bc   : > { %2690 = vst [vmem:[#allocation2 + $0x358] sm:$0xff] %v4681_v22  ;;  %2815 = vst [vmem:[#allocation2 + $0x740] sm:$0xff] %v2464_v24  ;;  %v3694_v25 = vpop.trf.xlu0 }
 0x1bd   : > { %v1834_v26 = vpop.f32.mrf.mxu0  ;;  %v3637_v27 = vmax.f32 %v3573_v23, 0.0  ;;  %v2889_v28 = vld [vmem:[#allocation2 + $0x320] ss:$4 sm:$0xff]  ;;  %v3017_v29 = vld [vmem:[#allocation2 + $0x321] ss:$4 sm:$0xff]  ;;  %v4873_v30 = vpop.f32.mrf.mxu1  ;;  %3809 = vst [vmem:[%s5736_s11 + $0x20] sm:$0xff] %v3694_v25 }
 0x1be   : > { %2689 = vst [vmem:[#allocation2 + $0x350] sm:$0xff] %v1834_v26  ;;  %v3145_v31 = vld [vmem:[#allocation2 + $0x322] ss:$4 sm:$0xff]  ;;  %v3273_v32 = vld [vmem:[#allocation2 + $0x323] ss:$4 sm:$0xff]  ;;  %v3375_v33 = vmax.f32 %v2889_v28, %v3017_v29  ;;  %2818 = vst [vmem:[#allocation2 + $0x758] sm:$0xff] %v4873_v30 }
 0x1bf   : > { %3717 = vxpose.xlu1.b32.cont [9/16] %v3637_v27, 128  ;;  %v4684_v34 = vpop.f32.mrf.mxu0  ;;  %v3439_v35 = vmax.f32 %v3145_v31, %v3273_v32  ;;  %v2474_v36 = vpop.f32.mrf.mxu1 }
 0x1c0   : > { %2692 = vst [vmem:[#allocation2 + $0x368] sm:$0xff] %v4684_v34  ;;  %2817 = vst [vmem:[#allocation2 + $0x750] sm:$0xff] %v2474_v36  ;;  %v3695_v37 = vpop.trf.xlu0 }
 0x1c1   : > { %v1844_v38 = vpop.f32.mrf.mxu0  ;;  %v3503_v39 = vmax.f32 %v3375_v33, %v3439_v35  ;;  %v4876_v40 = vpop.f32.mrf.mxu1  ;;  %3813 = vst [vmem:[%s5736_s11 + $0x40] sm:$0xff] %v3695_v37 }
 0x1c2   : > { %2691 = vst [vmem:[#allocation2 + $0x360] sm:$0xff] %v1844_v38  ;;  %2820 = vst [vmem:[#allocation2 + $0x768] sm:$0xff] %v4876_v40 }
 0x1c3   : > { %v4687_v41 = vpop.f32.mrf.mxu0  ;;  %v3574_v42 = vadd.f32 %v5708_v15, %v3503_v39  ;;  %v2484_v43 = vpop.f32.mrf.mxu1 }
 0x1c4   : > { %2694 = vst [vmem:[#allocation2 + $0x378] sm:$0xff] %v4687_v41  ;;  %2819 = vst [vmem:[#allocation2 + $0x760] sm:$0xff] %v2484_v43  ;;  %v3696_v44 = vpop.trf.xlu0 }
 0x1c5   : > { %v1854_v45 = vpop.f32.mrf.mxu0  ;;  %v3638_v46 = vmax.f32 %v3574_v42, 0.0  ;;  %v2891_v47 = vld [vmem:[#allocation2 + $0x340] ss:$4 sm:$0xff]  ;;  %v3019_v48 = vld [vmem:[#allocation2 + $0x341] ss:$4 sm:$0xff]  ;;  %v4879_v49 = vpop.f32.mrf.mxu1  ;;  %3817 = vst [vmem:[%s5736_s11 + $0x60] sm:$0xff] %v3696_v44 }
 0x1c6   : > { %2693 = vst [vmem:[#allocation2 + $0x370] sm:$0xff] %v1854_v45  ;;  %v3147_v50 = vld [vmem:[#allocation2 + $0x342] ss:$4 sm:$0xff]  ;;  %v3275_v51 = vld [vmem:[#allocation2 + $0x343] ss:$4 sm:$0xff]  ;;  %v3376_v52 = vmax.f32 %v2891_v47, %v3019_v48  ;;  %2822 = vst [vmem:[#allocation2 + $0x778] sm:$0xff] %v4879_v49 }
 0x1c7   : > { %3718 = vxpose.xlu1.b32.cont [10/16] %v3638_v46, 128  ;;  %v4690_v53 = vpop.f32.mrf.mxu0  ;;  %v3440_v54 = vmax.f32 %v3147_v50, %v3275_v51  ;;  %v2494_v56 = vpop.f32.mrf.mxu1 }
 0x1c8   : > { %2696 = vst [vmem:[#allocation2 + $0x388] sm:$0xff] %v4690_v53  ;;  %2821 = vst [vmem:[#allocation2 + $0x770] sm:$0xff] %v2494_v56  ;;  %v3697_v57 = vpop.trf.xlu0 }
 0x1c9   : > { %v1864_v58 = vpop.f32.mrf.mxu0  ;;  %v3504_v59 = vmax.f32 %v3376_v52, %v3440_v54  ;;  %v4882_v60 = vpop.f32.mrf.mxu1  ;;  %3821 = vst [vmem:[%s5736_s11 + $0x80] sm:$0xff] %v3697_v57 }
 0x1ca   : > { %2695 = vst [vmem:[#allocation2 + $0x380] sm:$0xff] %v1864_v58  ;;  %2824 = vst [vmem:[#allocation2 + $0x788] sm:$0xff] %v4882_v60 }
 0x1cb   : > { %v4693_v61 = vpop.f32.mrf.mxu0  ;;  %v3575_v62 = vadd.f32 %v5708_v15, %v3504_v59  ;;  %v2504_v63 = vpop.f32.mrf.mxu1 }
 0x1cc   : > { %2698 = vst [vmem:[#allocation2 + $0x398] sm:$0xff] %v4693_v61  ;;  %2823 = vst [vmem:[#allocation2 + $0x780] sm:$0xff] %v2504_v63  ;;  %v3698_v0 = vpop.trf.xlu0 }
 0x1cd   : > { %v1874_v1 = vpop.f32.mrf.mxu0  ;;  %v3639_v2 = vmax.f32 %v3575_v62, 0.0  ;;  %v2893_v3 = vld [vmem:[#allocation2 + $0x360] ss:$4 sm:$0xff]  ;;  %v3021_v4 = vld [vmem:[#allocation2 + $0x361] ss:$4 sm:$0xff]  ;;  %v4885_v5 = vpop.f32.mrf.mxu1  ;;  %3825 = vst [vmem:[%s5736_s11 + $0xa0] sm:$0xff] %v3698_v0 }
 0x1ce   : > { %2697 = vst [vmem:[#allocation2 + $0x390] sm:$0xff] %v1874_v1  ;;  %v3149_v6 = vld [vmem:[#allocation2 + $0x362] ss:$4 sm:$0xff]  ;;  %v3277_v7 = vld [vmem:[#allocation2 + $0x363] ss:$4 sm:$0xff]  ;;  %v3377_v8 = vmax.f32 %v2893_v3, %v3021_v4  ;;  %2826 = vst [vmem:[#allocation2 + $0x798] sm:$0xff] %v4885_v5 }
 0x1cf   : > { %3719 = vxpose.xlu1.b32.cont [11/16] %v3639_v2, 128  ;;  %v4696_v9 = vpop.f32.mrf.mxu0  ;;  %v3441_v10 = vmax.f32 %v3149_v6, %v3277_v7  ;;  %v2514_v11 = vpop.f32.mrf.mxu1  ;;  %v3063_v7 = vld [vmem:[#allocation2 + $0x601] ss:$4 sm:$0xff] }
 0x1d0   : > { %2700 = vst [vmem:[#allocation2 + $0x3a8] sm:$0xff] %v4696_v9  ;;  %2825 = vst [vmem:[#allocation2 + $0x790] sm:$0xff] %v2514_v11  ;;  %v3699_v55 = vpop.trf.xlu0  ;;  %v3319_v9 = vld [vmem:[#allocation2 + $0x603] ss:$4 sm:$0xff] }
 0x1d1   : > { %v1884_v12 = vpop.f32.mrf.mxu0  ;;  %v3505_v13 = vmax.f32 %v3377_v8, %v3441_v10  ;;  %v4888_v14 = vpop.f32.mrf.mxu1  ;;  %3829 = vst [vmem:[%s5736_s11 + $0xc0] sm:$0xff] %v3699_v55  ;;  %v3191_v8 = vld [vmem:[#allocation2 + $0x602] ss:$4 sm:$0xff]  ;;  %v5760_v10 = vld [vmem:[%s5889_s2] ss:$0 sm:$0xff] }
 0x1d2   : > { %2699 = vst [vmem:[#allocation2 + $0x3a0] sm:$0xff] %v1884_v12  ;;  %2828 = vst [vmem:[#allocation2 + $0x7a8] sm:$0xff] %v4888_v14  ;;  %v3462_v12 = vmax.f32 %v3191_v8, %v3319_v9  ;;  %v3065_v14 = vld [vmem:[#allocation2 + $0x621] ss:$4 sm:$0xff]  ;;  %v2947_v8 = vld [vmem:[#allocation2 + $0x6c0] ss:$4 sm:$0xff] }
 0x1d3   : > { %v4699_v16 = vpop.f32.mrf.mxu0  ;;  %v3576_v17 = vadd.f32 %v5708_v15, %v3505_v13  ;;  %v2524_v18 = vpop.f32.mrf.mxu1  ;;  %v2937_v13 = vld [vmem:[#allocation2 + $0x620] ss:$4 sm:$0xff]  ;;  %v3075_v9 = vld [vmem:[#allocation2 + $0x6c1] ss:$4 sm:$0xff] }
 0x1d4   : > { %2702 = vst [vmem:[#allocation2 + $0x3b8] sm:$0xff] %v4699_v16  ;;  %2827 = vst [vmem:[#allocation2 + $0x7a0] sm:$0xff] %v2524_v18  ;;  %v3700_v19 = vpop.trf.xlu0  ;;  %v3193_v16 = vld [vmem:[#allocation2 + $0x622] ss:$4 sm:$0xff] }
 0x1d5   : > { %v1894_v20 = vpop.f32.mrf.mxu0  ;;  %v3640_v21 = vmax.f32 %v3576_v17, 0.0  ;;  %v2895_v22 = vld [vmem:[#allocation2 + $0x380] ss:$4 sm:$0xff]  ;;  %v3023_v23 = vld [vmem:[#allocation2 + $0x381] ss:$4 sm:$0xff]  ;;  %v4891_v24 = vpop.f32.mrf.mxu1  ;;  %3833 = vst [vmem:[%s5736_s11 + $0xe0] sm:$0xff] %v3700_v19 }
 0x1d6   : > { %2701 = vst [vmem:[#allocation2 + $0x3b0] sm:$0xff] %v1894_v20  ;;  %v3151_v25 = vld [vmem:[#allocation2 + $0x382] ss:$4 sm:$0xff]  ;;  %v3279_v26 = vld [vmem:[#allocation2 + $0x383] ss:$4 sm:$0xff]  ;;  %v3378_v27 = vmax.f32 %v2895_v22, %v3023_v23  ;;  %2830 = vst [vmem:[#allocation2 + $0x7b8] sm:$0xff] %v4891_v24 }
 0x1d7   : > { %3720 = vxpose.xlu1.b32.cont [12/16] %v3640_v21, 128  ;;  %v4702_v28 = vpop.f32.mrf.mxu0  ;;  %v3442_v29 = vmax.f32 %v3151_v25, %v3279_v26  ;;  %v2534_v30 = vpop.f32.mrf.mxu1  ;;  %v3321_v24 = vld [vmem:[#allocation2 + $0x623] ss:$4 sm:$0xff] }
 0x1d8   : > { %2704 = vst [vmem:[#allocation2 + $0x3c8] sm:$0xff] %v4702_v28  ;;  %2829 = vst [vmem:[#allocation2 + $0x7b0] sm:$0xff] %v2534_v30  ;;  %v3701_v31 = vpop.trf.xlu0  ;;  %v3463_v30 = vmax.f32 %v3193_v16, %v3321_v24  ;;  %v2951_v24 = vld [vmem:[#allocation2 + $0x700] ss:$4 sm:$0xff] }
 0x1d9   : > { %v1904_v32 = vpop.f32.mrf.mxu0  ;;  %v3506_v33 = vmax.f32 %v3378_v27, %v3442_v29  ;;  %v4894_v34 = vpop.f32.mrf.mxu1  ;;  %3837 = vst [vmem:[%s5736_s11 + $0x100] sm:$0xff] %v3701_v31  ;;  %v3399_v29 = vmax.f32 %v2937_v13, %v3065_v14  ;;  %v2939_v31 = vld [vmem:[#allocation2 + $0x640] ss:$4 sm:$0xff] }
 0x1da   : > { %2703 = vst [vmem:[#allocation2 + $0x3c0] sm:$0xff] %v1904_v32  ;;  %2832 = vst [vmem:[#allocation2 + $0x7c8] sm:$0xff] %v4894_v34  ;;  %v3067_v32 = vld [vmem:[#allocation2 + $0x641] ss:$4 sm:$0xff]  ;;  %v3323_v34 = vld [vmem:[#allocation2 + $0x643] ss:$4 sm:$0xff] }
 0x1db   : > { %v4705_v35 = vpop.f32.mrf.mxu0  ;;  %v3577_v36 = vadd.f32 %v5708_v15, %v3506_v33  ;;  %v2544_v37 = vpop.f32.mrf.mxu1  ;;  %v3195_v33 = vld [vmem:[#allocation2 + $0x642] ss:$4 sm:$0xff] }
 0x1dc   : > { %2706 = vst [vmem:[#allocation2 + $0x3d8] sm:$0xff] %v4705_v35  ;;  %2831 = vst [vmem:[#allocation2 + $0x7c0] sm:$0xff] %v2544_v37  ;;  %v3702_v38 = vpop.trf.xlu0 }
 0x1dd   : > { %v1914_v39 = vpop.f32.mrf.mxu0  ;;  %v3641_v40 = vmax.f32 %v3577_v36, 0.0  ;;  %v2897_v41 = vld [vmem:[#allocation2 + $0x3a0] ss:$4 sm:$0xff]  ;;  %v3025_v42 = vld [vmem:[#allocation2 + $0x3a1] ss:$4 sm:$0xff]  ;;  %v4897_v43 = vpop.f32.mrf.mxu1  ;;  %3841 = vst [vmem:[%s5736_s11 + $0x120] sm:$0xff] %v3702_v38 }
 0x1de   : > { %2705 = vst [vmem:[#allocation2 + $0x3d0] sm:$0xff] %v1914_v39  ;;  %v3153_v44 = vld [vmem:[#allocation2 + $0x3a2] ss:$4 sm:$0xff]  ;;  %v3281_v45 = vld [vmem:[#allocation2 + $0x3a3] ss:$4 sm:$0xff]  ;;  %v3379_v46 = vmax.f32 %v2897_v41, %v3025_v42  ;;  %2834 = vst [vmem:[#allocation2 + $0x7d8] sm:$0xff] %v4897_v43  ;;  %v3527_v39 = vmax.f32 %v3399_v29, %v3463_v30  ;;  %v3464_v41 = vmax.f32 %v3195_v33, %v3323_v34 }
 0x1df   : > { %3721 = vxpose.xlu1.b32.cont [13/16] %v3641_v40, 128  ;;  %v4708_v47 = vpop.f32.mrf.mxu0  ;;  %v3443_v48 = vmax.f32 %v3153_v44, %v3281_v45  ;;  %v2554_v49 = vpop.f32.mrf.mxu1  ;;  %v3400_v40 = vmax.f32 %v2939_v31, %v3067_v32  ;;  %v2941_v42 = vld [vmem:[#allocation2 + $0x660] ss:$4 sm:$0xff]  ;;  %v3069_v43 = vld [vmem:[#allocation2 + $0x661] ss:$4 sm:$0xff]  ;;  %v3197_v44 = vld [vmem:[#allocation2 + $0x662] ss:$4 sm:$0xff] }
 0x1e0   : > { %2708 = vst [vmem:[#allocation2 + $0x3e8] sm:$0xff] %v4708_v47  ;;  %2833 = vst [vmem:[#allocation2 + $0x7d0] sm:$0xff] %v2554_v49  ;;  %v3703_v50 = vpop.trf.xlu0  ;;  %v3325_v45 = vld [vmem:[#allocation2 + $0x663] ss:$4 sm:$0xff]  ;;  %v2943_v47 = vld [vmem:[#allocation2 + $0x680] ss:$4 sm:$0xff]  ;;  %v3598_v49 = vadd.f32 %v5760_v10, %v3527_v39 }
 0x1e1   : > { %v1924_v51 = vpop.f32.mrf.mxu0  ;;  %v3507_v52 = vmax.f32 %v3379_v46, %v3443_v48  ;;  %v4900_v53 = vpop.f32.mrf.mxu1  ;;  %3845 = vst [vmem:[%s5736_s11 + $0x140] sm:$0xff] %v3703_v50  ;;  %v3528_v50 = vmax.f32 %v3400_v40, %v3464_v41  ;;  %v3079_v30 = vld [vmem:[#allocation2 + $0x701] ss:$4 sm:$0xff]  ;;  %v3207_v31 = vld [vmem:[#allocation2 + $0x702] ss:$4 sm:$0xff] }
 0x1e2   : > { %2707 = vst [vmem:[#allocation2 + $0x3e0] sm:$0xff] %v1924_v51  ;;  %2836 = vst [vmem:[#allocation2 + $0x7e8] sm:$0xff] %v4900_v53  ;;  %v3401_v51 = vmax.f32 %v2941_v42, %v3069_v43  ;;  %v3071_v53 = vld [vmem:[#allocation2 + $0x681] ss:$4 sm:$0xff]  ;;  %v3335_v32 = vld [vmem:[#allocation2 + $0x703] ss:$4 sm:$0xff]  ;;  %v3406_v33 = vmax.f32 %v2951_v24, %v3079_v30 }
 0x1e3   : > { %v4711_v54 = vpop.f32.mrf.mxu0  ;;  %v3578_v56 = vadd.f32 %v5708_v15, %v3507_v52  ;;  %v2564_v57 = vpop.f32.mrf.mxu1  ;;  %v2935_v15 = vld [vmem:[#allocation2 + $0x600] ss:$4 sm:$0xff]  ;;  %v3465_v52 = vmax.f32 %v3197_v44, %v3325_v45  ;;  %v3470_v34 = vmax.f32 %v3207_v31, %v3335_v32  ;;  %v3081_v40 = vld [vmem:[#allocation2 + $0x721] ss:$4 sm:$0xff]  ;;  %v3209_v41 = vld [vmem:[#allocation2 + $0x722] ss:$4 sm:$0xff] }
 0x1e4   : > { %2710 = vst [vmem:[#allocation2 + $0x3f8] sm:$0xff] %v4711_v54  ;;  %2835 = vst [vmem:[#allocation2 + $0x7e0] sm:$0xff] %v2564_v57  ;;  %v3704_v58 = vpop.trf.xlu0  ;;  %v3398_v55 = vmax.f32 %v2935_v15, %v3063_v7  ;;  %v3199_v54 = vld [vmem:[#allocation2 + $0x682] ss:$4 sm:$0xff]  ;;  %v3402_v57 = vmax.f32 %v2943_v47, %v3071_v53  ;;  %v2953_v39 = vld [vmem:[#allocation2 + $0x720] ss:$4 sm:$0xff] }
 0x1e5   : > { %v1934_v59 = vpop.f32.mrf.mxu0  ;;  %v3642_v60 = vmax.f32 %v3578_v56, 0.0  ;;  %v2899_v61 = vld [vmem:[#allocation2 + $0x3c0] ss:$4 sm:$0xff]  ;;  %v3027_v62 = vld [vmem:[#allocation2 + $0x3c1] ss:$4 sm:$0xff]  ;;  %v4903_v63 = vpop.f32.mrf.mxu1  ;;  %3849 = vst [vmem:[%s5736_s11 + $0x160] sm:$0xff] %v3704_v58  ;;  %v3534_v43 = vmax.f32 %v3406_v33, %v3470_v34  ;;  %v3407_v47 = vmax.f32 %v2953_v39, %v3081_v40 }
 0x1e6   : > { %2709 = vst [vmem:[#allocation2 + $0x3f0] sm:$0xff] %v1934_v59  ;;  %v3155_v0 = vld [vmem:[#allocation2 + $0x3c2] ss:$4 sm:$0xff]  ;;  %v3283_v1 = vld [vmem:[#allocation2 + $0x3c3] ss:$4 sm:$0xff]  ;;  %v3380_v2 = vmax.f32 %v2899_v61, %v3027_v62  ;;  %2838 = vst [vmem:[#allocation2 + $0x7f8] sm:$0xff] %v4903_v63  ;;  %v3526_v26 = vmax.f32 %v3398_v55, %v3462_v12  ;;  %v3599_v61 = vadd.f32 %v5760_v10, %v3528_v50 }
 0x1e7   : > { %3722 = vxpose.xlu1.b32.cont [14/16] %v3642_v60, 128  ;;  %v3444_v3 = vmax.f32 %v3155_v0, %v3283_v1  ;;  %v2574_v4 = vpop.f32.mrf.mxu1  ;;  %v3327_v56 = vld [vmem:[#allocation2 + $0x683] ss:$4 sm:$0xff]  ;;  %v3662_v60 = vmax.f32 %v3598_v49, 0.0  ;;  %v3529_v62 = vmax.f32 %v3401_v51, %v3465_v52  ;;  %v2945_v63 = vld [vmem:[#allocation2 + $0x6a0] ss:$4 sm:$0xff]  ;;  %v3605_v53 = vadd.f32 %v5760_v10, %v3534_v43 }
 0x1e8   : > { %2837 = vst [vmem:[#allocation2 + $0x7f0] sm:$0xff] %v2574_v4  ;;  %v3705_v5 = vpop.trf.xlu0  ;;  %v3597_v36 = vadd.f32 %v5760_v10, %v3526_v26  ;;  %v3466_v58 = vmax.f32 %v3199_v54, %v3327_v56  ;;  %v3073_v0 = vld [vmem:[#allocation2 + $0x6a1] ss:$4 sm:$0xff]  ;;  %v3201_v1 = vld [vmem:[#allocation2 + $0x6a2] ss:$4 sm:$0xff]  ;;  %v3663_v15 = vmax.f32 %v3599_v61, 0.0 }
 0x1e9   : > { %v3508_v6 = vmax.f32 %v3380_v2, %v3444_v3  ;;  %3853 = vst [vmem:[%s5736_s11 + $0x180] sm:$0xff] %v3705_v5  ;;  %v3329_v2 = vld [vmem:[#allocation2 + $0x6a3] ss:$4 sm:$0xff]  ;;  %v3600_v5 = vadd.f32 %v5760_v10, %v3529_v62  ;;  %v2955_v49 = vld [vmem:[#allocation2 + $0x740] ss:$4 sm:$0xff] }
 0x1ea   : > { %v3661_v46 = vmax.f32 %v3597_v36, 0.0  ;;  %v3530_v3 = vmax.f32 %v3402_v57, %v3466_v58  ;;  %v3467_v7 = vmax.f32 %v3201_v1, %v3329_v2  ;;  %v3331_v55 = vld [vmem:[#allocation2 + $0x6c3] ss:$4 sm:$0xff]  ;;  %v3083_v50 = vld [vmem:[#allocation2 + $0x741] ss:$4 sm:$0xff] }
 0x1eb   : > { %v3579_v11 = vadd.f32 %v5760_v10, %v3508_v6  ;;  %v3403_v6 = vmax.f32 %v2945_v63, %v3073_v0  ;;  %v3664_v14 = vmax.f32 %v3600_v5, 0.0  ;;  %v3337_v42 = vld [vmem:[#allocation2 + $0x723] ss:$4 sm:$0xff]  ;;  %v3211_v51 = vld [vmem:[#allocation2 + $0x742] ss:$4 sm:$0xff]  ;;  %v3408_v58 = vmax.f32 %v2955_v49, %v3083_v50 }
 0x1ec   : > { %v3706_v17 = vpop.trf.xlu0  ;;  %v3601_v12 = vadd.f32 %v5760_v10, %v3530_v3  ;;  %v3339_v52 = vld [vmem:[#allocation2 + $0x743] ss:$4 sm:$0xff]  ;;  %v3085_v61 = vld [vmem:[#allocation2 + $0x761] ss:$4 sm:$0xff]  ;;  %v3213_v62 = vld [vmem:[#allocation2 + $0x762] ss:$4 sm:$0xff] }
 0x1ed   : > { %v3643_v18 = vmax.f32 %v3579_v11, 0.0  ;;  %v2901_v19 = vld [vmem:[#allocation2 + $0x3e0] ss:$4 sm:$0xff]  ;;  %v3029_v20 = vld [vmem:[#allocation2 + $0x3e1] ss:$4 sm:$0xff]  ;;  %3857 = vst [vmem:[%s5736_s11 + $0x1a0] sm:$0xff] %v3706_v17  ;;  %v3531_v16 = vmax.f32 %v3403_v6, %v3467_v7  ;;  %v3404_v17 = vmax.f32 %v2947_v8, %v3075_v9 }
 0x1ee   : > { %v3157_v21 = vld [vmem:[#allocation2 + $0x3e2] ss:$4 sm:$0xff]  ;;  %v3285_v22 = vld [vmem:[#allocation2 + $0x3e3] ss:$4 sm:$0xff]  ;;  %v3381_v23 = vmax.f32 %v2901_v19, %v3029_v20  ;;  %v2949_v19 = vld [vmem:[#allocation2 + $0x6e0] ss:$4 sm:$0xff] }
 0x1ef   : > { %3723 = vxpose.xlu1.b32.cont [15/16] %v3643_v18, 128  ;;  %v3445_v25 = vmax.f32 %v3157_v21, %v3285_v22  ;;  %v3203_v11 = vld [vmem:[#allocation2 + $0x6c2] ss:$4 sm:$0xff]  ;;  %v3077_v20 = vld [vmem:[#allocation2 + $0x6e1] ss:$4 sm:$0xff]  ;;  %v3333_v22 = vld [vmem:[#allocation2 + $0x6e3] ss:$4 sm:$0xff]  ;;  %v3602_v26 = vadd.f32 %v5760_v10, %v3531_v16 }
 0x1f0   : > { %v3707_v27 = vpop.trf.xlu0  ;;  %v3468_v18 = vmax.f32 %v3203_v11, %v3331_v55  ;;  %v3205_v21 = vld [vmem:[#allocation2 + $0x6e2] ss:$4 sm:$0xff]  ;;  %v3341_v63 = vld [vmem:[#allocation2 + $0x763] ss:$4 sm:$0xff]  ;;  %v3669_v0 = vmax.f32 %v3605_v53, 0.0 }
 0x1f1   : > { %v3509_v28 = vmax.f32 %v3381_v23, %v3445_v25  ;;  %3861 = vst [vmem:[%s5736_s11 + $0x1c0] sm:$0xff] %v3707_v27  ;;  %v3665_v23 = vmax.f32 %v3601_v12, 0.0  ;;  %v3469_v29 = vmax.f32 %v3205_v21, %v3333_v22  ;;  %v3666_v36 = vmax.f32 %v3602_v26, 0.0  ;;  %v2959_v1 = vld [vmem:[#allocation2 + $0x780] ss:$4 sm:$0xff] }
 0x1f2   : > { %v3532_v27 = vmax.f32 %v3404_v17, %v3468_v18  ;;  %v3473_v5 = vmax.f32 %v3213_v62, %v3341_v63  ;;  %v3087_v6 = vld [vmem:[#allocation2 + $0x781] ss:$4 sm:$0xff]  ;;  %v3215_v7 = vld [vmem:[#allocation2 + $0x782] ss:$4 sm:$0xff]  ;;  %v3343_v8 = vld [vmem:[#allocation2 + $0x783] ss:$4 sm:$0xff] }
 0x1f3   : > { %v3580_v35 = vadd.f32 %v5760_v10, %v3509_v28  ;;  %v3405_v28 = vmax.f32 %v2949_v19, %v3077_v20  ;;  %v3410_v9 = vmax.f32 %v2959_v1, %v3087_v6  ;;  %v3474_v11 = vmax.f32 %v3215_v7, %v3343_v8  ;;  %v2961_v16 = vld [vmem:[#allocation2 + $0x7a0] ss:$4 sm:$0xff]  ;;  %v3089_v17 = vld [vmem:[#allocation2 + $0x7a1] ss:$4 sm:$0xff]  ;;  %v3217_v18 = vld [vmem:[#allocation2 + $0x7a2] ss:$4 sm:$0xff] }
 0x1f4   : > { %v3708_v37 = vpop.trf.xlu0  ;;  %v3345_v19 = vld [vmem:[#allocation2 + $0x7a3] ss:$4 sm:$0xff]  ;;  %v3411_v24 = vmax.f32 %v2961_v16, %v3089_v17  ;;  %v2963_v26 = vld [vmem:[#allocation2 + $0x7c0] ss:$4 sm:$0xff] }
 0x1f5   : > { %v3644_v38 = vmax.f32 %v3580_v35, 0.0  ;;  %3865 = vst [vmem:[%s5736_s11 + $0x1e0] sm:$0xff] %v3708_v37  ;;  %v3603_v37 = vadd.f32 %v5760_v10, %v3532_v27  ;;  %v3538_v20 = vmax.f32 %v3410_v9, %v3474_v11  ;;  %v3091_v27 = vld [vmem:[#allocation2 + $0x7c1] ss:$4 sm:$0xff]  ;;  %v3349_v39 = vld [vmem:[#allocation2 + $0x7e3] ss:$4 sm:$0xff] }
 0x1f6   : > { %v3412_v34 = vmax.f32 %v2963_v26, %v3091_v27 }
 0x1f7   : > { %3724 = vxpose.xlu1.b32.end [16/16] %v3644_v38, 128  ;;  %v3533_v38 = vmax.f32 %v3405_v28, %v3469_v29  ;;  %v3667_v45 = vmax.f32 %v3603_v37, 0.0  ;;  %v3219_v28 = vld [vmem:[#allocation2 + $0x7c2] ss:$4 sm:$0xff]  ;;  %v3347_v29 = vld [vmem:[#allocation2 + $0x7c3] ss:$4 sm:$0xff]  ;;  %v3609_v30 = vadd.f32 %v5760_v10, %v3538_v20 }
 0x1f8   : > { %v3757_v48 = vpop.trf.xlu0  ;;  %v3093_v37 = vld [vmem:[#allocation2 + $0x7e1] ss:$4 sm:$0xff] }
 0x1f9   : > { %3807 = vst [vmem:[%s5736_s11 + $0x10] sm:$0xff] %v3757_v48  ;;  %v3471_v48 = vmax.f32 %v3209_v41, %v3337_v42  ;;  %v3673_v40 = vmax.f32 %v3609_v30, 0.0 }
 0x1fb   : > { %3773 = vxpose.xlu1.b32.start [1/16] %v3661_v46, 128  ;;  %v3604_v46 = vadd.f32 %v5760_v10, %v3533_v38  ;;  %v3535_v57 = vmax.f32 %v3407_v47, %v3471_v48  ;;  %v3221_v38 = vld [vmem:[#allocation2 + $0x7e2] ss:$4 sm:$0xff] }
 0x1fc   : > { %v3758_v59 = vpop.trf.xlu0 }
 0x1fd   : > { %3811 = vst [vmem:[%s5736_s11 + $0x30] sm:$0xff] %v3758_v59  ;;  %v3668_v56 = vmax.f32 %v3604_v46, 0.0  ;;  %v3472_v59 = vmax.f32 %v3211_v51, %v3339_v52  ;;  %v3606_v3 = vadd.f32 %v5760_v10, %v3535_v57 }
 0x1ff   : > { %3774 = vxpose.xlu1.b32.cont [2/16] %v3662_v60, 128  ;;  %v2957_v60 = vld [vmem:[#allocation2 + $0x760] ss:$4 sm:$0xff]  ;;  %v3670_v12 = vmax.f32 %v3606_v3, 0.0 }
 0x200   : > { %v3759_v4 = vpop.trf.xlu0 }
 0x201   : > { %3815 = vst [vmem:[%s5736_s11 + $0x50] sm:$0xff] %v3759_v4  ;;  %v3536_v4 = vmax.f32 %v3408_v58, %v3472_v59 }
 0x203   : > { %3775 = vxpose.xlu1.b32.cont [3/16] %v3663_v15, 128  ;;  %v3409_v15 = vmax.f32 %v2957_v60, %v3085_v61 }
 0x204   : > { %v3760_v13 = vpop.trf.xlu0 }
 0x205   : > { %3819 = vst [vmem:[%s5736_s11 + $0x70] sm:$0xff] %v3760_v13  ;;  %v3607_v13 = vadd.f32 %v5760_v10, %v3536_v4 }
 0x207   : > { %3776 = vxpose.xlu1.b32.cont [4/16] %v3664_v14, 128  ;;  %v3537_v14 = vmax.f32 %v3409_v15, %v3473_v5  ;;  %v3671_v22 = vmax.f32 %v3607_v13, 0.0 }
 0x208   : > { %v3761_v25 = vpop.trf.xlu0 }
 0x209   : > { %3823 = vst [vmem:[%s5736_s11 + $0x90] sm:$0xff] %v3761_v25  ;;  %v3475_v25 = vmax.f32 %v3217_v18, %v3345_v19 }
 0x20b   : > { %3777 = vxpose.xlu1.b32.cont [5/16] %v3665_v23, 128  ;;  %v3608_v23 = vadd.f32 %v5760_v10, %v3537_v14  ;;  %v3539_v33 = vmax.f32 %v3411_v24, %v3475_v25 }
 0x20c   : > { %v3762_v35 = vpop.trf.xlu0 }
 0x20d   : > { %3827 = vst [vmem:[%s5736_s11 + $0xb0] sm:$0xff] %v3762_v35  ;;  %v3672_v32 = vmax.f32 %v3608_v23, 0.0  ;;  %v3476_v35 = vmax.f32 %v3219_v28, %v3347_v29  ;;  %v3610_v42 = vadd.f32 %v5760_v10, %v3539_v33 }
 0x20f   : > { %3778 = vxpose.xlu1.b32.cont [6/16] %v3666_v36, 128  ;;  %v2965_v36 = vld [vmem:[#allocation2 + $0x7e0] ss:$4 sm:$0xff]  ;;  %v3540_v43 = vmax.f32 %v3412_v34, %v3476_v35  ;;  %v3674_v47 = vmax.f32 %v3610_v42, 0.0 }
 0x210   : > { %v3763_v44 = vpop.trf.xlu0 }
 0x211   : > { %3831 = vst [vmem:[%s5736_s11 + $0xd0] sm:$0xff] %v3763_v44  ;;  %v3413_v44 = vmax.f32 %v2965_v36, %v3093_v37  ;;  %v3611_v48 = vadd.f32 %v5760_v10, %v3540_v43 }
 0x213   : > { %3779 = vxpose.xlu1.b32.cont [7/16] %v3667_v45, 128  ;;  %v3477_v45 = vmax.f32 %v3221_v38, %v3349_v39  ;;  %v3675_v51 = vmax.f32 %v3611_v48, 0.0 }
 0x214   : > { %v3764_v54 = vpop.trf.xlu0 }
 0x215   : > { %3835 = vst [vmem:[%s5736_s11 + $0xf0] sm:$0xff] %v3764_v54  ;;  %v3541_v49 = vmax.f32 %v3413_v44, %v3477_v45 }
 0x217   : > { %3780 = vxpose.xlu1.b32.cont [8/16] %v3668_v56, 128  ;;  %v3612_v52 = vadd.f32 %v5760_v10, %v3541_v49 }
 0x218   : > { %v3765_v2 = vpop.trf.xlu0 }
 0x219   : > { %3839 = vst [vmem:[%s5736_s11 + $0x110] sm:$0xff] %v3765_v2  ;;  %v3676_v54 = vmax.f32 %v3612_v52, 0.0 }
 0x21b   : > { %3781 = vxpose.xlu1.b32.cont [9/16] %v3669_v0, 128 }
 0x21c   : > { %v3766_v55 = vpop.trf.xlu0 }
 0x21d   : > { %3843 = vst [vmem:[%s5736_s11 + $0x130] sm:$0xff] %v3766_v55 }
 0x21f   : > { %3782 = vxpose.xlu1.b32.cont [10/16] %v3670_v12, 128 }
 0x220   : > { %v3767_v21 = vpop.trf.xlu0 }
 0x221   : > { %3847 = vst [vmem:[%s5736_s11 + $0x150] sm:$0xff] %v3767_v21 }
 0x223   : > { %3783 = vxpose.xlu1.b32.cont [11/16] %v3671_v22, 128 }
 0x224   : > { %v3768_v31 = vpop.trf.xlu0 }
 0x225   : > { %3851 = vst [vmem:[%s5736_s11 + $0x170] sm:$0xff] %v3768_v31 }
 0x227   : > { %3784 = vxpose.xlu1.b32.cont [12/16] %v3672_v32, 128 }
 0x228   : > { %v3769_v41 = vpop.trf.xlu0 }
 0x229   : > { %3855 = vst [vmem:[%s5736_s11 + $0x190] sm:$0xff] %v3769_v41 }
 0x22b   : > { %3785 = vxpose.xlu1.b32.cont [13/16] %v3673_v40, 128 }
 0x22c   : > { %v3770_v46 = vpop.trf.xlu0 }
 0x22d   : > { %3859 = vst [vmem:[%s5736_s11 + $0x1b0] sm:$0xff] %v3770_v46 }
 0x22f   : > { %3786 = vxpose.xlu1.b32.cont [14/16] %v3674_v47, 128 }
 0x230   : > { %v3771_v50 = vpop.trf.xlu0 }
 0x231   : > { %3863 = vst [vmem:[%s5736_s11 + $0x1d0] sm:$0xff] %v3771_v50 }
 0x233   : > { %3787 = vxpose.xlu1.b32.cont [15/16] %v3675_v51, 128 }
 0x234   : > { %v3772_v53 = vpop.trf.xlu0 }
 0x235   : > { %3867 = vst [vmem:[%s5736_s11 + $0x1f0] sm:$0xff] %v3772_v53 }
 0x237   : > { %3788 = vxpose.xlu1.b32.end [16/16] %v3676_v54, 128  ;;  %v3725_v56 = vpop.trf.xlu1 }
 0x238   : > { %3806 = vst [vmem:[%s5736_s11 + $0x8] sm:$0xff] %v3725_v56 }
 0x23b   : > { %v3726_v57 = vpop.trf.xlu1 }
 0x23c   : > { %3810 = vst [vmem:[%s5736_s11 + $0x28] sm:$0xff] %v3726_v57 }
 0x23f   : > { %v3727_v58 = vpop.trf.xlu1 }
 0x240   : > { %3814 = vst [vmem:[%s5736_s11 + $0x48] sm:$0xff] %v3727_v58 }
 0x243   : > { %v3728_v10 = vpop.trf.xlu1 }
 0x244   : > { %3818 = vst [vmem:[%s5736_s11 + $0x68] sm:$0xff] %v3728_v10 }
 0x247   : > { %v3729_v59 = vpop.trf.xlu1 }
 0x248   : > { %3822 = vst [vmem:[%s5736_s11 + $0x88] sm:$0xff] %v3729_v59 }
 0x24b   : > { %v3730_v60 = vpop.trf.xlu1 }
 0x24c   : > { %3826 = vst [vmem:[%s5736_s11 + $0xa8] sm:$0xff] %v3730_v60 }
 0x24f   : > { %v3731_v61 = vpop.trf.xlu1 }
 0x250   : > { %3830 = vst [vmem:[%s5736_s11 + $0xc8] sm:$0xff] %v3731_v61 }
 0x253   : > { %v3732_v62 = vpop.trf.xlu1 }
 0x254   : > { %3834 = vst [vmem:[%s5736_s11 + $0xe8] sm:$0xff] %v3732_v62 }
 0x257   : > { %v3733_v63 = vpop.trf.xlu1 }
 0x258   : > { %3838 = vst [vmem:[%s5736_s11 + $0x108] sm:$0xff] %v3733_v63 }
 0x25b   : > { %v3734_v0 = vpop.trf.xlu1 }
 0x25c   : > { %3842 = vst [vmem:[%s5736_s11 + $0x128] sm:$0xff] %v3734_v0 }
 0x25f   : > { %v3735_v1 = vpop.trf.xlu1 }
 0x260   : > { %3846 = vst [vmem:[%s5736_s11 + $0x148] sm:$0xff] %v3735_v1 }
 0x263   : > { %v3736_v2 = vpop.trf.xlu1 }
 0x264   : > { %3850 = vst [vmem:[%s5736_s11 + $0x168] sm:$0xff] %v3736_v2 }
 0x267   : > { %v3737_v3 = vpop.trf.xlu1 }
 0x268   : > { %3854 = vst [vmem:[%s5736_s11 + $0x188] sm:$0xff] %v3737_v3 }
 0x26b   : > { %v3738_v4 = vpop.trf.xlu1 }
 0x26c   : > { %3858 = vst [vmem:[%s5736_s11 + $0x1a8] sm:$0xff] %v3738_v4 }
 0x26f   : > { %v3739_v15 = vpop.trf.xlu1 }
 0x270   : > { %3862 = vst [vmem:[%s5736_s11 + $0x1c8] sm:$0xff] %v3739_v15 }
 0x273   : > { %v3740_v5 = vpop.trf.xlu1 }
 0x274   : > { %3866 = vst [vmem:[%s5736_s11 + $0x1e8] sm:$0xff] %v3740_v5 }
 0x277   : > { %v3789_v6 = vpop.trf.xlu1 }
 0x278   : > { %3808 = vst [vmem:[%s5736_s11 + $0x18] sm:$0xff] %v3789_v6 }
 0x27b   : > { %v3790_v7 = vpop.trf.xlu1 }
 0x27c   : > { %3812 = vst [vmem:[%s5736_s11 + $0x38] sm:$0xff] %v3790_v7 }
 0x27f   : > { %v3791_v8 = vpop.trf.xlu1 }
 0x280   : > { %3816 = vst [vmem:[%s5736_s11 + $0x58] sm:$0xff] %v3791_v8 }
 0x283   : > { %v3792_v9 = vpop.trf.xlu1 }
 0x284   : > { %3820 = vst [vmem:[%s5736_s11 + $0x78] sm:$0xff] %v3792_v9 }
 0x287   : > { %v3793_v11 = vpop.trf.xlu1 }
 0x288   : > { %3824 = vst [vmem:[%s5736_s11 + $0x98] sm:$0xff] %v3793_v11 }
 0x28b   : > { %v3794_v55 = vpop.trf.xlu1 }
 0x28c   : > { %3828 = vst [vmem:[%s5736_s11 + $0xb8] sm:$0xff] %v3794_v55 }
 0x28f   : > { %v3795_v12 = vpop.trf.xlu1 }
 0x290   : > { %3832 = vst [vmem:[%s5736_s11 + $0xd8] sm:$0xff] %v3795_v12 }
 0x293   : > { %v3796_v13 = vpop.trf.xlu1 }
 0x294   : > { %3836 = vst [vmem:[%s5736_s11 + $0xf8] sm:$0xff] %v3796_v13 }
 0x297   : > { %v3797_v14 = vpop.trf.xlu1 }
 0x298   : > { %3840 = vst [vmem:[%s5736_s11 + $0x118] sm:$0xff] %v3797_v14 }
 0x29b   : > { %v3798_v16 = vpop.trf.xlu1 }
 0x29c   : > { %3844 = vst [vmem:[%s5736_s11 + $0x138] sm:$0xff] %v3798_v16 }
 0x29f   : > { %v3799_v17 = vpop.trf.xlu1 }
 0x2a0   : > { %3848 = vst [vmem:[%s5736_s11 + $0x158] sm:$0xff] %v3799_v17 }
 0x2a3   : > { %v3800_v18 = vpop.trf.xlu1 }
 0x2a4   : > { %3852 = vst [vmem:[%s5736_s11 + $0x178] sm:$0xff] %v3800_v18 }
 0x2a7   : > { %v3801_v19 = vpop.trf.xlu1 }
 0x2a8   : > { %3856 = vst [vmem:[%s5736_s11 + $0x198] sm:$0xff] %v3801_v19 }
 0x2ab   : > { %v3802_v20 = vpop.trf.xlu1 }
 0x2ac   : > { %3860 = vst [vmem:[%s5736_s11 + $0x1b8] sm:$0xff] %v3802_v20 }
 0x2af   : > { %v3803_v21 = vpop.trf.xlu1 }
 0x2b0   : > { %3864 = vst [vmem:[%s5736_s11 + $0x1d8] sm:$0xff] %v3803_v21 }
 0x2b3   : > { %v3804_v22 = vpop.trf.xlu1 }
 0x2b4   : > { %3868 = vst [vmem:[%s5736_s11 + $0x1f8] sm:$0xff] %v3804_v22 }
 0x2b5   : > { %4994 = shalt.err (!%p4991_p5)
}
 0x2b6   : > { %s4995_s6 = scalar_lea.hbm %s5835_s28, 8192  ;;  %s4999_s9 = scalar_lea.hbm %s5890_s3, 16384 }
 0x2b7   : > { %p4996_p6 = scmp.ne.s32.totalorder %s5835_s28, %s4995_s6  ;;  %p5000_p10 = scmp.lt.s32.totalorder %s5835_s28, %s5890_s3 }
 0x2b8   : > { %p5001_p11 = scmp.lt.s32.totalorder %s4999_s9, %s4995_s6 }
 0x2b9   : > { %p4997_p7 = pnand %p4996_p6, %p5122_p4 }
 0x2ba   : > { %p5002_p12 = por %p5001_p11, %p5000_p10 }
 0x2bb   : > { %p4998_p9 = pneg %p4997_p7 }
 0x2bd   : > { %p5003_p13 = pnand %p5002_p12, %p4998_p9 }
 0x2bf   : > { %5006 = shalt.err (!%p5003_p13)
}
 0x2c0   : > { %s5060_s18 = smov 512   ;;  %s5061_s19 = smov 32  }
 0x2c1   : > { %4922 = dma.vmem_to_hbm [thread:$0]  (%p5122_p4), %s5837_s23, 8192, %s5835_s28, %s5842_s29, %s5060_s18, %s5060_s18, %s5061_s19  }
 0x2c2 PF: > { %p4928_p0 = scmp.ge.s32.totalorder %s5057_s17, 2  ;;  %s3900_s21 = sand.u32 1, %s5037_s12  }
 0x2c3   : > { %s3901_s26 = scalar_lea.sflag [#allocation4], %s3900_s21 }
 0x2c4   : > { %p4925_p1 = pnand %p4928_p0, %p5129_p8 }
 0x2c6   : > { %p4926_p2 = pneg %p4925_p1 }
 0x2c8   : > { %5032 = dma.done.wait (%p4926_p2), %s3901_s26, 8192  }
 0x2c9   : > { %5034 = vsyncadd (%p4926_p2), %s3901_s26, 4294959104  ;;  %s16_s17 = sadd.s32 1, %s5057_s17   ;;  %s5893_s12 = smov %s5041_s13 }
 0x2ca   : > { %p13_p3 = scmp.ge.s32.totalorder %s16_s17, 4   ;;  %s5894_s13 = smov %s5045_s14 }
 0x2cb   : > { %s5895_s14 = smov %s5135_s25  ;;  %s5896_s15 = smov %s5053_s16 }
 0x2cc   : > { %s5897_s16 = smov %s5899_s20  ;;  %15 = sbr.rel (!%p13_p3) target bundleno = 4 (0x4), region = 322 }
 0x2d1   :  { %3906 = vsyncpa [#allocation4], 1 }
 0x2d2   :  { %3908 = vsyncpa [#allocation4 + $0x1], 1 }

</bundles_post_ra>
